<compile_context>
chip_gen: v7x
topology: tpu7x:2x2x1
jax: 0.10.0
libtpu: 0.0.40
codegen_flags: <defaults>
</compile_context>

<pallas_src>
import functools
import math

import jax
import jax.numpy as jnp
from jax.experimental import pallas as pl
from jax.experimental.pallas import tpu as pltpu


def _round_up(x, m):
    return (x + m - 1) // m * m


# Fixed conv-trunk layout constants.
CONV_CPAD = 32                 # input channels padded to 32 through the trunk
CONV_NTAP = 12                 # 9 real 3x3 taps + 3 zero taps -> lane aligned
CONV_K = CONV_NTAP * CONV_CPAD  # 384 (multiple of 128)
CONV_NOUT = 128                # 32 real output channels padded to one tile


# ---------------------------------------------------------------------------
# Pallas kernels
# ---------------------------------------------------------------------------
def _conv_mm_kernel(a_ref, w_ref, b_ref, o_ref):
    # bf16 x bf16 on the MXU, f32 accumulate + bias + ReLU, store bf16.
    acc = jnp.dot(a_ref[...], w_ref[...], preferred_element_type=jnp.float32)
    acc = acc + b_ref[...]
    acc = jnp.maximum(acc, 0.0)
    o_ref[...] = acc.astype(o_ref.dtype)


def _head_kernel(x_ref, wl_ref, bl_ref, wh_ref, bh_ref, o_ref):
    # Fused: h = x @ W_linear + b_linear (no ReLU, matching the reference),
    # then [actor | critic] = h @ W_heads + b_heads, all in one launch.
    h = jnp.dot(x_ref[...], wl_ref[...], preferred_element_type=jnp.float32)
    h = h + bl_ref[...]
    o = jnp.dot(h.astype(jnp.bfloat16), wh_ref[...],
                preferred_element_type=jnp.float32)
    o_ref[...] = o + bh_ref[...]


# ---------------------------------------------------------------------------
# Kernel wrappers
# ---------------------------------------------------------------------------
def _pick_tiles(M, target=512):
    """Tile M: target ~512-row tiles but always >= 2 grid steps (v7x megacore)."""
    steps = max(2, -(-M // target))
    tm = _round_up(-(-M // steps), 16)     # 16: bf16 sublane packing
    Mp = _round_up(M, tm)
    return tm, Mp


def conv_layer(patches, w, b):
    """patches: (M, 384) bf16; w: (384, 128) bf16; b: (1, 128) f32 -> (M, 32) bf16."""
    M, K = patches.shape
    tm, Mp = _pick_tiles(M)
    a = patches if Mp == M else jnp.pad(patches, ((0, Mp - M), (0, 0)))
    out = pl.pallas_call(
        _conv_mm_kernel,
        out_shape=jax.ShapeDtypeStruct((Mp, CONV_NOUT), jnp.bfloat16),
        grid_spec=pltpu.PrefetchScalarGridSpec(
            num_scalar_prefetch=0,
            grid=(Mp // tm,),
            in_specs=[
                pl.BlockSpec((tm, K), lambda i: (i, 0)),          # activations
                pl.BlockSpec((K, CONV_NOUT), lambda i: (0, 0)),   # weight (resident)
                pl.BlockSpec((1, CONV_NOUT), lambda i: (0, 0)),   # bias (resident)
            ],
            out_specs=pl.BlockSpec((tm, CONV_NOUT), lambda i: (i, 0)),
        ),
        compiler_params=pltpu.CompilerParams(
            dimension_semantics=("parallel",)),
    )(a, w, b)
    return out[:M, :32]


def head_block(flat, wl, bl, wh, bh):
    """flat: (Mp, 1152) bf16 -> (Mp, 128) f32 holding [actor | critic | pad]."""
    M, K = flat.shape
    H = wl.shape[1]
    N = wh.shape[1]
    return pl.pallas_call(
        _head_kernel,
        out_shape=jax.ShapeDtypeStruct((M, N), jnp.float32),
        grid_spec=pltpu.PrefetchScalarGridSpec(
            num_scalar_prefetch=0,
            grid=(1,),
            in_specs=[
                pl.BlockSpec((M, K), lambda i: (0, 0)),
                pl.BlockSpec((K, H), lambda i: (0, 0)),
                pl.BlockSpec((1, H), lambda i: (0, 0)),
                pl.BlockSpec((H, N), lambda i: (0, 0)),
                pl.BlockSpec((1, N), lambda i: (0, 0)),
            ],
            out_specs=pl.BlockSpec((M, N), lambda i: (0, 0)),
        ),
        compiler_params=pltpu.CompilerParams(
            dimension_semantics=("arbitrary",)),
    )(flat, wl, bl, wh, bh)


# ---------------------------------------------------------------------------
# im2col for 3x3, stride 2, pad 1 conv (NHWC, channel-padded to 32)
# ---------------------------------------------------------------------------
def im2col_s2_p1_k3(x):
    """x: (B, H, W, 32) bf16 -> (B*Ho*Wo, 384) bf16, rows in (kh, kw, c) order."""
    B, H, W, C = x.shape
    Ho, Wo = (H + 1) // 2, (W + 1) // 2
    xp = jnp.pad(x, ((0, 0), (1, 1), (1, 1), (0, 0)))
    parts = [xp[:, kh:kh + 2 * Ho:2, kw:kw + 2 * Wo:2, :]
             for kh in range(3) for kw in range(3)]
    parts += [jnp.zeros_like(parts[0])] * (CONV_NTAP - 9)   # pad K to 384
    p = jnp.stack(parts, axis=3)                             # (B, Ho, Wo, 12, 32)
    return p.reshape(B * Ho * Wo, CONV_K), Ho, Wo


# ---------------------------------------------------------------------------
# Parameter init: orthogonal (relu gain), zero bias — pre-padded, bf16 weights
# ---------------------------------------------------------------------------
def init_params(key, num_inputs, num_actions):
    assert num_actions + 1 <= 128, "heads assume actor+critic fit one 128 tile"
    gain = math.sqrt(2.0)  # nn.init.calculate_gain('relu')
    ortho = jax.nn.initializers.orthogonal(scale=gain)
    keys = jax.random.split(key, 7)
    params = {}

    cin = num_inputs
    for i in range(4):
        # Real weight in im2col row order (kh, kw, cin): (9*cin, 32).
        w = ortho(keys[i], (9 * cin, 32), jnp.float32).reshape(9, cin, 32)
        wp = (jnp.zeros((CONV_NTAP, CONV_CPAD, 32), jnp.float32)
              .at[:9, :cin, :].set(w)).reshape(CONV_K, 32)
        wfull = jnp.zeros((CONV_K, CONV_NOUT), jnp.float32).at[:, :32].set(wp)
        params[f"conv{i + 1}"] = (wfull.astype(jnp.bfloat16),
                                  jnp.zeros((1, CONV_NOUT), jnp.float32))
        cin = 32

    wl = ortho(keys[4], (32 * 6 * 6, 512), jnp.float32)
    params["linear"] = (wl.astype(jnp.bfloat16),
                        jnp.zeros((1, 512), jnp.float32))

    wa = ortho(keys[5], (512, num_actions), jnp.float32)
    wc = ortho(keys[6], (512, 1), jnp.float32)
    wh = (jnp.zeros((512, 128), jnp.float32)
          .at[:, :num_actions].set(wa)
          .at[:, num_actions:num_actions + 1].set(wc))
    params["heads"] = (wh.astype(jnp.bfloat16),
                       jnp.zeros((1, 128), jnp.float32))
    return params


# ---------------------------------------------------------------------------
# Forward pass (matches PPO.forward: 4x conv+relu, linear, actor/critic heads)
# ---------------------------------------------------------------------------
def ppo_forward(x_nchw, params, *, num_actions):
    B, C_in = x_nchw.shape[0], x_nchw.shape[1]
    # NCHW -> NHWC, cast bf16, channel-pad once to the trunk's fixed width.
    x = jnp.transpose(x_nchw, (0, 2, 3, 1)).astype(jnp.bfloat16)
    x = jnp.pad(x, ((0, 0), (0, 0), (0, 0), (0, CONV_CPAD - C_in)))

    for i in range(4):
        w, b = params[f"conv{i + 1}"]
        patches, Ho, Wo = im2col_s2_p1_k3(x)
        y = conv_layer(patches, w, b)            # (B*Ho*Wo, 32) bf16
        x = y.reshape(B, Ho, Wo, 32)

    # Flatten in PyTorch (C, H, W) order before the fused linear/head kernel.
    flat = jnp.transpose(x, (0, 3, 1, 2)).reshape(B, -1)     # (B, 1152) bf16
    Mp = _round_up(max(B, 16), 16)
    flat_p = jnp.pad(flat, ((0, Mp - B), (0, 0)))

    wl, bl = params["linear"]
    wh, bh = params["heads"]
    out = head_block(flat_p, wl, bl, wh, bh)     # (Mp, 128) f32

    actor = out[:B, :num_actions]                # (B, num_actions)
    critic = out[:B, num_actions:num_actions + 1]  # (B, 1)
    return actor, critic


if __name__ == "__main__":
    # Spatial size 96x96 is implied by the flatten to 32*6*6
    # (96 -> 48 -> 24 -> 12 -> 6 with four stride-2 convs).
    batch, num_inputs, num_actions = 2, 4, 6
    key = jax.random.PRNGKey(0)
    k_params, k_x = jax.random.split(key)
    params = init_params(k_params, num_inputs, num_actions)
    x = jax.random.normal(k_x, (batch, num_inputs, 96, 96), jnp.float32)

    fwd = jax.jit(functools.partial(ppo_forward, num_actions=num_actions))
    actor, critic = fwd(x, params)
    jax.block_until_ready((actor, critic))

    assert actor.shape == (batch, num_actions), actor.shape
    assert critic.shape == (batch, 1), critic.shape
    assert actor.dtype == jnp.float32 and critic.dtype == jnp.float32
    print("KERNEL_OK")
</pallas_src>

<mosaic_0001>
module attributes {stable_mosaic.version = 11 : i64} {
  func.func @_conv_mm_kernel(%arg0: i32, %arg1: memref<512x384xbf16, #tpu.memory_space<vmem>>, %arg2: memref<384x128xbf16, #tpu.memory_space<vmem>>, %arg3: memref<1x128xf32, #tpu.memory_space<vmem>>, %arg4: memref<512x128xbf16, #tpu.memory_space<vmem>>) attributes {dimension_semantics = [#tpu.dimension_semantics<parallel>], iteration_bounds = array<i64: 9>, scalar_prefetch = 0 : i64, scratch_operands = 0 : i64, tpu.core_type = #tpu.core_type<tc>, window_params = [{transform_indices = @transform_0, window_bounds = array<i64: 512, 384>}, {pipeline_mode = #tpu.pipeline_mode<synchronous>, transform_indices = @transform_1, window_bounds = array<i64: 384, 128>}, {pipeline_mode = #tpu.pipeline_mode<synchronous>, transform_indices = @transform_2, window_bounds = array<i64: 1, 128>}, {transform_indices = @transform_3, window_bounds = array<i64: 512, 128>}]} {
    %c0 = arith.constant 0 : index
    %c0_0 = arith.constant 0 : index
    %0 = vector.load %arg1[%c0, %c0_0] : memref<512x384xbf16, #tpu.memory_space<vmem>>, vector<512x384xbf16>
    %c0_1 = arith.constant 0 : index
    %c0_2 = arith.constant 0 : index
    %1 = vector.load %arg2[%c0_1, %c0_2] : memref<384x128xbf16, #tpu.memory_space<vmem>>, vector<384x128xbf16>
    %cst = arith.constant dense<0.000000e+00> : vector<512x128xf32>
    %2 = tpu.matmul %0, %1, %cst {dimension_numbers = #tpu.dot_dimension_numbers<[1], [0], [0], [1], [0, 0, 1, 1], [], []>} : vector<512x384xbf16>, vector<384x128xbf16>, vector<512x128xf32> -> vector<512x128xf32>
    %c0_3 = arith.constant 0 : index
    %c0_4 = arith.constant 0 : index
    %3 = vector.load %arg3[%c0_3, %c0_4] : memref<1x128xf32, #tpu.memory_space<vmem>>, vector<1x128xf32>
    %4 = vector.broadcast %3 : vector<1x128xf32> to vector<512x128xf32>
    %5 = arith.addf %2, %4 : vector<512x128xf32>
    %cst_5 = arith.constant 0.000000e+00 : f32
    %6 = vector.broadcast %cst_5 : f32 to vector<512x128xf32>
    %7 = arith.maximumf %5, %6 : vector<512x128xf32>
    %8 = arith.truncf %7 : vector<512x128xf32> to vector<512x128xbf16>
    %c0_6 = arith.constant 0 : index
    %c0_7 = arith.constant 0 : index
    %9 = vector.load %arg4[%c0_6, %c0_7] : memref<512x128xbf16, #tpu.memory_space<vmem>>, vector<512x128xbf16>
    tpu.vector_store %arg4[%c0_6, %c0_7], %8 {strides = array<i32>} : memref<512x128xbf16, #tpu.memory_space<vmem>>, vector<512x128xbf16>,
    return
  }
  func.func @transform_0(%arg0: i32) -> (i32, i32) {
    %c0_i32 = arith.constant 0 : i32
    %c0_i32_0 = arith.constant 0 : i32
    return %arg0, %c0_i32 : i32, i32
  }
  func.func @transform_1(%arg0: i32) -> (i32, i32) {
    %c0_i32 = arith.constant 0 : i32
    %c0_i32_0 = arith.constant 0 : i32
    %c0_i32_1 = arith.constant 0 : i32
    return %c0_i32, %c0_i32_0 : i32, i32
  }
  func.func @transform_2(%arg0: i32) -> (i32, i32) {
    %c0_i32 = arith.constant 0 : i32
    %c0_i32_0 = arith.constant 0 : i32
    %c0_i32_1 = arith.constant 0 : i32
    return %c0_i32, %c0_i32_0 : i32, i32
  }
  func.func @transform_3(%arg0: i32) -> (i32, i32) {
    %c0_i32 = arith.constant 0 : i32
    %c0_i32_0 = arith.constant 0 : i32
    return %arg0, %c0_i32 : i32, i32
  }
}

module attributes {stable_mosaic.version = 11 : i64} {
  func.func @_conv_mm_kernel(%arg0: i32, %arg1: memref<384x384xbf16, #tpu.memory_space<vmem>>, %arg2: memref<384x128xbf16, #tpu.memory_space<vmem>>, %arg3: memref<1x128xf32, #tpu.memory_space<vmem>>, %arg4: memref<384x128xbf16, #tpu.memory_space<vmem>>) attributes {dimension_semantics = [#tpu.dimension_semantics<parallel>], iteration_bounds = array<i64: 3>, scalar_prefetch = 0 : i64, scratch_operands = 0 : i64, tpu.core_type = #tpu.core_type<tc>, window_params = [{transform_indices = @transform_0, window_bounds = array<i64: 384, 384>}, {pipeline_mode = #tpu.pipeline_mode<synchronous>, transform_indices = @transform_1, window_bounds = array<i64: 384, 128>}, {pipeline_mode = #tpu.pipeline_mode<synchronous>, transform_indices = @transform_2, window_bounds = array<i64: 1, 128>}, {transform_indices = @transform_3, window_bounds = array<i64: 384, 128>}]} {
    %c0 = arith.constant 0 : index
    %c0_0 = arith.constant 0 : index
    %0 = vector.load %arg1[%c0, %c0_0] : memref<384x384xbf16, #tpu.memory_space<vmem>>, vector<384x384xbf16>
    %c0_1 = arith.constant 0 : index
    %c0_2 = arith.constant 0 : index
    %1 = vector.load %arg2[%c0_1, %c0_2] : memref<384x128xbf16, #tpu.memory_space<vmem>>, vector<384x128xbf16>
    %cst = arith.constant dense<0.000000e+00> : vector<384x128xf32>
    %2 = tpu.matmul %0, %1, %cst {dimension_numbers = #tpu.dot_dimension_numbers<[1], [0], [0], [1], [0, 0, 1, 1], [], []>} : vector<384x384xbf16>, vector<384x128xbf16>, vector<384x128xf32> -> vector<384x128xf32>
    %c0_3 = arith.constant 0 : index
    %c0_4 = arith.constant 0 : index
    %3 = vector.load %arg3[%c0_3, %c0_4] : memref<1x128xf32, #tpu.memory_space<vmem>>, vector<1x128xf32>
    %4 = vector.broadcast %3 : vector<1x128xf32> to vector<384x128xf32>
    %5 = arith.addf %2, %4 : vector<384x128xf32>
    %cst_5 = arith.constant 0.000000e+00 : f32
    %6 = vector.broadcast %cst_5 : f32 to vector<384x128xf32>
    %7 = arith.maximumf %5, %6 : vector<384x128xf32>
    %8 = arith.truncf %7 : vector<384x128xf32> to vector<384x128xbf16>
    %c0_6 = arith.constant 0 : index
    %c0_7 = arith.constant 0 : index
    %9 = vector.load %arg4[%c0_6, %c0_7] : memref<384x128xbf16, #tpu.memory_space<vmem>>, vector<384x128xbf16>
    tpu.vector_store %arg4[%c0_6, %c0_7], %8 {strides = array<i32>} : memref<384x128xbf16, #tpu.memory_space<vmem>>, vector<384x128xbf16>,
    return
  }
  func.func @transform_0(%arg0: i32) -> (i32, i32) {
    %c0_i32 = arith.constant 0 : i32
    %c0_i32_0 = arith.constant 0 : i32
    return %arg0, %c0_i32 : i32, i32
  }
  func.func @transform_1(%arg0: i32) -> (i32, i32) {
    %c0_i32 = arith.constant 0 : i32
    %c0_i32_0 = arith.constant 0 : i32
    %c0_i32_1 = arith.constant 0 : i32
    return %c0_i32, %c0_i32_0 : i32, i32
  }
  func.func @transform_2(%arg0: i32) -> (i32, i32) {
    %c0_i32 = arith.constant 0 : i32
    %c0_i32_0 = arith.constant 0 : i32
    %c0_i32_1 = arith.constant 0 : i32
    return %c0_i32, %c0_i32_0 : i32, i32
  }
  func.func @transform_3(%arg0: i32) -> (i32, i32) {
    %c0_i32 = arith.constant 0 : i32
    %c0_i32_0 = arith.constant 0 : i32
    return %arg0, %c0_i32 : i32, i32
  }
}

module attributes {stable_mosaic.version = 11 : i64} {
  func.func @_conv_mm_kernel(%arg0: i32, %arg1: memref<144x384xbf16, #tpu.memory_space<vmem>>, %arg2: memref<384x128xbf16, #tpu.memory_space<vmem>>, %arg3: memref<1x128xf32, #tpu.memory_space<vmem>>, %arg4: memref<144x128xbf16, #tpu.memory_space<vmem>>) attributes {dimension_semantics = [#tpu.dimension_semantics<parallel>], iteration_bounds = array<i64: 2>, scalar_prefetch = 0 : i64, scratch_operands = 0 : i64, tpu.core_type = #tpu.core_type<tc>, window_params = [{transform_indices = @transform_0, window_bounds = array<i64: 144, 384>}, {pipeline_mode = #tpu.pipeline_mode<synchronous>, transform_indices = @transform_1, window_bounds = array<i64: 384, 128>}, {pipeline_mode = #tpu.pipeline_mode<synchronous>, transform_indices = @transform_2, window_bounds = array<i64: 1, 128>}, {transform_indices = @transform_3, window_bounds = array<i64: 144, 128>}]} {
    %c0 = arith.constant 0 : index
    %c0_0 = arith.constant 0 : index
    %0 = vector.load %arg1[%c0, %c0_0] : memref<144x384xbf16, #tpu.memory_space<vmem>>, vector<144x384xbf16>
    %c0_1 = arith.constant 0 : index
    %c0_2 = arith.constant 0 : index
    %1 = vector.load %arg2[%c0_1, %c0_2] : memref<384x128xbf16, #tpu.memory_space<vmem>>, vector<384x128xbf16>
    %cst = arith.constant dense<0.000000e+00> : vector<144x128xf32>
    %2 = tpu.matmul %0, %1, %cst {dimension_numbers = #tpu.dot_dimension_numbers<[1], [0], [0], [1], [0, 0, 1, 1], [], []>} : vector<144x384xbf16>, vector<384x128xbf16>, vector<144x128xf32> -> vector<144x128xf32>
    %c0_3 = arith.constant 0 : index
    %c0_4 = arith.constant 0 : index
    %3 = vector.load %arg3[%c0_3, %c0_4] : memref<1x128xf32, #tpu.memory_space<vmem>>, vector<1x128xf32>
    %4 = vector.broadcast %3 : vector<1x128xf32> to vector<144x128xf32>
    %5 = arith.addf %2, %4 : vector<144x128xf32>
    %cst_5 = arith.constant 0.000000e+00 : f32
    %6 = vector.broadcast %cst_5 : f32 to vector<144x128xf32>
    %7 = arith.maximumf %5, %6 : vector<144x128xf32>
    %8 = arith.truncf %7 : vector<144x128xf32> to vector<144x128xbf16>
    %c0_6 = arith.constant 0 : index
    %c0_7 = arith.constant 0 : index
    %9 = vector.load %arg4[%c0_6, %c0_7] : memref<144x128xbf16, #tpu.memory_space<vmem>>, vector<144x128xbf16>
    tpu.vector_store %arg4[%c0_6, %c0_7], %8 {strides = array<i32>} : memref<144x128xbf16, #tpu.memory_space<vmem>>, vector<144x128xbf16>,
    return
  }
  func.func @transform_0(%arg0: i32) -> (i32, i32) {
    %c0_i32 = arith.constant 0 : i32
    %c0_i32_0 = arith.constant 0 : i32
    return %arg0, %c0_i32 : i32, i32
  }
  func.func @transform_1(%arg0: i32) -> (i32, i32) {
    %c0_i32 = arith.constant 0 : i32
    %c0_i32_0 = arith.constant 0 : i32
    %c0_i32_1 = arith.constant 0 : i32
    return %c0_i32, %c0_i32_0 : i32, i32
  }
  func.func @transform_2(%arg0: i32) -> (i32, i32) {
    %c0_i32 = arith.constant 0 : i32
    %c0_i32_0 = arith.constant 0 : i32
    %c0_i32_1 = arith.constant 0 : i32
    return %c0_i32, %c0_i32_0 : i32, i32
  }
  func.func @transform_3(%arg0: i32) -> (i32, i32) {
    %c0_i32 = arith.constant 0 : i32
    %c0_i32_0 = arith.constant 0 : i32
    return %arg0, %c0_i32 : i32, i32
  }
}

module attributes {stable_mosaic.version = 11 : i64} {
  func.func @_conv_mm_kernel(%arg0: i32, %arg1: memref<48x384xbf16, #tpu.memory_space<vmem>>, %arg2: memref<384x128xbf16, #tpu.memory_space<vmem>>, %arg3: memref<1x128xf32, #tpu.memory_space<vmem>>, %arg4: memref<48x128xbf16, #tpu.memory_space<vmem>>) attributes {dimension_semantics = [#tpu.dimension_semantics<parallel>], iteration_bounds = array<i64: 2>, scalar_prefetch = 0 : i64, scratch_operands = 0 : i64, tpu.core_type = #tpu.core_type<tc>, window_params = [{transform_indices = @transform_0, window_bounds = array<i64: 48, 384>}, {pipeline_mode = #tpu.pipeline_mode<synchronous>, transform_indices = @transform_1, window_bounds = array<i64: 384, 128>}, {pipeline_mode = #tpu.pipeline_mode<synchronous>, transform_indices = @transform_2, window_bounds = array<i64: 1, 128>}, {transform_indices = @transform_3, window_bounds = array<i64: 48, 128>}]} {
    %c0 = arith.constant 0 : index
    %c0_0 = arith.constant 0 : index
    %0 = vector.load %arg1[%c0, %c0_0] : memref<48x384xbf16, #tpu.memory_space<vmem>>, vector<48x384xbf16>
    %c0_1 = arith.constant 0 : index
    %c0_2 = arith.constant 0 : index
    %1 = vector.load %arg2[%c0_1, %c0_2] : memref<384x128xbf16, #tpu.memory_space<vmem>>, vector<384x128xbf16>
    %cst = arith.constant dense<0.000000e+00> : vector<48x128xf32>
    %2 = tpu.matmul %0, %1, %cst {dimension_numbers = #tpu.dot_dimension_numbers<[1], [0], [0], [1], [0, 0, 1, 1], [], []>} : vector<48x384xbf16>, vector<384x128xbf16>, vector<48x128xf32> -> vector<48x128xf32>
    %c0_3 = arith.constant 0 : index
    %c0_4 = arith.constant 0 : index
    %3 = vector.load %arg3[%c0_3, %c0_4] : memref<1x128xf32, #tpu.memory_space<vmem>>, vector<1x128xf32>
    %4 = vector.broadcast %3 : vector<1x128xf32> to vector<48x128xf32>
    %5 = arith.addf %2, %4 : vector<48x128xf32>
    %cst_5 = arith.constant 0.000000e+00 : f32
    %6 = vector.broadcast %cst_5 : f32 to vector<48x128xf32>
    %7 = arith.maximumf %5, %6 : vector<48x128xf32>
    %8 = arith.truncf %7 : vector<48x128xf32> to vector<48x128xbf16>
    %c0_6 = arith.constant 0 : index
    %c0_7 = arith.constant 0 : index
    %9 = vector.load %arg4[%c0_6, %c0_7] : memref<48x128xbf16, #tpu.memory_space<vmem>>, vector<48x128xbf16>
    tpu.vector_store %arg4[%c0_6, %c0_7], %8 {strides = array<i32>} : memref<48x128xbf16, #tpu.memory_space<vmem>>, vector<48x128xbf16>,
    return
  }
  func.func @transform_0(%arg0: i32) -> (i32, i32) {
    %c0_i32 = arith.constant 0 : i32
    %c0_i32_0 = arith.constant 0 : i32
    return %arg0, %c0_i32 : i32, i32
  }
  func.func @transform_1(%arg0: i32) -> (i32, i32) {
    %c0_i32 = arith.constant 0 : i32
    %c0_i32_0 = arith.constant 0 : i32
    %c0_i32_1 = arith.constant 0 : i32
    return %c0_i32, %c0_i32_0 : i32, i32
  }
  func.func @transform_2(%arg0: i32) -> (i32, i32) {
    %c0_i32 = arith.constant 0 : i32
    %c0_i32_0 = arith.constant 0 : i32
    %c0_i32_1 = arith.constant 0 : i32
    return %c0_i32, %c0_i32_0 : i32, i32
  }
  func.func @transform_3(%arg0: i32) -> (i32, i32) {
    %c0_i32 = arith.constant 0 : i32
    %c0_i32_0 = arith.constant 0 : i32
    return %arg0, %c0_i32 : i32, i32
  }
}

module attributes {stable_mosaic.version = 11 : i64} {
  func.func @_head_kernel(%arg0: i32, %arg1: memref<16x1152xbf16, #tpu.memory_space<vmem>>, %arg2: memref<1152x512xbf16, #tpu.memory_space<vmem>>, %arg3: memref<1x512xf32, #tpu.memory_space<vmem>>, %arg4: memref<512x128xbf16, #tpu.memory_space<vmem>>, %arg5: memref<1x128xf32, #tpu.memory_space<vmem>>, %arg6: memref<16x128xf32, #tpu.memory_space<vmem>>) attributes {dimension_semantics = [#tpu.dimension_semantics<arbitrary>], iteration_bounds = array<i64: 1>, scalar_prefetch = 0 : i64, scratch_operands = 0 : i64, tpu.core_type = #tpu.core_type<tc>, window_params = [{pipeline_mode = #tpu.pipeline_mode<synchronous>, transform_indices = @transform_0, window_bounds = array<i64: 16, 1152>}, {pipeline_mode = #tpu.pipeline_mode<synchronous>, transform_indices = @transform_1, window_bounds = array<i64: 1152, 512>}, {pipeline_mode = #tpu.pipeline_mode<synchronous>, transform_indices = @transform_2, window_bounds = array<i64: 1, 512>}, {pipeline_mode = #tpu.pipeline_mode<synchronous>, transform_indices = @transform_3, window_bounds = array<i64: 512, 128>}, {pipeline_mode = #tpu.pipeline_mode<synchronous>, transform_indices = @transform_4, window_bounds = array<i64: 1, 128>}, {pipeline_mode = #tpu.pipeline_mode<synchronous>, transform_indices = @transform_5, window_bounds = array<i64: 16, 128>}]} {
    %c0 = arith.constant 0 : index
    %c0_0 = arith.constant 0 : index
    %0 = vector.load %arg1[%c0, %c0_0] : memref<16x1152xbf16, #tpu.memory_space<vmem>>, vector<16x1152xbf16>
    %c0_1 = arith.constant 0 : index
    %c0_2 = arith.constant 0 : index
    %1 = vector.load %arg2[%c0_1, %c0_2] : memref<1152x512xbf16, #tpu.memory_space<vmem>>, vector<1152x512xbf16>
    %cst = arith.constant dense<0.000000e+00> : vector<16x512xf32>
    %2 = tpu.matmul %0, %1, %cst {dimension_numbers = #tpu.dot_dimension_numbers<[1], [0], [0], [1], [0, 0, 1, 1], [], []>} : vector<16x1152xbf16>, vector<1152x512xbf16>, vector<16x512xf32> -> vector<16x512xf32>
    %c0_3 = arith.constant 0 : index
    %c0_4 = arith.constant 0 : index
    %3 = vector.load %arg3[%c0_3, %c0_4] : memref<1x512xf32, #tpu.memory_space<vmem>>, vector<1x512xf32>
    %4 = vector.broadcast %3 : vector<1x512xf32> to vector<16x512xf32>
    %5 = arith.addf %2, %4 : vector<16x512xf32>
    %6 = arith.truncf %5 : vector<16x512xf32> to vector<16x512xbf16>
    %c0_5 = arith.constant 0 : index
    %c0_6 = arith.constant 0 : index
    %7 = vector.load %arg4[%c0_5, %c0_6] : memref<512x128xbf16, #tpu.memory_space<vmem>>, vector<512x128xbf16>
    %cst_7 = arith.constant dense<0.000000e+00> : vector<16x128xf32>
    %8 = tpu.matmul %6, %7, %cst_7 {dimension_numbers = #tpu.dot_dimension_numbers<[1], [0], [0], [1], [0, 0, 1, 1], [], []>} : vector<16x512xbf16>, vector<512x128xbf16>, vector<16x128xf32> -> vector<16x128xf32>
    %c0_8 = arith.constant 0 : index
    %c0_9 = arith.constant 0 : index
    %9 = vector.load %arg5[%c0_8, %c0_9] : memref<1x128xf32, #tpu.memory_space<vmem>>, vector<1x128xf32>
    %10 = vector.broadcast %9 : vector<1x128xf32> to vector<16x128xf32>
    %11 = arith.addf %8, %10 : vector<16x128xf32>
    %c0_10 = arith.constant 0 : index
    %c0_11 = arith.constant 0 : index
    %12 = vector.load %arg6[%c0_10, %c0_11] : memref<16x128xf32, #tpu.memory_space<vmem>>, vector<16x128xf32>
    tpu.vector_store %arg6[%c0_10, %c0_11], %11 {strides = array<i32>} : memref<16x128xf32, #tpu.memory_space<vmem>>, vector<16x128xf32>,
    return
  }
  func.func @transform_0(%arg0: i32) -> (i32, i32) {
    %c0_i32 = arith.constant 0 : i32
    %c0_i32_0 = arith.constant 0 : i32
    %c0_i32_1 = arith.constant 0 : i32
    return %c0_i32, %c0_i32_0 : i32, i32
  }
  func.func @transform_1(%arg0: i32) -> (i32, i32) {
    %c0_i32 = arith.constant 0 : i32
    %c0_i32_0 = arith.constant 0 : i32
    %c0_i32_1 = arith.constant 0 : i32
    return %c0_i32, %c0_i32_0 : i32, i32
  }
  func.func @transform_2(%arg0: i32) -> (i32, i32) {
    %c0_i32 = arith.constant 0 : i32
    %c0_i32_0 = arith.constant 0 : i32
    %c0_i32_1 = arith.constant 0 : i32
    return %c0_i32, %c0_i32_0 : i32, i32
  }
  func.func @transform_3(%arg0: i32) -> (i32, i32) {
    %c0_i32 = arith.constant 0 : i32
    %c0_i32_0 = arith.constant 0 : i32
    %c0_i32_1 = arith.constant 0 : i32
    return %c0_i32, %c0_i32_0 : i32, i32
  }
  func.func @transform_4(%arg0: i32) -> (i32, i32) {
    %c0_i32 = arith.constant 0 : i32
    %c0_i32_0 = arith.constant 0 : i32
    %c0_i32_1 = arith.constant 0 : i32
    return %c0_i32, %c0_i32_0 : i32, i32
  }
  func.func @transform_5(%arg0: i32) -> (i32, i32) {
    %c0_i32 = arith.constant 0 : i32
    %c0_i32_0 = arith.constant 0 : i32
    %c0_i32_1 = arith.constant 0 : i32
    return %c0_i32, %c0_i32_0 : i32, i32
  }
}

</mosaic_0001>

<bundles_post_ra>
// kernel: ppo_forward.5
= control target key start
LH: loop header
LB: loop body
LE: loop exit
PB: predicated region body
PF: predicated region fallthrough
CT: control target
= control target key end

     0   :  { %s2829_s12 = smov 0   ;;  %s3281_s0 = inlined_call_operand.vmem [shape: bf16[4608,384], index: 0, kind: input, shape index: {}]   ;;  %s3282_s1 = inlined_call_operand.vmem [shape: bf16[384,128], index: 1, kind: input, shape index: {}]   ;;  %s3283_s2 = inlined_call_operand.vmem [shape: f32[1,128], index: 2, kind: input, shape index: {}]   ;;  %s3284_s3 = inlined_call_operand.vmem [shape: bf16[4608,128], index: 3, kind: output, shape index: {}]  }
   0x1 LB: > { %s2035_s13 = sadd.s32 4294967295, %s2806_s12   ;;  %p2039_p0 = scmp.ge.s32.totalorder %s2806_s12, 1  ;;  %s2806_s12 = sphi %s2829_s12, %s13_s12  }
   0x2   : > { %p139_p1 = scmp.lt.s32.totalorder %s2806_s12, 10 }
   0x4   : > { %p140_p2 = pnand %p2039_p0, %p139_p1 }
   0x5   : > { %v2648_v0 = vld [vmem:[%s3282_s1] sm:$0xff] (!%p140_p2)   ;;  %v2808_v1 = vmov (!%p140_p2), 0   ;;  %s2040_s16 = sshll.u32 (!%p140_p2), %s2035_s13, 6  ;;  %v2649_v2 = vld [vmem:[%s3282_s1 + $0x8] sm:$0xff] (!%p140_p2)   ;;  %v2650_v3 = vld [vmem:[%s3282_s1 + $0x10] sm:$0xff] (!%p140_p2)  }
   0x6   : > { %143 = sbr.rel (%p140_p2) target bundleno = 477 (0x1dd), region = 32  ;;  %1017 = vmatprep.subr.bf16.mxu0 (!%p140_p2), %v2808_v1  ;;  %2606 = vmatprep.subr.bf16.mxu1 (!%p140_p2), %v2808_v1  ;;  %p165_p3 = scmp.lt.s32.totalorder (!%p140_p2), %s2040_s16, 575  ;;  %v2651_v4 = vld [vmem:[%s3282_s1 + $0x18] sm:$0xff] (!%p140_p2)   ;;  %v2652_v5 = vld [vmem:[%s3282_s1 + $0x20] sm:$0xff] (!%p140_p2)   ;;  %v2653_v7 = vld [vmem:[%s3282_s1 + $0x28] sm:$0xff] (!%p140_p2)  }
   0x7   : > { %1018 = vmatpush1.bf16.msra.mxu0 (!%p140_p2), %v2648_v0  ;;  %2622 = vmatpush1.bf16.msra.mxu1 (!%p140_p2), %v2648_v0  ;;  %v2654_v9 = vld [vmem:[%s3282_s1 + $0x30] sm:$0xff] (!%p140_p2)   ;;  %v2655_v10 = vld [vmem:[%s3282_s1 + $0x38] sm:$0xff] (!%p140_p2)   ;;  %v2656_v11 = vld [vmem:[%s3282_s1 + $0x40] sm:$0xff] (!%p140_p2)  }
   0x8   : > { %1019 = vmatprep.subr.bf16.mxu0 (!%p140_p2), %v2808_v1  ;;  %2607 = vmatprep.subr.bf16.mxu1 (!%p140_p2), %v2808_v1  ;;  %v2657_v12 = vld [vmem:[%s3282_s1 + $0x48] sm:$0xff] (!%p140_p2)   ;;  %v2658_v13 = vld [vmem:[%s3282_s1 + $0x50] sm:$0xff] (!%p140_p2)   ;;  %v2659_v14 = vld [vmem:[%s3282_s1 + $0x58] sm:$0xff] (!%p140_p2)  }
   0x9   : > { %v2660_v15 = vld [vmem:[%s3282_s1 + $0x60] sm:$0xff] (!%p140_p2)   ;;  %v2661_v16 = vld [vmem:[%s3282_s1 + $0x68] sm:$0xff] (!%p140_p2)   ;;  %v2662_v17 = vld [vmem:[%s3282_s1 + $0x70] sm:$0xff] (!%p140_p2)  }
   0xa   : > { %v2663_v18 = vld [vmem:[%s3282_s1 + $0x78] sm:$0xff] (!%p140_p2)   ;;  %v2670_v19 = vld [vmem:[%s3282_s1 + $0x80] sm:$0xff] (!%p140_p2)   ;;  %v2677_v24 = vld [vmem:[%s3282_s1 + $0x88] sm:$0xff] (!%p140_p2)  }
   0xb   : > { %1020 = vmatpush1.bf16.msra.mxu0 (!%p140_p2), %v2649_v2  ;;  %2623 = vmatpush1.bf16.msra.mxu1 (!%p140_p2), %v2649_v2  ;;  %v2684_v25 = vld [vmem:[%s3282_s1 + $0x90] sm:$0xff] (!%p140_p2)   ;;  %v2691_v30 = vld [vmem:[%s3282_s1 + $0x98] sm:$0xff] (!%p140_p2)   ;;  %v2698_v32 = vld [vmem:[%s3282_s1 + $0xa0] sm:$0xff] (!%p140_p2)  }
   0xc   : > { %1021 = vmatprep.subr.bf16.mxu0 (!%p140_p2), %v2808_v1  ;;  %2608 = vmatprep.subr.bf16.mxu1 (!%p140_p2), %v2808_v1  ;;  %v2705_v36 = vld [vmem:[%s3282_s1 + $0xa8] sm:$0xff] (!%p140_p2)   ;;  %v2712_v41 = vld [vmem:[%s3282_s1 + $0xb0] sm:$0xff] (!%p140_p2)   ;;  %v2719_v42 = vld [vmem:[%s3282_s1 + $0xb8] sm:$0xff] (!%p140_p2)  }
   0xd   : > { %s3286_s16 = smov (!%p165_p3, %s2040_s16), 575 }
   0xe   : > { %s2638_s23 = smul.u32 12, %s3286_s16  ;;  %s2043_s19 = sshll.u32 %s3286_s16, 2 }
   0xf   : > { %1022 = vmatpush1.bf16.msra.mxu0 %v2650_v3  ;;  %2624 = vmatpush1.bf16.msra.mxu1 %v2650_v3  ;;  %s3124_s22 = scalar_lea.vmem %s3284_s3, %s2043_s19 }
  0x10   : > { %1023 = vmatprep.subr.bf16.mxu0 %v2808_v1  ;;  %2609 = vmatprep.subr.bf16.mxu1 %v2808_v1  ;;  %s2866_s28 = scalar_lea.vmem %s3281_s0, %s2638_s23 }
  0x11   : > { %v2666_v6 = vld [vmem:[%s2866_s28 + $0x4] ss:$12 sps:$4 sm:$0xff]   ;;  %v2664_v20 = vld [vmem:[%s2866_s28] ss:$12 sps:$4 sm:$0xff]   ;;  %v2671_v22 = vld [vmem:[%s2866_s28 + $0x1c] ss:$12 sps:$4 sm:$0xff]  }
  0x12   : > { %v2669_v8 = vld [vmem:[%s2866_s28 + $0x244] ss:$12 sps:$4 sm:$0xff]   ;;  %1049 = vmatprep.mubr.bf16.mxu0 %v2666_v6  ;;  %v2667_v21 = vld [vmem:[%s2866_s28 + $0x240] ss:$12 sps:$4 sm:$0xff]   ;;  %v2673_v23 = vld [vmem:[%s2866_s28 + $0x25c] ss:$12 sps:$4 sm:$0xff]  }
  0x13   : > { %1024 = vmatpush1.bf16.msra.mxu0 %v2651_v4  ;;  %2625 = vmatpush1.bf16.msra.mxu1 %v2651_v4  ;;  %v2675_v26 = vld [vmem:[%s2866_s28 + $0x18] ss:$12 sps:$4 sm:$0xff]   ;;  %v2678_v28 = vld [vmem:[%s2866_s28 + $0x34] ss:$12 sps:$4 sm:$0xff]   ;;  %v2682_v31 = vld [vmem:[%s2866_s28 + $0x30] ss:$12 sps:$4 sm:$0xff]  }
  0x14   : > { %1025 = vmatprep.subr.bf16.mxu0 %v2808_v1  ;;  %2610 = vmatprep.subr.bf16.mxu1 %v2808_v1  ;;  %v2676_v27 = vld [vmem:[%s2866_s28 + $0x258] ss:$12 sps:$4 sm:$0xff]   ;;  %v2680_v29 = vld [vmem:[%s2866_s28 + $0x274] ss:$12 sps:$4 sm:$0xff]   ;;  %v2683_v33 = vld [vmem:[%s2866_s28 + $0x270] ss:$12 sps:$4 sm:$0xff]  }
  0x15   : > { %1241 = vmatprep.mubr.bf16.mxu1 %v2669_v8  ;;  %v2685_v34 = vld [vmem:[%s2866_s28 + $0x4c] ss:$12 sps:$4 sm:$0xff]   ;;  %v2689_v37 = vld [vmem:[%s2866_s28 + $0x48] ss:$12 sps:$4 sm:$0xff]   ;;  %v2692_v39 = vld [vmem:[%s2866_s28 + $0x64] ss:$12 sps:$4 sm:$0xff]  }
  0x16   : > { %v2687_v35 = vld [vmem:[%s2866_s28 + $0x28c] ss:$12 sps:$4 sm:$0xff]   ;;  %v2690_v38 = vld [vmem:[%s2866_s28 + $0x288] ss:$12 sps:$4 sm:$0xff]   ;;  %v2694_v40 = vld [vmem:[%s2866_s28 + $0x2a4] ss:$12 sps:$4 sm:$0xff]  }
  0x17   : > { %1026 = vmatpush1.bf16.msra.mxu0 %v2652_v5  ;;  %2626 = vmatpush1.bf16.msra.mxu1 %v2652_v5  ;;  %v2696_v43 = vld [vmem:[%s2866_s28 + $0x60] ss:$12 sps:$4 sm:$0xff]   ;;  %v2699_v45 = vld [vmem:[%s2866_s28 + $0x7c] ss:$12 sps:$4 sm:$0xff]   ;;  %v2703_v47 = vld [vmem:[%s2866_s28 + $0x78] ss:$12 sps:$4 sm:$0xff]  }
  0x18   : > { %1027 = vmatprep.subr.bf16.mxu0 %v2808_v1  ;;  %2611 = vmatprep.subr.bf16.mxu1 %v2808_v1  ;;  %v2697_v44 = vld [vmem:[%s2866_s28 + $0x2a0] ss:$12 sps:$4 sm:$0xff]   ;;  %v2701_v46 = vld [vmem:[%s2866_s28 + $0x2bc] ss:$12 sps:$4 sm:$0xff]   ;;  %v2704_v48 = vld [vmem:[%s2866_s28 + $0x2b8] ss:$12 sps:$4 sm:$0xff]  }
  0x19   : > { %v2706_v49 = vld [vmem:[%s2866_s28 + $0x94] ss:$12 sps:$4 sm:$0xff]   ;;  %v2710_v51 = vld [vmem:[%s2866_s28 + $0x90] ss:$12 sps:$4 sm:$0xff]   ;;  %v2713_v53 = vld [vmem:[%s2866_s28 + $0xac] ss:$12 sps:$4 sm:$0xff]  }
  0x1a   : > { %v2708_v50 = vld [vmem:[%s2866_s28 + $0x2d4] ss:$12 sps:$4 sm:$0xff]   ;;  %v2711_v52 = vld [vmem:[%s2866_s28 + $0x2d0] ss:$12 sps:$4 sm:$0xff]   ;;  %v2715_v54 = vld [vmem:[%s2866_s28 + $0x2ec] ss:$12 sps:$4 sm:$0xff]  }
  0x1b   : > { %1028 = vmatpush1.bf16.msra.mxu0 %v2653_v7  ;;  %2627 = vmatpush1.bf16.msra.mxu1 %v2653_v7  ;;  %v2717_v55 = vld [vmem:[%s2866_s28 + $0xa8] ss:$12 sps:$4 sm:$0xff]   ;;  %v2720_v57 = vld [vmem:[%s2866_s28 + $0xc4] ss:$12 sps:$4 sm:$0xff]   ;;  %v2723_v59 = vld [vmem:[%s2866_s28 + $0xc0] ss:$12 sps:$4 sm:$0xff]  }
  0x1c   : > { %1029 = vmatprep.subr.bf16.mxu0 %v2808_v1  ;;  %2612 = vmatprep.subr.bf16.mxu1 %v2808_v1  ;;  %v2718_v56 = vld [vmem:[%s2866_s28 + $0x2e8] ss:$12 sps:$4 sm:$0xff]   ;;  %v2724_v60 = vld [vmem:[%s2866_s28 + $0x20] ss:$12 sps:$4 sm:$0xff]   ;;  %v2727_v62 = vld [vmem:[%s2866_s28 + $0x38] ss:$12 sps:$4 sm:$0xff]  }
  0x1d   : > { %v2722_v58 = vld [vmem:[%s2866_s28 + $0x8] ss:$12 sps:$4 sm:$0xff]   ;;  %v2728_v63 = vld [vmem:[%s2866_s28 + $0xd8] ss:$12 sps:$4 sm:$0xff]   ;;  %v2729_v0 = vld [vmem:[%s2866_s28 + $0x50] ss:$12 sps:$4 sm:$0xff]  }
  0x1e   : > { %v2725_v61 = vld [vmem:[%s2866_s28 + $0xdc] ss:$12 sps:$4 sm:$0xff]   ;;  %v2734_v4 = vld [vmem:[%s2866_s28 + $0x80] ss:$12 sps:$4 sm:$0xff]   ;;  %v2737_v6 = vld [vmem:[%s2866_s28 + $0x98] ss:$12 sps:$4 sm:$0xff]  }
  0x1f   : > { %1030 = vmatpush1.bf16.msra.mxu0 %v2654_v9  ;;  %2628 = vmatpush1.bf16.msra.mxu1 %v2654_v9  ;;  %v2732_v2 = vld [vmem:[%s2866_s28 + $0x68] ss:$12 sps:$4 sm:$0xff]   ;;  %v2733_v3 = vld [vmem:[%s2866_s28 + $0xf0] ss:$12 sps:$4 sm:$0xff]   ;;  %v2735_v5 = vld [vmem:[%s2866_s28 + $0x10c] ss:$12 sps:$4 sm:$0xff]  }
  0x20   : > { %1031 = vmatprep.subr.bf16.mxu0 %v2808_v1  ;;  %2613 = vmatprep.subr.bf16.mxu1 %v2808_v1  ;;  %v2738_v7 = vld [vmem:[%s2866_s28 + $0x108] ss:$12 sps:$4 sm:$0xff]   ;;  %v2739_v8 = vld [vmem:[%s2866_s28 + $0xb0] ss:$12 sps:$4 sm:$0xff]  }
  0x21   : > { %v2740_v9 = vld [vmem:[%s2866_s28 + $0x124] ss:$12 sps:$4 sm:$0xff]  }
  0x23   : > { %1032 = vmatpush1.bf16.msra.mxu0 %v2655_v10  ;;  %2629 = vmatpush1.bf16.msra.mxu1 %v2655_v10  ;;  %v2742_v10 = vld [vmem:[%s2866_s28 + $0xc8] ss:$12 sps:$4 sm:$0xff]  }
  0x24   : > { %1033 = vmatprep.subr.bf16.mxu0 %v2808_v1  ;;  %2614 = vmatprep.subr.bf16.mxu1 %v2808_v1 }
  0x27   : > { %1034 = vmatpush1.bf16.msra.mxu0 %v2656_v11  ;;  %2630 = vmatpush1.bf16.msra.mxu1 %v2656_v11  ;;  %v2743_v11 = vld [vmem:[%s2866_s28 + $0x120] ss:$12 sps:$4 sm:$0xff]  }
  0x28   : > { %1035 = vmatprep.subr.bf16.mxu0 %v2808_v1  ;;  %2615 = vmatprep.subr.bf16.mxu1 %v2808_v1 }
  0x2b   : > { %1036 = vmatpush1.bf16.msra.mxu0 %v2657_v12  ;;  %2631 = vmatpush1.bf16.msra.mxu1 %v2657_v12  ;;  %v2744_v12 = vld [vmem:[%s2866_s28 + $0xe0] ss:$12 sps:$4 sm:$0xff]  }
  0x2c   : > { %1037 = vmatprep.subr.bf16.mxu0 %v2808_v1  ;;  %2616 = vmatprep.subr.bf16.mxu1 %v2808_v1 }
  0x2f   : > { %1038 = vmatpush1.bf16.msra.mxu0 %v2658_v13  ;;  %2632 = vmatpush1.bf16.msra.mxu1 %v2658_v13  ;;  %v2745_v13 = vld [vmem:[%s2866_s28 + $0x13c] ss:$12 sps:$4 sm:$0xff]  }
  0x30   : > { %1039 = vmatprep.subr.bf16.mxu0 %v2808_v1  ;;  %2617 = vmatprep.subr.bf16.mxu1 %v2808_v1 }
  0x33   : > { %1040 = vmatpush1.bf16.msra.mxu0 %v2659_v14  ;;  %2633 = vmatpush1.bf16.msra.mxu1 %v2659_v14  ;;  %v2747_v14 = vld [vmem:[%s2866_s28 + $0xf8] ss:$12 sps:$4 sm:$0xff]  }
  0x34   : > { %1041 = vmatprep.subr.bf16.mxu0 %v2808_v1  ;;  %2618 = vmatprep.subr.bf16.mxu1 %v2808_v1 }
  0x37   : > { %1042 = vmatpush1.bf16.msra.mxu0 %v2660_v15  ;;  %2634 = vmatpush1.bf16.msra.mxu1 %v2660_v15  ;;  %v2748_v15 = vld [vmem:[%s2866_s28 + $0x138] ss:$12 sps:$4 sm:$0xff]  }
  0x38   : > { %1043 = vmatprep.subr.bf16.mxu0 %v2808_v1  ;;  %2619 = vmatprep.subr.bf16.mxu1 %v2808_v1 }
  0x3b   : > { %1044 = vmatpush1.bf16.msra.mxu0 %v2661_v16  ;;  %2635 = vmatpush1.bf16.msra.mxu1 %v2661_v16  ;;  %v2749_v16 = vld [vmem:[%s2866_s28 + $0x110] ss:$12 sps:$4 sm:$0xff]  }
  0x3c   : > { %1045 = vmatprep.subr.bf16.mxu0 %v2808_v1  ;;  %2620 = vmatprep.subr.bf16.mxu1 %v2808_v1 }
  0x3f   : > { %1046 = vmatpush1.bf16.msra.mxu0 %v2662_v17  ;;  %2636 = vmatpush1.bf16.msra.mxu1 %v2662_v17  ;;  %v2750_v17 = vld [vmem:[%s2866_s28 + $0x154] ss:$12 sps:$4 sm:$0xff]  }
  0x40   : > { %1047 = vmatprep.subr.bf16.mxu0 %v2808_v1  ;;  %2621 = vmatprep.subr.bf16.mxu1 %v2808_v1  ;;  %v2730_v1 = vld [vmem:[%s2866_s28 + $0xf4] ss:$12 sps:$4 sm:$0xff]  }
  0x43   : > { %1048 = vmatpush1.bf16.msra.mxu0 %v2663_v18  ;;  %2637 = vmatpush1.bf16.msra.mxu1 %v2663_v18  ;;  %v2752_v18 = vld [vmem:[%s2866_s28 + $0x128] ss:$12 sps:$4 sm:$0xff]  }
  0x44   : > { %2526 = vmatprep.subr.bf16.mxu1 %v2670_v19 }
  0x46   : > { %1050 = vmatmul.mubr.bf16.vlgmr.msra.gmra.mrb[0].mxu0 %v2664_v20  ;;  %1242 = vmatmul.mubr.bf16.vlgmr.msra.gmra.mrb[0].mxu1 %v2667_v21  ;;  %v2754_v20 = vld [vmem:[%s2866_s28 + $0x140] ss:$12 sps:$4 sm:$0xff]  }
  0x47   : > { %2527 = vmatpush3.bf16.msra.mxu1 %v2670_v19  ;;  %1057 = vmatprep.mubr.bf16.mxu0 %v2671_v22  ;;  %v2753_v19 = vld [vmem:[%s2866_s28 + $0x150] ss:$12 sps:$4 sm:$0xff]   ;;  %v2755_v21 = vld [vmem:[%s2866_s28 + $0x16c] ss:$12 sps:$4 sm:$0xff]  }
  0x48   : > { %1249 = vmatprep.mubr.bf16.mxu1 %v2673_v23  ;;  %2528 = vmatprep.subr.bf16.mxu1 %v2677_v24  ;;  %v2757_v22 = vld [vmem:[%s2866_s28 + $0x158] ss:$12 sps:$4 sm:$0xff]   ;;  %v2758_v23 = vld [vmem:[%s2866_s28 + $0x168] ss:$12 sps:$4 sm:$0xff]  }
  0x4b   : > { %2529 = vmatpush3.bf16.msra.mxu1 %v2677_v24  ;;  %v2759_v24 = vld [vmem:[%s2866_s28 + $0x170] ss:$12 sps:$4 sm:$0xff]  }
  0x4c   : > { %2530 = vmatprep.subr.bf16.mxu1 %v2684_v25 }
  0x4e   : > { %1058 = vmatmul.mubr.bf16.gmra.mrb[4].mxu0 %v2675_v26  ;;  %1250 = vmatmul.mubr.bf16.gmra.mrb[4].mxu1 %v2676_v27  ;;  %v2762_v26 = vld [vmem:[%s2866_s28 + $0x188] ss:$12 sps:$4 sm:$0xff]   ;;  %v2763_v27 = vld [vmem:[%s2866_s28 + $0x180] ss:$12 sps:$4 sm:$0xff]  }
  0x4f   : > { %1065 = vmatprep.mubr.bf16.mxu0 %v2678_v28  ;;  %1257 = vmatprep.mubr.bf16.mxu1 %v2680_v29  ;;  %v2764_v28 = vld [vmem:[%s2866_s28 + $0x1a0] ss:$12 sps:$4 sm:$0xff]   ;;  %v2765_v29 = vld [vmem:[%s2866_s28 + $0x19c] ss:$12 sps:$4 sm:$0xff]  }
  0x50   : > { %2531 = vmatpush3.bf16.msra.mxu1 %v2684_v25  ;;  %v2760_v25 = vld [vmem:[%s2866_s28 + $0x184] ss:$12 sps:$4 sm:$0xff]  }
  0x51   : > { %2532 = vmatprep.subr.bf16.mxu1 %v2691_v30 }
  0x54   : > { %2533 = vmatpush3.bf16.msra.mxu1 %v2691_v30  ;;  %v2767_v30 = vld [vmem:[%s2866_s28 + $0x1b8] ss:$12 sps:$4 sm:$0xff]  }
  0x55   : > { %2534 = vmatprep.subr.bf16.mxu1 %v2698_v32 }
  0x56   : > { %1066 = vmatmul.mubr.bf16.gmra.mrb[8].mxu0 %v2682_v31  ;;  %1258 = vmatmul.mubr.bf16.gmra.mrb[8].mxu1 %v2683_v33  ;;  %v2768_v31 = vld [vmem:[%s2866_s28 + $0x198] ss:$12 sps:$4 sm:$0xff]   ;;  %v2770_v33 = vld [vmem:[%s2866_s28 + $0x1b4] ss:$12 sps:$4 sm:$0xff]  }
  0x57   : > { %1073 = vmatprep.mubr.bf16.mxu0 %v2685_v34  ;;  %1265 = vmatprep.mubr.bf16.mxu1 %v2687_v35  ;;  %v2772_v34 = vld [vmem:[%s2866_s28 + $0x1e8] ss:$12 sps:$4 sm:$0xff]   ;;  %v2773_v35 = vld [vmem:[%s2866_s28 + $0x1b0] ss:$12 sps:$4 sm:$0xff]  }
  0x58   : > { %2535 = vmatpush3.bf16.msra.mxu1 %v2698_v32  ;;  %v2769_v32 = vld [vmem:[%s2866_s28 + $0x1d0] ss:$12 sps:$4 sm:$0xff]  }
  0x59   : > { %2536 = vmatprep.subr.bf16.mxu1 %v2705_v36 }
  0x5c   : > { %2537 = vmatpush3.bf16.msra.mxu1 %v2705_v36  ;;  %v2774_v36 = vld [vmem:[%s2866_s28 + $0x200] ss:$12 sps:$4 sm:$0xff]  }
  0x5d   : > { %2538 = vmatprep.subr.bf16.mxu1 %v2712_v41 }
  0x5e   : > { %1074 = vmatmul.mubr.bf16.gmra.mrb[12].mxu0 %v2689_v37  ;;  %1266 = vmatmul.mubr.bf16.gmra.mrb[12].mxu1 %v2690_v38  ;;  %v2775_v37 = vld [vmem:[%s2866_s28 + $0x1cc] ss:$12 sps:$4 sm:$0xff]  }
  0x5f   : > { %1081 = vmatprep.mubr.bf16.mxu0 %v2692_v39  ;;  %1273 = vmatprep.mubr.bf16.mxu1 %v2694_v40  ;;  %v2777_v38 = vld [vmem:[%s2866_s28 + $0x218] ss:$12 sps:$4 sm:$0xff]   ;;  %v2778_v39 = vld [vmem:[%s2866_s28 + $0x1c8] ss:$12 sps:$4 sm:$0xff]   ;;  %v2779_v40 = vld [vmem:[%s2866_s28 + $0x230] ss:$12 sps:$4 sm:$0xff]  }
  0x60   : > { %2539 = vmatpush3.bf16.msra.mxu1 %v2712_v41  ;;  %v2780_v41 = vld [vmem:[%s2866_s28 + $0x1e4] ss:$12 sps:$4 sm:$0xff]  }
  0x61   : > { %2540 = vmatprep.subr.bf16.mxu1 %v2719_v42 }
  0x64   : > { %2541 = vmatpush3.bf16.msra.mxu1 %v2719_v42  ;;  %v2782_v42 = vld [vmem:[%s2866_s28 + $0x248] ss:$12 sps:$4 sm:$0xff]  }
  0x66   : > { %1082 = vmatmul.mubr.bf16.gmra.mrb[16].mxu0 %v2696_v43  ;;  %1274 = vmatmul.mubr.bf16.gmra.mrb[16].mxu1 %v2697_v44  ;;  %v2783_v43 = vld [vmem:[%s2866_s28 + $0x1e0] ss:$12 sps:$4 sm:$0xff]  }
  0x67   : > { %1089 = vmatprep.mubr.bf16.mxu0 %v2699_v45  ;;  %1281 = vmatprep.mubr.bf16.mxu1 %v2701_v46  ;;  %v2784_v44 = vld [vmem:[%s2866_s28 + $0x260] ss:$12 sps:$4 sm:$0xff]   ;;  %v2785_v45 = vld [vmem:[%s2866_s28 + $0x1fc] ss:$12 sps:$4 sm:$0xff]   ;;  %v2787_v46 = vld [vmem:[%s2866_s28 + $0x278] ss:$12 sps:$4 sm:$0xff]  }
  0x6e   : > { %1090 = vmatmul.mubr.bf16.gmra.mrb[20].mxu0 %v2703_v47  ;;  %1282 = vmatmul.mubr.bf16.gmra.mrb[20].mxu1 %v2704_v48  ;;  %v2788_v47 = vld [vmem:[%s2866_s28 + $0x1f8] ss:$12 sps:$4 sm:$0xff]   ;;  %v2789_v48 = vld [vmem:[%s2866_s28 + $0x290] ss:$12 sps:$4 sm:$0xff]  }
  0x6f   : > { %1097 = vmatprep.mubr.bf16.mxu0 %v2706_v49  ;;  %1289 = vmatprep.mubr.bf16.mxu1 %v2708_v50  ;;  %v2790_v49 = vld [vmem:[%s2866_s28 + $0x214] ss:$12 sps:$4 sm:$0xff]  }
  0x70   : > { %v2792_v50 = vld [vmem:[%s2866_s28 + $0x2a8] ss:$12 sps:$4 sm:$0xff]  }
  0x76   : > { %1098 = vmatmul.mubr.bf16.gmra.mrb[24].mxu0 %v2710_v51  ;;  %1290 = vmatmul.mubr.bf16.gmra.mrb[24].mxu1 %v2711_v52  ;;  %v2793_v51 = vld [vmem:[%s2866_s28 + $0x210] ss:$12 sps:$4 sm:$0xff]   ;;  %v2794_v52 = vld [vmem:[%s2866_s28 + $0x2c0] ss:$12 sps:$4 sm:$0xff]  }
  0x77   : > { %1105 = vmatprep.mubr.bf16.mxu0 %v2713_v53  ;;  %1297 = vmatprep.mubr.bf16.mxu1 %v2715_v54  ;;  %v2795_v53 = vld [vmem:[%s2866_s28 + $0x22c] ss:$12 sps:$4 sm:$0xff]  }
  0x78   : > { %v2797_v54 = vld [vmem:[%s2866_s28 + $0x2d8] ss:$12 sps:$4 sm:$0xff]  }
  0x7e   : > { %1106 = vmatmul.mubr.bf16.gmra.mrb[28].mxu0 %v2717_v55  ;;  %1298 = vmatmul.mubr.bf16.gmra.mrb[28].mxu1 %v2718_v56  ;;  %v2798_v55 = vld [vmem:[%s2866_s28 + $0x228] ss:$12 sps:$4 sm:$0xff]   ;;  %v2799_v56 = vld [vmem:[%s2866_s28 + $0x2f0] ss:$12 sps:$4 sm:$0xff]  }
  0x7f   : > { %1113 = vmatprep.mubr.bf16.mxu0 %v2720_v57  ;;  %2542 = vmatprep.mubr.bf16.mxu1 %v2722_v58 }
  0x86   : > { %1114 = vmatmul.mubr.bf16.gmra.mrb[32].mxu0 %v2723_v59  ;;  %2543 = vmatmul.mubr.bf16.vlgmr.msra.gmra.mrb[32].mxu1 %v2724_v60 }
  0x87   : > { %1121 = vmatprep.mubr.bf16.mxu0 %v2725_v61  ;;  %2546 = vmatprep.mubr.bf16.mxu1 %v2727_v62 }
  0x8e   : > { %1122 = vmatmul.mubr.bf16.gmra.mrb[36].mxu0 %v2728_v63  ;;  %2547 = vmatmul.mubr.bf16.gmra.mrb[36].mxu1 %v2729_v0 }
  0x8f   : > { %1129 = vmatprep.mubr.bf16.mxu0 %v2730_v1  ;;  %2550 = vmatprep.mubr.bf16.mxu1 %v2732_v2 }
  0x96   : > { %1130 = vmatmul.mubr.bf16.gmra.mrb[40].mxu0 %v2733_v3  ;;  %2551 = vmatmul.mubr.bf16.gmra.mrb[40].mxu1 %v2734_v4 }
  0x97   : > { %1137 = vmatprep.mubr.bf16.mxu0 %v2735_v5  ;;  %2554 = vmatprep.mubr.bf16.mxu1 %v2737_v6 }
  0x9e   : > { %1138 = vmatmul.mubr.bf16.gmra.mrb[44].mxu0 %v2738_v7  ;;  %2555 = vmatmul.mubr.bf16.gmra.mrb[44].mxu1 %v2739_v8 }
  0x9f   : > { %1145 = vmatprep.mubr.bf16.mxu0 %v2740_v9  ;;  %2558 = vmatprep.mubr.bf16.mxu1 %v2742_v10 }
  0xa6   : > { %1146 = vmatmul.mubr.bf16.gmra.mrb[48].mxu0 %v2743_v11  ;;  %2559 = vmatmul.mubr.bf16.gmra.mrb[48].mxu1 %v2744_v12 }
  0xa7   : > { %1153 = vmatprep.mubr.bf16.mxu0 %v2745_v13  ;;  %2562 = vmatprep.mubr.bf16.mxu1 %v2747_v14 }
  0xae   : > { %1154 = vmatmul.mubr.bf16.gmra.mrb[52].mxu0 %v2748_v15  ;;  %2563 = vmatmul.mubr.bf16.gmra.mrb[52].mxu1 %v2749_v16 }
  0xaf   : > { %1161 = vmatprep.mubr.bf16.mxu0 %v2750_v17  ;;  %2566 = vmatprep.mubr.bf16.mxu1 %v2752_v18 }
  0xb6   : > { %1162 = vmatmul.mubr.bf16.gmra.mrb[56].mxu0 %v2753_v19  ;;  %2567 = vmatmul.mubr.bf16.gmra.mrb[56].mxu1 %v2754_v20 }
  0xb7   : > { %1169 = vmatprep.mubr.bf16.mxu0 %v2755_v21  ;;  %2570 = vmatprep.mubr.bf16.mxu1 %v2757_v22 }
  0xbe   : > { %1170 = vmatmul.mubr.bf16.gmra.mrb[60].mxu0 %v2758_v23  ;;  %2571 = vmatmul.mubr.bf16.gmra.mrb[60].mxu1 %v2759_v24 }
  0xbf   : > { %1177 = vmatprep.mubr.bf16.mxu0 %v2760_v25  ;;  %2574 = vmatprep.mubr.bf16.mxu1 %v2762_v26 }
  0xc6   : > { %1178 = vmatmul.mubr.bf16.gmra.mrb[64].mxu0 %v2763_v27  ;;  %2575 = vmatmul.mubr.bf16.gmra.mrb[64].mxu1 %v2764_v28 }
  0xc7   : > { %1185 = vmatprep.mubr.bf16.mxu0 %v2765_v29  ;;  %2578 = vmatprep.mubr.bf16.mxu1 %v2767_v30 }
  0xce   : > { %1186 = vmatmul.mubr.bf16.gmra.mrb[68].mxu0 %v2768_v31  ;;  %2579 = vmatmul.mubr.bf16.gmra.mrb[68].mxu1 %v2769_v32 }
  0xcf   : > { %1193 = vmatprep.mubr.bf16.mxu0 %v2770_v33  ;;  %2582 = vmatprep.mubr.bf16.mxu1 %v2772_v34 }
  0xd6   : > { %1194 = vmatmul.mubr.bf16.gmra.mrb[72].mxu0 %v2773_v35  ;;  %2583 = vmatmul.mubr.bf16.gmra.mrb[72].mxu1 %v2774_v36 }
  0xd7   : > { %1201 = vmatprep.mubr.bf16.mxu0 %v2775_v37  ;;  %2586 = vmatprep.mubr.bf16.mxu1 %v2777_v38 }
  0xde   : > { %1202 = vmatmul.mubr.bf16.gmra.mrb[76].mxu0 %v2778_v39  ;;  %2587 = vmatmul.mubr.bf16.gmra.mrb[76].mxu1 %v2779_v40 }
  0xdf   : > { %1209 = vmatprep.mubr.bf16.mxu0 %v2780_v41  ;;  %2590 = vmatprep.mubr.bf16.mxu1 %v2782_v42 }
  0xe6   : > { %1210 = vmatmul.mubr.bf16.gmra.mrb[80].mxu0 %v2783_v43  ;;  %2591 = vmatmul.mubr.bf16.gmra.mrb[80].mxu1 %v2784_v44 }
  0xe7   : > { %1217 = vmatprep.mubr.bf16.mxu0 %v2785_v45  ;;  %2594 = vmatprep.mubr.bf16.mxu1 %v2787_v46 }
  0xee   : > { %1218 = vmatmul.mubr.bf16.gmra.mrb[84].mxu0 %v2788_v47  ;;  %2595 = vmatmul.mubr.bf16.gmra.mrb[84].mxu1 %v2789_v48 }
  0xef   : > { %1225 = vmatprep.mubr.bf16.mxu0 %v2790_v49  ;;  %2598 = vmatprep.mubr.bf16.mxu1 %v2792_v50 }
  0xf6   : > { %1226 = vmatmul.mubr.bf16.gmra.mrb[88].mxu0 %v2793_v51  ;;  %2599 = vmatmul.mubr.bf16.gmra.mrb[88].mxu1 %v2794_v52 }
  0xf7   : > { %1233 = vmatprep.mubr.bf16.mxu0 %v2795_v53  ;;  %2602 = vmatprep.mubr.bf16.mxu1 %v2797_v54 }
  0xfe   : > { %1234 = vmatmul.mubr.bf16.gmra.mrb[92].mxu0 %v2798_v55  ;;  %2603 = vmatmul.mubr.bf16.gmra.mrb[92].mxu1 %v2799_v56 }
 0x119   : > { %v3045_v57 = vpop.f32.mrb[0].mxu0  ;;  %v3047_v58 = vpop.f32.mrb[0].mxu1 }
 0x11a   : > { %v1053_v59 = vpop.f32.mrb[1].mxu0  ;;  %v1245_v60 = vpop.f32.mrb[1].mxu1 }
 0x11b   : > { %v3049_v61 = vpop.f32.mrb[2].mxu0  ;;  %v3051_v62 = vpop.f32.mrb[2].mxu1  ;;  %v3108_v59 = vld [vmem:[%s3283_s2] ss:$0 sm:$0xff] }
 0x11c   : > { %v1056_v63 = vpop.f32.mrb[3].mxu0  ;;  %v1248_v0 = vpop.f32.mrb[3].mxu1 }
 0x11d   : > { %v1052_v63 = vadd.f32 %v3108_v59, %v3045_v57 }
 0x121   : > { %v1059_v1 = vpop.f32.mrb[4].mxu0  ;;  %v3053_v2 = vpop.f32.mrb[4].mxu1 }
 0x122   : > { %v1061_v3 = vpop.f32.mrb[5].mxu0  ;;  %v1253_v4 = vpop.f32.mrb[5].mxu1  ;;  %v1060_v60 = vadd.f32 %v3108_v59, %v1059_v1 }
 0x123   : > { %v1062_v5 = vpop.f32.mrb[6].mxu0  ;;  %v3055_v6 = vpop.f32.mrb[6].mxu1 }
 0x124   : > { %v1064_v7 = vpop.f32.mrb[7].mxu0  ;;  %v1256_v8 = vpop.f32.mrb[7].mxu1  ;;  %v1063_v4 = vadd.f32 %v3108_v59, %v1062_v5 }
 0x129   : > { %v3057_v9 = vpop.f32.mrb[8].mxu0  ;;  %v3059_v10 = vpop.f32.mrb[8].mxu1 }
 0x12a   : > { %v1069_v11 = vpop.f32.mrb[9].mxu0  ;;  %v1261_v12 = vpop.f32.mrb[9].mxu1 }
 0x12b   : > { %v3061_v13 = vpop.f32.mrb[10].mxu0  ;;  %v3063_v14 = vpop.f32.mrb[10].mxu1  ;;  %v1055_v12 = vadd.f32 %v3108_v59, %v3049_v61 }
 0x12c   : > { %v1072_v15 = vpop.f32.mrb[11].mxu0  ;;  %v1264_v16 = vpop.f32.mrb[11].mxu1 }
 0x131   : > { %v3065_v17 = vpop.f32.mrb[12].mxu0  ;;  %v3067_v18 = vpop.f32.mrb[12].mxu1 }
 0x132   : > { %v1077_v19 = vpop.f32.mrb[13].mxu0  ;;  %v1269_v20 = vpop.f32.mrb[13].mxu1  ;;  %v1076_v5 = vadd.f32 %v3108_v59, %v3065_v17 }
 0x133   : > { %v3069_v21 = vpop.f32.mrb[14].mxu0  ;;  %v3071_v22 = vpop.f32.mrb[14].mxu1 }
 0x134   : > { %v1080_v23 = vpop.f32.mrb[15].mxu0  ;;  %v1272_v24 = vpop.f32.mrb[15].mxu1 }
 0x139   : > { %v3073_v25 = vpop.f32.mrb[16].mxu0  ;;  %v3075_v26 = vpop.f32.mrb[16].mxu1 }
 0x13a   : > { %v1085_v27 = vpop.f32.mrb[17].mxu0  ;;  %v1277_v28 = vpop.f32.mrb[17].mxu1 }
 0x13b   : > { %v3077_v29 = vpop.f32.mrb[18].mxu0  ;;  %v3079_v30 = vpop.f32.mrb[18].mxu1 }
 0x13c   : > { %v1088_v31 = vpop.f32.mrb[19].mxu0  ;;  %v1280_v32 = vpop.f32.mrb[19].mxu1 }
 0x13d   : > { %v1068_v32 = vadd.f32 %v3108_v59, %v3057_v9 }
 0x141   : > { %v3081_v33 = vpop.f32.mrb[20].mxu0  ;;  %v3083_v34 = vpop.f32.mrb[20].mxu1 }
 0x142   : > { %v1093_v35 = vpop.f32.mrb[21].mxu0  ;;  %v1285_v36 = vpop.f32.mrb[21].mxu1 }
 0x143   : > { %v3085_v37 = vpop.f32.mrb[22].mxu0  ;;  %v3087_v38 = vpop.f32.mrb[22].mxu1 }
 0x144   : > { %v1096_v39 = vpop.f32.mrb[23].mxu0  ;;  %v1288_v40 = vpop.f32.mrb[23].mxu1 }
 0x145   : > { %v1079_v40 = vadd.f32 %v3108_v59, %v3069_v21 }
 0x149   : > { %v3089_v41 = vpop.f32.mrb[24].mxu0  ;;  %v3091_v42 = vpop.f32.mrb[24].mxu1 }
 0x14a   : > { %v1101_v43 = vpop.f32.mrb[25].mxu0  ;;  %v1293_v44 = vpop.f32.mrb[25].mxu1 }
 0x14b   : > { %v3093_v45 = vpop.f32.mrb[26].mxu0  ;;  %v3095_v46 = vpop.f32.mrb[26].mxu1 }
 0x14c   : > { %v1104_v47 = vpop.f32.mrb[27].mxu0  ;;  %v1296_v48 = vpop.f32.mrb[27].mxu1 }
 0x14d   : > { %v1071_v48 = vadd.f32 %v3108_v59, %v3061_v13  ;;  %v1084_v13 = vadd.f32 %v3108_v59, %v3073_v25 }
 0x151   : > { %v3097_v49 = vpop.f32.mrb[28].mxu0  ;;  %v3099_v50 = vpop.f32.mrb[28].mxu1 }
 0x152   : > { %v1109_v51 = vpop.f32.mrb[29].mxu0  ;;  %v1301_v52 = vpop.f32.mrb[29].mxu1 }
 0x153   : > { %v3101_v53 = vpop.f32.mrb[30].mxu0  ;;  %v3103_v54 = vpop.f32.mrb[30].mxu1 }
 0x154   : > { %v1112_v55 = vpop.f32.mrb[31].mxu0  ;;  %v1304_v56 = vpop.f32.mrb[31].mxu1 }
 0x159   : > { %v3113_v0 = vpop.f32.mrb[32].mxu0  ;;  %v2544_v3 = vpop.f32.mrb[32].mxu1 }
 0x15a   : > { %v1349_v7 = vadd.f32 %v2544_v3, %v1060_v60  ;;  %v1117_v8 = vpop.f32.mrb[33].mxu0  ;;  %v1340_v11 = vpop.f32.mrb[33].mxu1 }
 0x15b   : > { %v1341_v15 = vadd.f32 %v1340_v11, %v1052_v63  ;;  %v3118_v16 = vpop.f32.mrb[34].mxu0  ;;  %v2545_v19 = vpop.f32.mrb[34].mxu1 }
 0x15c   : > { %v1352_v1 = vadd.f32 %v2545_v19, %v1063_v4  ;;  %v1120_v20 = vpop.f32.mrb[35].mxu0  ;;  %v1343_v23 = vpop.f32.mrb[35].mxu1  ;;  %v1597_v24 = vmax.f32 %v1349_v7, 0.0  ;;  %v1092_v7 = vadd.f32 %v3108_v59, %v3081_v33  ;;  %v1095_v19 = vadd.f32 %v3108_v59, %v3085_v37 }
 0x15d   : > { %v1344_v57 = vadd.f32 %v1343_v23, %v1055_v12  ;;  %v1595_v28 = vmax.f32 %v1341_v15, 0.0 }
 0x15e   : > { %v1598_v27 = vmax.f32 %v1352_v1, 0.0 }
 0x15f   : > { %v1596_v61 = vmax.f32 %v1344_v57, 0.0  ;;  %v1087_v57 = vadd.f32 %v3108_v59, %v3077_v29  ;;  %v1100_v29 = vadd.f32 %v3108_v59, %v3089_v41 }
 0x160   : > { %v2303_v31 = vpack.c.bf16 %v1598_v27, %v1597_v24 }
 0x161   : > { %v2298_v35 = vpack.c.bf16 %v1596_v61, %v1595_v28  ;;  %v3130_v36 = vpop.f32.mrb[36].mxu0  ;;  %v2548_v39 = vpop.f32.mrb[36].mxu1 }
 0x162   : > { %2455 = vst [vmem:[%s3124_s22 + $0x8] sm:$0xff] %v2303_v31   ;;  %v1365_v43 = vadd.f32 %v2548_v39, %v1076_v5  ;;  %v1125_v44 = vpop.f32.mrb[37].mxu0  ;;  %v1356_v47 = vpop.f32.mrb[37].mxu1  ;;  %v1108_v39 = vadd.f32 %v3108_v59, %v3097_v49 }
 0x163   : > { %2299 = vst [vmem:[%s3124_s22] sm:$0xff] %v2298_v35   ;;  %v1357_v17 = vadd.f32 %v1356_v47, %v1068_v32  ;;  %v3138_v51 = vpop.f32.mrb[38].mxu0  ;;  %v2549_v52 = vpop.f32.mrb[38].mxu1 }
 0x164   : > { %v1368_v9 = vadd.f32 %v2549_v52, %v1079_v40  ;;  %v1128_v55 = vpop.f32.mrb[39].mxu0  ;;  %v1359_v56 = vpop.f32.mrb[39].mxu1  ;;  %v1601_v63 = vmax.f32 %v1365_v43, 0.0 }
 0x165   : > { %v1360_v60 = vadd.f32 %v1359_v56, %v1071_v48  ;;  %v1599_v3 = vmax.f32 %v1357_v17, 0.0  ;;  %v1111_v48 = vadd.f32 %v3108_v59, %v3101_v53  ;;  %v1103_v55 = vadd.f32 %v3108_v59, %v3093_v45 }
 0x166   : > { %v1602_v21 = vmax.f32 %v1368_v9, 0.0  ;;  %v1116_v45 = vadd.f32 %v3108_v59, %v3113_v0 }
 0x167   : > { %v1600_v4 = vmax.f32 %v1360_v60, 0.0 }
 0x168   : > { %v2313_v8 = vpack.c.bf16 %v1602_v21, %v1601_v63 }
 0x169   : > { %v2308_v11 = vpack.c.bf16 %v1600_v4, %v1599_v3  ;;  %v3144_v12 = vpop.f32.mrb[40].mxu0  ;;  %v2552_v15 = vpop.f32.mrb[40].mxu1 }
 0x16a   : > { %2457 = vst [vmem:[%s3124_s22 + $0x18] sm:$0xff] %v2313_v8   ;;  %v1381_v1 = vadd.f32 %v2552_v15, %v1092_v7  ;;  %v1133_v20 = vpop.f32.mrb[41].mxu0  ;;  %v1372_v23 = vpop.f32.mrb[41].mxu1 }
 0x16b   : > { %2456 = vst [vmem:[%s3124_s22 + $0x10] sm:$0xff] %v2308_v11   ;;  %v1373_v33 = vadd.f32 %v1372_v23, %v1084_v13  ;;  %v3152_v24 = vpop.f32.mrb[42].mxu0  ;;  %v2553_v27 = vpop.f32.mrb[42].mxu1  ;;  %v1124_v13 = vadd.f32 %v3108_v59, %v3130_v36  ;;  %v1127_v20 = vadd.f32 %v3108_v59, %v3138_v51 }
 0x16c   : > { %v1384_v25 = vadd.f32 %v2553_v27, %v1095_v19  ;;  %v1136_v28 = vpop.f32.mrb[43].mxu0  ;;  %v1375_v61 = vpop.f32.mrb[43].mxu1  ;;  %v1605_v31 = vmax.f32 %v1381_v1, 0.0  ;;  %v1119_v27 = vadd.f32 %v3108_v59, %v3118_v16  ;;  %v1132_v16 = vadd.f32 %v3108_v59, %v3144_v12 }
 0x16d   : > { %v1376_v5 = vadd.f32 %v1375_v61, %v1087_v57  ;;  %v1603_v32 = vmax.f32 %v1373_v33, 0.0 }
 0x16e   : > { %v1606_v37 = vmax.f32 %v1384_v25, 0.0 }
 0x16f   : > { %v1604_v35 = vmax.f32 %v1376_v5, 0.0 }
 0x170   : > { %v2323_v40 = vpack.c.bf16 %v1606_v37, %v1605_v31 }
 0x171   : > { %v2318_v43 = vpack.c.bf16 %v1604_v35, %v1603_v32  ;;  %v1139_v44 = vpop.f32.mrb[44].mxu0  ;;  %v2556_v47 = vpop.f32.mrb[44].mxu1 }
 0x172   : > { %2459 = vst [vmem:[%s3124_s22 + $0x28] sm:$0xff] %v2323_v40   ;;  %v1397_v17 = vadd.f32 %v2556_v47, %v1108_v39  ;;  %v1141_v52 = vpop.f32.mrb[45].mxu0  ;;  %v1388_v9 = vpop.f32.mrb[45].mxu1  ;;  %v1140_v39 = vadd.f32 %v3108_v59, %v1139_v44 }
 0x173   : > { %2458 = vst [vmem:[%s3124_s22 + $0x20] sm:$0xff] %v2318_v43   ;;  %v1389_v56 = vadd.f32 %v1388_v9, %v1100_v29  ;;  %v1142_v49 = vpop.f32.mrb[46].mxu0  ;;  %v2557_v60 = vpop.f32.mrb[46].mxu1 }
 0x174   : > { %v1400_v63 = vadd.f32 %v2557_v60, %v1111_v48  ;;  %v1144_v41 = vpop.f32.mrb[47].mxu0  ;;  %v1391_v21 = vpop.f32.mrb[47].mxu1  ;;  %v1609_v4 = vmax.f32 %v1397_v17, 0.0  ;;  %v1143_v48 = vadd.f32 %v3108_v59, %v1142_v49 }
 0x175   : > { %v1392_v3 = vadd.f32 %v1391_v21, %v1103_v55  ;;  %v1607_v53 = vmax.f32 %v1389_v56, 0.0  ;;  %v1135_v55 = vadd.f32 %v3108_v59, %v3152_v24 }
 0x176   : > { %v1610_v7 = vmax.f32 %v1400_v63, 0.0 }
 0x177   : > { %v1608_v8 = vmax.f32 %v1392_v3, 0.0 }
 0x178   : > { %v2333_v11 = vpack.c.bf16 %v1610_v7, %v1609_v4 }
 0x179   : > { %v2328_v15 = vpack.c.bf16 %v1608_v8, %v1607_v53  ;;  %v1147_v19 = vpop.f32.mrb[48].mxu0  ;;  %v2560_v1 = vpop.f32.mrb[48].mxu1 }
 0x17a   : > { %2461 = vst [vmem:[%s3124_s22 + $0x38] sm:$0xff] %v2333_v11   ;;  %v1413_v23 = vadd.f32 %v2560_v1, %v1124_v13  ;;  %v1149_v57 = vpop.f32.mrb[49].mxu0  ;;  %v1404_v33 = vpop.f32.mrb[49].mxu1  ;;  %v1148_v13 = vadd.f32 %v3108_v59, %v1147_v19 }
 0x17b   : > { %2460 = vst [vmem:[%s3124_s22 + $0x30] sm:$0xff] %v2328_v15   ;;  %v1405_v25 = vadd.f32 %v1404_v33, %v1116_v45  ;;  %v1150_v36 = vpop.f32.mrb[50].mxu0  ;;  %v2561_v28 = vpop.f32.mrb[50].mxu1 }
 0x17c   : > { %v1416_v61 = vadd.f32 %v2561_v28, %v1127_v20  ;;  %v1152_v0 = vpop.f32.mrb[51].mxu0  ;;  %v1407_v5 = vpop.f32.mrb[51].mxu1  ;;  %v1613_v37 = vmax.f32 %v1413_v23, 0.0  ;;  %v1151_v57 = vadd.f32 %v3108_v59, %v1150_v36 }
 0x17d   : > { %v1408_v31 = vadd.f32 %v1407_v5, %v1119_v27  ;;  %v1611_v51 = vmax.f32 %v1405_v25, 0.0 }
 0x17e   : > { %v1614_v32 = vmax.f32 %v1416_v61, 0.0 }
 0x17f   : > { %v1612_v35 = vmax.f32 %v1408_v31, 0.0 }
 0x180   : > { %v2343_v40 = vpack.c.bf16 %v1614_v32, %v1613_v37 }
 0x181   : > { %v2338_v29 = vpack.c.bf16 %v1612_v35, %v1611_v51  ;;  %v1155_v43 = vpop.f32.mrb[52].mxu0  ;;  %v2564_v47 = vpop.f32.mrb[52].mxu1 }
 0x182   : > { %2463 = vst [vmem:[%s3124_s22 + $0x48] sm:$0xff] %v2343_v40   ;;  %v1429_v17 = vadd.f32 %v2564_v47, %v1140_v39  ;;  %v1157_v52 = vpop.f32.mrb[53].mxu0  ;;  %v1420_v9 = vpop.f32.mrb[53].mxu1  ;;  %v1156_v53 = vadd.f32 %v3108_v59, %v1155_v43 }
 0x183   : > { %2462 = vst [vmem:[%s3124_s22 + $0x40] sm:$0xff] %v2338_v29   ;;  %v1421_v56 = vadd.f32 %v1420_v9, %v1132_v16  ;;  %v1158_v60 = vpop.f32.mrb[54].mxu0  ;;  %v2565_v44 = vpop.f32.mrb[54].mxu1 }
 0x184   : > { %v1432_v63 = vadd.f32 %v2565_v44, %v1143_v48  ;;  %v1160_v41 = vpop.f32.mrb[55].mxu0  ;;  %v1423_v12 = vpop.f32.mrb[55].mxu1  ;;  %v1617_v3 = vmax.f32 %v1429_v17, 0.0  ;;  %v1159_v15 = vadd.f32 %v3108_v59, %v1158_v60 }
 0x185   : > { %v1424_v21 = vadd.f32 %v1423_v12, %v1135_v55  ;;  %v1615_v49 = vmax.f32 %v1421_v56, 0.0 }
 0x186   : > { %v1618_v4 = vmax.f32 %v1432_v63, 0.0 }
 0x187   : > { %v1616_v7 = vmax.f32 %v1424_v21, 0.0 }
 0x188   : > { %v2353_v8 = vpack.c.bf16 %v1618_v4, %v1617_v3 }
 0x189   : > { %v2348_v24 = vpack.c.bf16 %v1616_v7, %v1615_v49  ;;  %v1163_v11 = vpop.f32.mrb[56].mxu0  ;;  %v2568_v45 = vpop.f32.mrb[56].mxu1 }
 0x18a   : > { %2465 = vst [vmem:[%s3124_s22 + $0x58] sm:$0xff] %v2353_v8   ;;  %v1445_v1 = vadd.f32 %v2568_v45, %v1156_v53  ;;  %v1165_v20 = vpop.f32.mrb[57].mxu0  ;;  %v1436_v23 = vpop.f32.mrb[57].mxu1  ;;  %v1164_v35 = vadd.f32 %v3108_v59, %v1163_v11 }
 0x18b   : > { %2464 = vst [vmem:[%s3124_s22 + $0x50] sm:$0xff] %v2348_v24   ;;  %v1437_v33 = vadd.f32 %v1436_v23, %v1148_v13  ;;  %v1166_v27 = vpop.f32.mrb[58].mxu0  ;;  %v2569_v25 = vpop.f32.mrb[58].mxu1 }
 0x18c   : > { %v1448_v28 = vadd.f32 %v2569_v25, %v1159_v15  ;;  %v1168_v61 = vpop.f32.mrb[59].mxu0  ;;  %v1439_v0 = vpop.f32.mrb[59].mxu1  ;;  %v1621_v5 = vmax.f32 %v1445_v1, 0.0  ;;  %v1167_v47 = vadd.f32 %v3108_v59, %v1166_v27 }
 0x18d   : > { %v1440_v19 = vadd.f32 %v1439_v0, %v1151_v57  ;;  %v1619_v37 = vmax.f32 %v1437_v33, 0.0 }
 0x18e   : > { %v1622_v31 = vmax.f32 %v1448_v28, 0.0 }
 0x18f   : > { %v1620_v32 = vmax.f32 %v1440_v19, 0.0 }
 0x190   : > { %v2363_v51 = vpack.c.bf16 %v1622_v31, %v1621_v5 }
 0x191   : > { %v2358_v39 = vpack.c.bf16 %v1620_v32, %v1619_v37  ;;  %v1171_v40 = vpop.f32.mrb[60].mxu0  ;;  %v2572_v36 = vpop.f32.mrb[60].mxu1 }
 0x192   : > { %2467 = vst [vmem:[%s3124_s22 + $0x68] sm:$0xff] %v2363_v51   ;;  %v1172_v16 = vadd.f32 %v3108_v59, %v1171_v40  ;;  %v1173_v29 = vpop.f32.mrb[61].mxu0  ;;  %v1452_v43 = vpop.f32.mrb[61].mxu1 }
 0x193   : > { %2466 = vst [vmem:[%s3124_s22 + $0x60] sm:$0xff] %v2358_v39   ;;  %v1453_v48 = vadd.f32 %v1452_v43, %v1164_v35  ;;  %v1174_v17 = vpop.f32.mrb[62].mxu0  ;;  %v2573_v52 = vpop.f32.mrb[62].mxu1 }
 0x194   : > { %v1461_v9 = vadd.f32 %v2572_v36, %v1172_v16  ;;  %v1175_v55 = vadd.f32 %v3108_v59, %v1174_v17  ;;  %v1176_v56 = vpop.f32.mrb[63].mxu0  ;;  %v1455_v60 = vpop.f32.mrb[63].mxu1 }
 0x195   : > { %v1456_v44 = vadd.f32 %v1455_v60, %v1167_v47  ;;  %v1623_v41 = vmax.f32 %v1453_v48, 0.0 }
 0x196   : > { %v1464_v63 = vadd.f32 %v2573_v52, %v1175_v55  ;;  %v1625_v21 = vmax.f32 %v1461_v9, 0.0 }
 0x197   : > { %v1624_v12 = vmax.f32 %v1456_v44, 0.0 }
 0x198   : > { %v1626_v3 = vmax.f32 %v1464_v63, 0.0 }
 0x199   : > { %v2368_v4 = vpack.c.bf16 %v1624_v12, %v1623_v41  ;;  %v1179_v49 = vpop.f32.mrb[64].mxu0  ;;  %v2576_v7 = vpop.f32.mrb[64].mxu1 }
 0x19a   : > { %v2373_v53 = vpack.c.bf16 %v1626_v3, %v1625_v21  ;;  %v1180_v8 = vadd.f32 %v3108_v59, %v1179_v49  ;;  %v1181_v13 = vpop.f32.mrb[65].mxu0  ;;  %v1468_v24 = vpop.f32.mrb[65].mxu1 }
 0x19b   : > { %2468 = vst [vmem:[%s3124_s22 + $0x70] sm:$0xff] %v2368_v4   ;;  %v1182_v11 = vpop.f32.mrb[66].mxu0  ;;  %v2577_v45 = vpop.f32.mrb[66].mxu1 }
 0x19c   : > { %2469 = vst [vmem:[%s3124_s22 + $0x78] sm:$0xff] %v2373_v53   ;;  %v1469_v15 = vadd.f32 %v1468_v24, %v1180_v8  ;;  %v1183_v1 = vadd.f32 %v3108_v59, %v1182_v11  ;;  %v1184_v20 = vpop.f32.mrb[67].mxu0  ;;  %v1471_v23 = vpop.f32.mrb[67].mxu1 }
 0x19e   : > { %v1472_v57 = vadd.f32 %v1471_v23, %v1183_v1  ;;  %v1627_v33 = vmax.f32 %v1469_v15, 0.0  ;;  %v1252_v23 = vadd.f32 %v3108_v59, %v3053_v2  ;;  %v1247_v2 = vadd.f32 %v3108_v59, %v3051_v62 }
 0x19f   : > { %v1268_v62 = vadd.f32 %v3108_v59, %v3067_v18 }
 0x1a0   : > { %v1628_v27 = vmax.f32 %v1472_v57, 0.0 }
 0x1a1   : > { %v1187_v25 = vpop.f32.mrb[68].mxu0  ;;  %v2580_v28 = vpop.f32.mrb[68].mxu1 }
 0x1a2   : > { %v2378_v61 = vpack.c.bf16 %v1628_v27, %v1627_v33  ;;  %v1188_v0 = vadd.f32 %v3108_v59, %v1187_v25  ;;  %v1189_v19 = vpop.f32.mrb[69].mxu0  ;;  %v1484_v5 = vpop.f32.mrb[69].mxu1  ;;  %v1244_v27 = vadd.f32 %v3108_v59, %v3047_v58 }
 0x1a3   : > { %v1190_v31 = vpop.f32.mrb[70].mxu0  ;;  %v2581_v37 = vpop.f32.mrb[70].mxu1 }
 0x1a4   : > { %2470 = vst [vmem:[%s3124_s22 + $0x80] sm:$0xff] %v2378_v61   ;;  %v1477_v32 = vadd.f32 %v2576_v7, %v1188_v0  ;;  %v1191_v51 = vadd.f32 %v3108_v59, %v1190_v31  ;;  %v1192_v35 = vpop.f32.mrb[71].mxu0  ;;  %v1487_v39 = vpop.f32.mrb[71].mxu1 }
 0x1a6   : > { %v1480_v40 = vadd.f32 %v2577_v45, %v1191_v51  ;;  %v1629_v36 = vmax.f32 %v1477_v32, 0.0 }
 0x1a8   : > { %v1630_v16 = vmax.f32 %v1480_v40, 0.0 }
 0x1a9   : > { %v1195_v29 = vpop.f32.mrb[72].mxu0  ;;  %v3201_v43 = vpop.f32.mrb[72].mxu1 }
 0x1aa   : > { %v2383_v47 = vpack.c.bf16 %v1630_v16, %v1629_v36  ;;  %v1196_v48 = vadd.f32 %v3108_v59, %v1195_v29  ;;  %v1197_v17 = vpop.f32.mrb[73].mxu0  ;;  %v1500_v52 = vpop.f32.mrb[73].mxu1 }
 0x1ab   : > { %v1198_v9 = vpop.f32.mrb[74].mxu0  ;;  %v3204_v55 = vpop.f32.mrb[74].mxu1 }
 0x1ac   : > { %2471 = vst [vmem:[%s3124_s22 + $0x88] sm:$0xff] %v2383_v47   ;;  %v1485_v56 = vadd.f32 %v1484_v5, %v1196_v48  ;;  %v1199_v60 = vadd.f32 %v3108_v59, %v1198_v9  ;;  %v1200_v44 = vpop.f32.mrb[75].mxu0  ;;  %v1503_v63 = vpop.f32.mrb[75].mxu1 }
 0x1ae   : > { %v1488_v41 = vadd.f32 %v1487_v39, %v1199_v60  ;;  %v1631_v12 = vmax.f32 %v1485_v56, 0.0 }
 0x1b0   : > { %v1632_v21 = vmax.f32 %v1488_v41, 0.0 }
 0x1b1   : > { %v1203_v3 = vpop.f32.mrb[76].mxu0  ;;  %v3208_v4 = vpop.f32.mrb[76].mxu1 }
 0x1b2   : > { %v2388_v49 = vpack.c.bf16 %v1632_v21, %v1631_v12  ;;  %v1204_v7 = vadd.f32 %v3108_v59, %v1203_v3  ;;  %v1205_v53 = vpop.f32.mrb[77].mxu0  ;;  %v3211_v8 = vpop.f32.mrb[77].mxu1 }
 0x1b3   : > { %v1206_v13 = vpop.f32.mrb[78].mxu0  ;;  %v3213_v24 = vpop.f32.mrb[78].mxu1 }
 0x1b4   : > { %2472 = vst [vmem:[%s3124_s22 + $0x90] sm:$0xff] %v2388_v49   ;;  %v1493_v11 = vadd.f32 %v2580_v28, %v1204_v7  ;;  %v1207_v45 = vadd.f32 %v3108_v59, %v1206_v13  ;;  %v1208_v15 = vpop.f32.mrb[79].mxu0  ;;  %v3217_v1 = vpop.f32.mrb[79].mxu1  ;;  %v1255_v28 = vadd.f32 %v3108_v59, %v3055_v6  ;;  %v1263_v13 = vadd.f32 %v3108_v59, %v3063_v14 }
 0x1b6   : > { %v1496_v20 = vadd.f32 %v2581_v37, %v1207_v45  ;;  %v1633_v57 = vmax.f32 %v1493_v11, 0.0 }
 0x1b8   : > { %v1634_v33 = vmax.f32 %v1496_v20, 0.0 }
 0x1b9   : > { %v1211_v25 = vpop.f32.mrb[80].mxu0  ;;  %v2592_v61 = vpop.f32.mrb[80].mxu1 }
 0x1ba   : > { %v2393_v0 = vpack.c.bf16 %v1634_v33, %v1633_v57  ;;  %v1212_v19 = vadd.f32 %v3108_v59, %v1211_v25  ;;  %v1541_v5 = vadd.f32 %v2592_v61, %v1252_v23  ;;  %v1213_v31 = vpop.f32.mrb[81].mxu0  ;;  %v1532_v37 = vpop.f32.mrb[81].mxu1 }
 0x1bb   : > { %v1533_v32 = vadd.f32 %v1532_v37, %v1244_v27  ;;  %v1214_v51 = vpop.f32.mrb[82].mxu0  ;;  %v2593_v35 = vpop.f32.mrb[82].mxu1  ;;  %v1276_v31 = vadd.f32 %v3108_v59, %v3075_v26 }
 0x1bc   : > { %2473 = vst [vmem:[%s3124_s22 + $0x98] sm:$0xff] %v2393_v0   ;;  %v1501_v39 = vadd.f32 %v1500_v52, %v1212_v19  ;;  %v1215_v58 = vadd.f32 %v3108_v59, %v1214_v51  ;;  %v1544_v40 = vadd.f32 %v2593_v35, %v1255_v28  ;;  %v1216_v36 = vpop.f32.mrb[83].mxu0  ;;  %v1535_v16 = vpop.f32.mrb[83].mxu1  ;;  %v1645_v29 = vmax.f32 %v1541_v5, 0.0 }
 0x1bd   : > { %v1536_v6 = vadd.f32 %v1535_v16, %v1247_v2  ;;  %v1643_v17 = vmax.f32 %v1533_v32, 0.0  ;;  %v1260_v52 = vadd.f32 %v3108_v59, %v3059_v10  ;;  %v1284_v0 = vadd.f32 %v3108_v59, %v3083_v34 }
 0x1be   : > { %v1504_v47 = vadd.f32 %v1503_v63, %v1215_v58  ;;  %v1646_v48 = vmax.f32 %v1544_v40, 0.0  ;;  %v1635_v56 = vmax.f32 %v1501_v39, 0.0  ;;  %v1271_v63 = vadd.f32 %v3108_v59, %v3071_v22 }
 0x1bf   : > { %v1644_v9 = vmax.f32 %v1536_v6, 0.0  ;;  %v1279_v40 = vadd.f32 %v3108_v59, %v3079_v30 }
 0x1c0   : > { %v1636_v60 = vmax.f32 %v1504_v47, 0.0  ;;  %v2423_v44 = vpack.c.bf16 %v1646_v48, %v1645_v29 }
 0x1c1   : > { %v2418_v41 = vpack.c.bf16 %v1644_v9, %v1643_v17  ;;  %v1219_v12 = vpop.f32.mrb[84].mxu0  ;;  %v2596_v21 = vpop.f32.mrb[84].mxu1 }
 0x1c2   : > { %v2398_v3 = vpack.c.bf16 %v1636_v60, %v1635_v56  ;;  %2479 = vst [vmem:[%s3124_s22 + $0xc8] sm:$0xff] %v2423_v44   ;;  %v1220_v49 = vadd.f32 %v3108_v59, %v1219_v12  ;;  %v1557_v7 = vadd.f32 %v2596_v21, %v1268_v62  ;;  %v1221_v18 = vpop.f32.mrb[85].mxu0  ;;  %v1548_v53 = vpop.f32.mrb[85].mxu1  ;;  %v1300_v44 = vadd.f32 %v3108_v59, %v3099_v50 }
 0x1c3   : > { %2478 = vst [vmem:[%s3124_s22 + $0xc0] sm:$0xff] %v2418_v41   ;;  %v1549_v11 = vadd.f32 %v1548_v53, %v1260_v52  ;;  %v1222_v10 = vpop.f32.mrb[86].mxu0  ;;  %v2597_v45 = vpop.f32.mrb[86].mxu1  ;;  %v1292_v12 = vadd.f32 %v3108_v59, %v3091_v42 }
 0x1c4   : > { %2474 = vst [vmem:[%s3124_s22 + $0xa0] sm:$0xff] %v2398_v3   ;;  %v1509_v15 = vadd.f32 %v3201_v43, %v1220_v49  ;;  %v1223_v20 = vadd.f32 %v3108_v59, %v1222_v10  ;;  %v1560_v22 = vadd.f32 %v2597_v45, %v1271_v63  ;;  %v1224_v23 = vpop.f32.mrb[87].mxu0  ;;  %v1551_v57 = vpop.f32.mrb[87].mxu1  ;;  %v1649_v27 = vmax.f32 %v1557_v7, 0.0 }
 0x1c5   : > { %v1552_v33 = vadd.f32 %v1551_v57, %v1263_v13  ;;  %v1647_v28 = vmax.f32 %v1549_v11, 0.0  ;;  %v1295_v13 = vadd.f32 %v3108_v59, %v3095_v46 }
 0x1c6   : > { %v1512_v25 = vadd.f32 %v3204_v55, %v1223_v20  ;;  %v1650_v61 = vmax.f32 %v1560_v22, 0.0  ;;  %v1637_v19 = vmax.f32 %v1509_v15, 0.0  ;;  %v1287_v55 = vadd.f32 %v3108_v59, %v3087_v38 }
 0x1c7   : > { %v1648_v14 = vmax.f32 %v1552_v33, 0.0 }
 0x1c8   : > { %v1638_v5 = vmax.f32 %v1512_v25, 0.0  ;;  %v2433_v43 = vpack.c.bf16 %v1650_v61, %v1649_v27 }
 0x1c9   : > { %v2428_v37 = vpack.c.bf16 %v1648_v14, %v1647_v28  ;;  %v1227_v2 = vpop.f32.mrb[88].mxu0  ;;  %v2600_v32 = vpop.f32.mrb[88].mxu1 }
 0x1ca   : > { %v2403_v51 = vpack.c.bf16 %v1638_v5, %v1637_v19  ;;  %2481 = vst [vmem:[%s3124_s22 + $0xd8] sm:$0xff] %v2433_v43   ;;  %v1228_v35 = vadd.f32 %v3108_v59, %v1227_v2  ;;  %v1573_v39 = vadd.f32 %v2600_v32, %v1284_v0  ;;  %v1229_v34 = vpop.f32.mrb[89].mxu0  ;;  %v1564_v58 = vpop.f32.mrb[89].mxu1 }
 0x1cb   : > { %2480 = vst [vmem:[%s3124_s22 + $0xd0] sm:$0xff] %v2428_v37   ;;  %v1565_v36 = vadd.f32 %v1564_v58, %v1276_v31  ;;  %v1230_v26 = vpop.f32.mrb[90].mxu0  ;;  %v2601_v16 = vpop.f32.mrb[90].mxu1 }
 0x1cc   : > { %2475 = vst [vmem:[%s3124_s22 + $0xa8] sm:$0xff] %v2403_v51   ;;  %v1517_v6 = vadd.f32 %v3211_v8, %v1228_v35  ;;  %v1231_v29 = vadd.f32 %v3108_v59, %v1230_v26  ;;  %v1576_v38 = vadd.f32 %v2601_v16, %v1287_v55  ;;  %v1232_v47 = vpop.f32.mrb[91].mxu0  ;;  %v1567_v48 = vpop.f32.mrb[91].mxu1  ;;  %v1653_v9 = vmax.f32 %v1573_v39, 0.0 }
 0x1cd   : > { %v1568_v17 = vadd.f32 %v1567_v48, %v1279_v40  ;;  %v1651_v60 = vmax.f32 %v1565_v36, 0.0 }
 0x1ce   : > { %v1520_v62 = vadd.f32 %v3217_v1, %v1231_v29  ;;  %v1654_v56 = vmax.f32 %v1576_v38, 0.0  ;;  %v1639_v52 = vmax.f32 %v1517_v6, 0.0  ;;  %v1303_v1 = vadd.f32 %v3108_v59, %v3103_v54 }
 0x1cf   : > { %v1652_v30 = vmax.f32 %v1568_v17, 0.0 }
 0x1d0   : > { %v1640_v41 = vmax.f32 %v1520_v62, 0.0  ;;  %v2443_v8 = vpack.c.bf16 %v1654_v56, %v1653_v9 }
 0x1d1   : > { %v2438_v21 = vpack.c.bf16 %v1652_v30, %v1651_v60  ;;  %v1235_v63 = vpop.f32.mrb[92].mxu0  ;;  %v2604_v3 = vpop.f32.mrb[92].mxu1 }
 0x1d2   : > { %v2408_v49 = vpack.c.bf16 %v1640_v41, %v1639_v52  ;;  %2483 = vst [vmem:[%s3124_s22 + $0xe8] sm:$0xff] %v2443_v8   ;;  %v1236_v7 = vadd.f32 %v3108_v59, %v1235_v63  ;;  %v1589_v18 = vadd.f32 %v2604_v3, %v1300_v44  ;;  %v1237_v50 = vpop.f32.mrb[93].mxu0  ;;  %v1580_v53 = vpop.f32.mrb[93].mxu1 }
 0x1d3   : > { %2482 = vst [vmem:[%s3124_s22 + $0xe0] sm:$0xff] %v2438_v21   ;;  %v1581_v11 = vadd.f32 %v1580_v53, %v1292_v12  ;;  %v1238_v42 = vpop.f32.mrb[94].mxu0  ;;  %v2605_v10 = vpop.f32.mrb[94].mxu1 }
 0x1d4   : > { %2476 = vst [vmem:[%s3124_s22 + $0xb0] sm:$0xff] %v2408_v49   ;;  %v1525_v45 = vadd.f32 %v3208_v4, %v1236_v7  ;;  %v1239_v54 = vadd.f32 %v3108_v59, %v1238_v42  ;;  %v1592_v15 = vadd.f32 %v2605_v10, %v1303_v1  ;;  %v1240_v20 = vpop.f32.mrb[95].mxu0  ;;  %v1583_v22 = vpop.f32.mrb[95].mxu1  ;;  %v1657_v57 = vmax.f32 %v1589_v18, 0.0 }
 0x1d5   : > { %v1584_v23 = vadd.f32 %v1583_v22, %v1295_v13  ;;  %v1655_v27 = vmax.f32 %v1581_v11, 0.0 }
 0x1d6   : > { %v1528_v33 = vadd.f32 %v3213_v24, %v1239_v54  ;;  %v1658_v46 = vmax.f32 %v1592_v15, 0.0  ;;  %v1641_v61 = vmax.f32 %v1525_v45, 0.0 }
 0x1d7   : > { %v1656_v25 = vmax.f32 %v1584_v23, 0.0 }
 0x1d8   : > { %v1642_v28 = vmax.f32 %v1528_v33, 0.0  ;;  %v2453_v14 = vpack.c.bf16 %v1658_v46, %v1657_v57 }
 0x1d9   : > { %v2448_v0 = vpack.c.bf16 %v1656_v25, %v1655_v27 }
 0x1da   : > { %v2413_v4 = vpack.c.bf16 %v1642_v28, %v1641_v61  ;;  %2485 = vst [vmem:[%s3124_s22 + $0xf8] sm:$0xff] %v2453_v14  }
 0x1db   : > { %2484 = vst [vmem:[%s3124_s22 + $0xf0] sm:$0xff] %v2448_v0  }
 0x1dc   : > { %2477 = vst [vmem:[%s3124_s22 + $0xb8] sm:$0xff] %v2413_v4  }
 0x1dd PF: > { %s13_s12 = sadd.s32 1, %s2806_s12  }
 0x1de   : > { %p10_p4 = scmp.ge.s32.totalorder %s13_s12, 11  }
 0x1e0   :  { %12 = sbr.rel (!%p10_p4) target bundleno = 1 (0x1), region = 62 }

// kernel: ppo_forward.6
= control target key start
LH: loop header
LB: loop body
LE: loop exit
PB: predicated region body
PF: predicated region fallthrough
CT: control target
= control target key end

     0   :  { %s2283_s12 = smov 0   ;;  %s2615_s0 = inlined_call_operand.vmem [shape: bf16[1152,384], index: 0, kind: input, shape index: {}]   ;;  %s2616_s1 = inlined_call_operand.vmem [shape: bf16[384,128], index: 1, kind: input, shape index: {}]   ;;  %s2617_s2 = inlined_call_operand.vmem [shape: f32[1,128], index: 2, kind: input, shape index: {}]   ;;  %s2618_s3 = inlined_call_operand.vmem [shape: bf16[1152,128], index: 3, kind: output, shape index: {}]  }
   0x1 LB: > { %s1651_s13 = sadd.s32 4294967295, %s2260_s12   ;;  %p1655_p0 = scmp.ge.s32.totalorder %s2260_s12, 1  ;;  %s2260_s12 = sphi %s2283_s12, %s13_s12  }
   0x2   : > { %p139_p1 = scmp.lt.s32.totalorder %s2260_s12, 4 }
   0x4   : > { %p140_p2 = pnand %p1655_p0, %p139_p1 }
   0x5   : > { %v2134_v0 = vld [vmem:[%s2616_s1] sm:$0xff] (!%p140_p2)   ;;  %v2262_v1 = vmov (!%p140_p2), 0   ;;  %s164_s16 = smul.u32 (!%p140_p2), 48, %s1651_s13  ;;  %v2135_v2 = vld [vmem:[%s2616_s1 + $0x8] sm:$0xff] (!%p140_p2)   ;;  %v2136_v3 = vld [vmem:[%s2616_s1 + $0x10] sm:$0xff] (!%p140_p2)  }
   0x6   : > { %143 = sbr.rel (%p140_p2) target bundleno = 429 (0x1ad), region = 32  ;;  %857 = vmatprep.subr.bf16.mxu0 (!%p140_p2), %v2262_v1  ;;  %2092 = vmatprep.subr.bf16.mxu1 (!%p140_p2), %v2262_v1  ;;  %v2137_v4 = vld [vmem:[%s2616_s1 + $0x18] sm:$0xff] (!%p140_p2)   ;;  %v2138_v5 = vld [vmem:[%s2616_s1 + $0x20] sm:$0xff] (!%p140_p2)   ;;  %v2139_v7 = vld [vmem:[%s2616_s1 + $0x28] sm:$0xff] (!%p140_p2)  }
   0x7   : > { %858 = vmatpush1.bf16.msra.mxu0 (!%p140_p2), %v2134_v0  ;;  %2108 = vmatpush1.bf16.msra.mxu1 (!%p140_p2), %v2134_v0  ;;  %p165_p3 = scmp.lt.s32.totalorder (!%p140_p2), %s164_s16, 143  ;;  %v2140_v9 = vld [vmem:[%s2616_s1 + $0x30] sm:$0xff] (!%p140_p2)   ;;  %v2141_v10 = vld [vmem:[%s2616_s1 + $0x38] sm:$0xff] (!%p140_p2)   ;;  %v2142_v11 = vld [vmem:[%s2616_s1 + $0x40] sm:$0xff] (!%p140_p2)  }
   0x8   : > { %859 = vmatprep.subr.bf16.mxu0 (!%p140_p2), %v2262_v1  ;;  %2093 = vmatprep.subr.bf16.mxu1 (!%p140_p2), %v2262_v1  ;;  %v2143_v12 = vld [vmem:[%s2616_s1 + $0x48] sm:$0xff] (!%p140_p2)   ;;  %v2144_v13 = vld [vmem:[%s2616_s1 + $0x50] sm:$0xff] (!%p140_p2)   ;;  %v2145_v14 = vld [vmem:[%s2616_s1 + $0x58] sm:$0xff] (!%p140_p2)  }
   0x9   : > { %v2146_v15 = vld [vmem:[%s2616_s1 + $0x60] sm:$0xff] (!%p140_p2)   ;;  %v2147_v16 = vld [vmem:[%s2616_s1 + $0x68] sm:$0xff] (!%p140_p2)   ;;  %v2148_v17 = vld [vmem:[%s2616_s1 + $0x70] sm:$0xff] (!%p140_p2)  }
   0xa   : > { %v2149_v18 = vld [vmem:[%s2616_s1 + $0x78] sm:$0xff] (!%p140_p2)   ;;  %v2156_v20 = vld [vmem:[%s2616_s1 + $0x80] sm:$0xff] (!%p140_p2)   ;;  %v2157_v22 = vld [vmem:[%s2616_s1 + $0x88] sm:$0xff] (!%p140_p2)  }
   0xb   : > { %860 = vmatpush1.bf16.msra.mxu0 (!%p140_p2), %v2135_v2  ;;  %2109 = vmatpush1.bf16.msra.mxu1 (!%p140_p2), %v2135_v2  ;;  %v2164_v25 = vld [vmem:[%s2616_s1 + $0x90] sm:$0xff] (!%p140_p2)   ;;  %v2171_v30 = vld [vmem:[%s2616_s1 + $0x98] sm:$0xff] (!%p140_p2)   ;;  %v2178_v31 = vld [vmem:[%s2616_s1 + $0xa0] sm:$0xff] (!%p140_p2)  }
   0xc   : > { %861 = vmatprep.subr.bf16.mxu0 (!%p140_p2), %v2262_v1  ;;  %2094 = vmatprep.subr.bf16.mxu1 (!%p140_p2), %v2262_v1  ;;  %v2179_v36 = vld [vmem:[%s2616_s1 + $0xa8] sm:$0xff] (!%p140_p2)   ;;  %v2186_v37 = vld [vmem:[%s2616_s1 + $0xb0] sm:$0xff] (!%p140_p2)   ;;  %v2193_v42 = vld [vmem:[%s2616_s1 + $0xb8] sm:$0xff] (!%p140_p2)  }
   0xd   : > { %s2620_s16 = smov (!%p165_p3, %s164_s16), 143 }
   0xe   : > { %s2124_s23 = smul.u32 12, %s2620_s16  ;;  %s1657_s19 = sshll.u32 %s2620_s16, 2 }
   0xf   : > { %862 = vmatpush1.bf16.msra.mxu0 %v2136_v3  ;;  %2110 = vmatpush1.bf16.msra.mxu1 %v2136_v3  ;;  %s2520_s22 = scalar_lea.vmem %s2618_s3, %s1657_s19 }
  0x10   : > { %863 = vmatprep.subr.bf16.mxu0 %v2262_v1  ;;  %2095 = vmatprep.subr.bf16.mxu1 %v2262_v1  ;;  %s2320_s28 = scalar_lea.vmem %s2615_s0, %s2124_s23 }
  0x11   : > { %v2152_v6 = vld [vmem:[%s2320_s28 + $0x4] ss:$12 sps:$4 sm:$0xff]   ;;  %v2155_v8 = vld [vmem:[%s2320_s28 + $0x1b4] ss:$12 sps:$4 sm:$0xff]   ;;  %v2158_v23 = vld [vmem:[%s2320_s28 + $0x1c] ss:$12 sps:$4 sm:$0xff]  }
  0x12   : > { %889 = vmatprep.mubr.bf16.mxu0 %v2152_v6  ;;  %1033 = vmatprep.mubr.bf16.mxu1 %v2155_v8  ;;  %v2150_v19 = vld [vmem:[%s2320_s28] ss:$12 sps:$4 sm:$0xff]   ;;  %v2153_v21 = vld [vmem:[%s2320_s28 + $0x1b0] ss:$12 sps:$4 sm:$0xff]   ;;  %v2162_v26 = vld [vmem:[%s2320_s28 + $0x18] ss:$12 sps:$4 sm:$0xff]  }
  0x13   : > { %864 = vmatpush1.bf16.msra.mxu0 %v2137_v4  ;;  %2111 = vmatpush1.bf16.msra.mxu1 %v2137_v4  ;;  %v2160_v24 = vld [vmem:[%s2320_s28 + $0x1cc] ss:$12 sps:$4 sm:$0xff]   ;;  %v2163_v27 = vld [vmem:[%s2320_s28 + $0x1c8] ss:$12 sps:$4 sm:$0xff]   ;;  %v2167_v29 = vld [vmem:[%s2320_s28 + $0x1e4] ss:$12 sps:$4 sm:$0xff]  }
  0x14   : > { %865 = vmatprep.subr.bf16.mxu0 %v2262_v1  ;;  %2096 = vmatprep.subr.bf16.mxu1 %v2262_v1  ;;  %v2165_v28 = vld [vmem:[%s2320_s28 + $0x34] ss:$12 sps:$4 sm:$0xff]   ;;  %v2169_v32 = vld [vmem:[%s2320_s28 + $0x30] ss:$12 sps:$4 sm:$0xff]   ;;  %v2172_v34 = vld [vmem:[%s2320_s28 + $0x4c] ss:$12 sps:$4 sm:$0xff]  }
  0x15   : > { %v2170_v33 = vld [vmem:[%s2320_s28 + $0x1e0] ss:$12 sps:$4 sm:$0xff]   ;;  %v2174_v35 = vld [vmem:[%s2320_s28 + $0x1fc] ss:$12 sps:$4 sm:$0xff]   ;;  %v2177_v39 = vld [vmem:[%s2320_s28 + $0x1f8] ss:$12 sps:$4 sm:$0xff]  }
  0x16   : > { %v2176_v38 = vld [vmem:[%s2320_s28 + $0x48] ss:$12 sps:$4 sm:$0xff]   ;;  %v2180_v40 = vld [vmem:[%s2320_s28 + $0x64] ss:$12 sps:$4 sm:$0xff]   ;;  %v2184_v43 = vld [vmem:[%s2320_s28 + $0x60] ss:$12 sps:$4 sm:$0xff]  }
  0x17   : > { %866 = vmatpush1.bf16.msra.mxu0 %v2138_v5  ;;  %2112 = vmatpush1.bf16.msra.mxu1 %v2138_v5  ;;  %v2182_v41 = vld [vmem:[%s2320_s28 + $0x214] ss:$12 sps:$4 sm:$0xff]   ;;  %v2185_v44 = vld [vmem:[%s2320_s28 + $0x210] ss:$12 sps:$4 sm:$0xff]   ;;  %v2189_v46 = vld [vmem:[%s2320_s28 + $0x22c] ss:$12 sps:$4 sm:$0xff]  }
  0x18   : > { %867 = vmatprep.subr.bf16.mxu0 %v2262_v1  ;;  %2097 = vmatprep.subr.bf16.mxu1 %v2262_v1  ;;  %v2187_v45 = vld [vmem:[%s2320_s28 + $0x7c] ss:$12 sps:$4 sm:$0xff]   ;;  %v2191_v47 = vld [vmem:[%s2320_s28 + $0x78] ss:$12 sps:$4 sm:$0xff]   ;;  %v2194_v49 = vld [vmem:[%s2320_s28 + $0x94] ss:$12 sps:$4 sm:$0xff]  }
  0x19   : > { %v2192_v48 = vld [vmem:[%s2320_s28 + $0x228] ss:$12 sps:$4 sm:$0xff]   ;;  %v2197_v51 = vld [vmem:[%s2320_s28 + $0x90] ss:$12 sps:$4 sm:$0xff]   ;;  %v2198_v52 = vld [vmem:[%s2320_s28 + $0x20] ss:$12 sps:$4 sm:$0xff]  }
  0x1a   : > { %v2196_v50 = vld [vmem:[%s2320_s28 + $0x8] ss:$12 sps:$4 sm:$0xff]   ;;  %v2199_v53 = vld [vmem:[%s2320_s28 + $0xac] ss:$12 sps:$4 sm:$0xff]   ;;  %v2203_v56 = vld [vmem:[%s2320_s28 + $0x50] ss:$12 sps:$4 sm:$0xff]  }
  0x1b   : > { %868 = vmatpush1.bf16.msra.mxu0 %v2139_v7  ;;  %2113 = vmatpush1.bf16.msra.mxu1 %v2139_v7  ;;  %v2201_v54 = vld [vmem:[%s2320_s28 + $0x38] ss:$12 sps:$4 sm:$0xff]   ;;  %v2202_v55 = vld [vmem:[%s2320_s28 + $0xa8] ss:$12 sps:$4 sm:$0xff]   ;;  %v2207_v59 = vld [vmem:[%s2320_s28 + $0xc0] ss:$12 sps:$4 sm:$0xff]  }
  0x1c   : > { %869 = vmatprep.subr.bf16.mxu0 %v2262_v1  ;;  %2098 = vmatprep.subr.bf16.mxu1 %v2262_v1  ;;  %v2204_v57 = vld [vmem:[%s2320_s28 + $0xc4] ss:$12 sps:$4 sm:$0xff]   ;;  %v2206_v58 = vld [vmem:[%s2320_s28 + $0x68] ss:$12 sps:$4 sm:$0xff]   ;;  %v2208_v60 = vld [vmem:[%s2320_s28 + $0x80] ss:$12 sps:$4 sm:$0xff]  }
  0x1d   : > { %v2209_v61 = vld [vmem:[%s2320_s28 + $0xdc] ss:$12 sps:$4 sm:$0xff]   ;;  %v2211_v62 = vld [vmem:[%s2320_s28 + $0x98] ss:$12 sps:$4 sm:$0xff]   ;;  %v2218_v4 = vld [vmem:[%s2320_s28 + $0xe0] ss:$12 sps:$4 sm:$0xff]  }
  0x1e   : > { %v2212_v63 = vld [vmem:[%s2320_s28 + $0xd8] ss:$12 sps:$4 sm:$0xff]   ;;  %v2213_v0 = vld [vmem:[%s2320_s28 + $0xb0] ss:$12 sps:$4 sm:$0xff]   ;;  %v2216_v2 = vld [vmem:[%s2320_s28 + $0xc8] ss:$12 sps:$4 sm:$0xff]  }
  0x1f   : > { %870 = vmatpush1.bf16.msra.mxu0 %v2140_v9  ;;  %2114 = vmatpush1.bf16.msra.mxu1 %v2140_v9  ;;  %v2217_v3 = vld [vmem:[%s2320_s28 + $0xf0] ss:$12 sps:$4 sm:$0xff]   ;;  %v2219_v5 = vld [vmem:[%s2320_s28 + $0x10c] ss:$12 sps:$4 sm:$0xff]   ;;  %v2222_v7 = vld [vmem:[%s2320_s28 + $0x108] ss:$12 sps:$4 sm:$0xff]  }
  0x20   : > { %871 = vmatprep.subr.bf16.mxu0 %v2262_v1  ;;  %2099 = vmatprep.subr.bf16.mxu1 %v2262_v1  ;;  %v2221_v6 = vld [vmem:[%s2320_s28 + $0xf8] ss:$12 sps:$4 sm:$0xff]   ;;  %v2223_v8 = vld [vmem:[%s2320_s28 + $0x110] ss:$12 sps:$4 sm:$0xff]  }
  0x21   : > { %v2224_v9 = vld [vmem:[%s2320_s28 + $0x124] ss:$12 sps:$4 sm:$0xff]  }
  0x23   : > { %872 = vmatpush1.bf16.msra.mxu0 %v2141_v10  ;;  %2115 = vmatpush1.bf16.msra.mxu1 %v2141_v10  ;;  %v2226_v10 = vld [vmem:[%s2320_s28 + $0x128] ss:$12 sps:$4 sm:$0xff]  }
  0x24   : > { %873 = vmatprep.subr.bf16.mxu0 %v2262_v1  ;;  %2100 = vmatprep.subr.bf16.mxu1 %v2262_v1 }
  0x27   : > { %874 = vmatpush1.bf16.msra.mxu0 %v2142_v11  ;;  %2116 = vmatpush1.bf16.msra.mxu1 %v2142_v11  ;;  %v2227_v11 = vld [vmem:[%s2320_s28 + $0x120] ss:$12 sps:$4 sm:$0xff]  }
  0x28   : > { %875 = vmatprep.subr.bf16.mxu0 %v2262_v1  ;;  %2101 = vmatprep.subr.bf16.mxu1 %v2262_v1 }
  0x2b   : > { %876 = vmatpush1.bf16.msra.mxu0 %v2143_v12  ;;  %2117 = vmatpush1.bf16.msra.mxu1 %v2143_v12  ;;  %v2228_v12 = vld [vmem:[%s2320_s28 + $0x140] ss:$12 sps:$4 sm:$0xff]  }
  0x2c   : > { %877 = vmatprep.subr.bf16.mxu0 %v2262_v1  ;;  %2102 = vmatprep.subr.bf16.mxu1 %v2262_v1 }
  0x2f   : > { %878 = vmatpush1.bf16.msra.mxu0 %v2144_v13  ;;  %2118 = vmatpush1.bf16.msra.mxu1 %v2144_v13  ;;  %v2229_v13 = vld [vmem:[%s2320_s28 + $0x13c] ss:$12 sps:$4 sm:$0xff]  }
  0x30   : > { %879 = vmatprep.subr.bf16.mxu0 %v2262_v1  ;;  %2103 = vmatprep.subr.bf16.mxu1 %v2262_v1 }
  0x33   : > { %880 = vmatpush1.bf16.msra.mxu0 %v2145_v14  ;;  %2119 = vmatpush1.bf16.msra.mxu1 %v2145_v14  ;;  %v2231_v14 = vld [vmem:[%s2320_s28 + $0x158] ss:$12 sps:$4 sm:$0xff]  }
  0x34   : > { %881 = vmatprep.subr.bf16.mxu0 %v2262_v1  ;;  %2104 = vmatprep.subr.bf16.mxu1 %v2262_v1 }
  0x37   : > { %882 = vmatpush1.bf16.msra.mxu0 %v2146_v15  ;;  %2120 = vmatpush1.bf16.msra.mxu1 %v2146_v15  ;;  %v2232_v15 = vld [vmem:[%s2320_s28 + $0x138] ss:$12 sps:$4 sm:$0xff]  }
  0x38   : > { %883 = vmatprep.subr.bf16.mxu0 %v2262_v1  ;;  %2105 = vmatprep.subr.bf16.mxu1 %v2262_v1 }
  0x3b   : > { %884 = vmatpush1.bf16.msra.mxu0 %v2147_v16  ;;  %2121 = vmatpush1.bf16.msra.mxu1 %v2147_v16  ;;  %v2233_v16 = vld [vmem:[%s2320_s28 + $0x170] ss:$12 sps:$4 sm:$0xff]  }
  0x3c   : > { %885 = vmatprep.subr.bf16.mxu0 %v2262_v1  ;;  %2106 = vmatprep.subr.bf16.mxu1 %v2262_v1 }
  0x3f   : > { %886 = vmatpush1.bf16.msra.mxu0 %v2148_v17  ;;  %2122 = vmatpush1.bf16.msra.mxu1 %v2148_v17  ;;  %v2234_v17 = vld [vmem:[%s2320_s28 + $0x154] ss:$12 sps:$4 sm:$0xff]  }
  0x40   : > { %887 = vmatprep.subr.bf16.mxu0 %v2262_v1  ;;  %2107 = vmatprep.subr.bf16.mxu1 %v2262_v1  ;;  %v2214_v1 = vld [vmem:[%s2320_s28 + $0xf4] ss:$12 sps:$4 sm:$0xff]  }
  0x43   : > { %888 = vmatpush1.bf16.msra.mxu0 %v2149_v18  ;;  %2123 = vmatpush1.bf16.msra.mxu1 %v2149_v18  ;;  %v2236_v18 = vld [vmem:[%s2320_s28 + $0x188] ss:$12 sps:$4 sm:$0xff]  }
  0x44   : > { %2028 = vmatprep.subr.bf16.mxu1 %v2156_v20 }
  0x46   : > { %890 = vmatmul.mubr.bf16.vlgmr.msra.gmra.mrb[0].mxu0 %v2150_v19  ;;  %1034 = vmatmul.mubr.bf16.vlgmr.msra.gmra.mrb[0].mxu1 %v2153_v21  ;;  %v2237_v19 = vld [vmem:[%s2320_s28 + $0x150] ss:$12 sps:$4 sm:$0xff]   ;;  %v2239_v21 = vld [vmem:[%s2320_s28 + $0x16c] ss:$12 sps:$4 sm:$0xff]  }
  0x47   : > { %2029 = vmatpush3.bf16.msra.mxu1 %v2156_v20  ;;  %897 = vmatprep.mubr.bf16.mxu0 %v2158_v23  ;;  %v2238_v20 = vld [vmem:[%s2320_s28 + $0x1a0] ss:$12 sps:$4 sm:$0xff]   ;;  %v2242_v23 = vld [vmem:[%s2320_s28 + $0x168] ss:$12 sps:$4 sm:$0xff]  }
  0x48   : > { %2030 = vmatprep.subr.bf16.mxu1 %v2157_v22  ;;  %1041 = vmatprep.mubr.bf16.mxu1 %v2160_v24  ;;  %v2243_v24 = vld [vmem:[%s2320_s28 + $0x1d0] ss:$12 sps:$4 sm:$0xff]  }
  0x4b   : > { %2031 = vmatpush3.bf16.msra.mxu1 %v2157_v22  ;;  %v2241_v22 = vld [vmem:[%s2320_s28 + $0x1b8] ss:$12 sps:$4 sm:$0xff]  }
  0x4c   : > { %2032 = vmatprep.subr.bf16.mxu1 %v2164_v25 }
  0x4e   : > { %898 = vmatmul.mubr.bf16.gmra.mrb[4].mxu0 %v2162_v26  ;;  %1042 = vmatmul.mubr.bf16.gmra.mrb[4].mxu1 %v2163_v27  ;;  %v2246_v26 = vld [vmem:[%s2320_s28 + $0x1e8] ss:$12 sps:$4 sm:$0xff]   ;;  %v2247_v27 = vld [vmem:[%s2320_s28 + $0x180] ss:$12 sps:$4 sm:$0xff]  }
  0x4f   : > { %2033 = vmatpush3.bf16.msra.mxu1 %v2164_v25  ;;  %905 = vmatprep.mubr.bf16.mxu0 %v2165_v28  ;;  %v2244_v25 = vld [vmem:[%s2320_s28 + $0x184] ss:$12 sps:$4 sm:$0xff]   ;;  %v2248_v28 = vld [vmem:[%s2320_s28 + $0x200] ss:$12 sps:$4 sm:$0xff]  }
  0x50   : > { %1049 = vmatprep.mubr.bf16.mxu1 %v2167_v29  ;;  %2034 = vmatprep.subr.bf16.mxu1 %v2171_v30  ;;  %v2249_v29 = vld [vmem:[%s2320_s28 + $0x19c] ss:$12 sps:$4 sm:$0xff]  }
  0x53   : > { %2035 = vmatpush3.bf16.msra.mxu1 %v2171_v30  ;;  %v2251_v30 = vld [vmem:[%s2320_s28 + $0x218] ss:$12 sps:$4 sm:$0xff]  }
  0x54   : > { %2036 = vmatprep.subr.bf16.mxu1 %v2178_v31 }
  0x56   : > { %906 = vmatmul.mubr.bf16.gmra.mrb[8].mxu0 %v2169_v32  ;;  %1050 = vmatmul.mubr.bf16.gmra.mrb[8].mxu1 %v2170_v33  ;;  %v2253_v32 = vld [vmem:[%s2320_s28 + $0x230] ss:$12 sps:$4 sm:$0xff]  }
  0x57   : > { %913 = vmatprep.mubr.bf16.mxu0 %v2172_v34  ;;  %1057 = vmatprep.mubr.bf16.mxu1 %v2174_v35 }
  0x58   : > { %2037 = vmatpush3.bf16.msra.mxu1 %v2178_v31  ;;  %v2252_v31 = vld [vmem:[%s2320_s28 + $0x198] ss:$12 sps:$4 sm:$0xff]  }
  0x59   : > { %2038 = vmatprep.subr.bf16.mxu1 %v2179_v36 }
  0x5c   : > { %2039 = vmatpush3.bf16.msra.mxu1 %v2179_v36 }
  0x5d   : > { %2040 = vmatprep.subr.bf16.mxu1 %v2186_v37 }
  0x5e   : > { %914 = vmatmul.mubr.bf16.gmra.mrb[12].mxu0 %v2176_v38  ;;  %1058 = vmatmul.mubr.bf16.gmra.mrb[12].mxu1 %v2177_v39 }
  0x5f   : > { %921 = vmatprep.mubr.bf16.mxu0 %v2180_v40  ;;  %1065 = vmatprep.mubr.bf16.mxu1 %v2182_v41 }
  0x60   : > { %2041 = vmatpush3.bf16.msra.mxu1 %v2186_v37 }
  0x61   : > { %2042 = vmatprep.subr.bf16.mxu1 %v2193_v42 }
  0x64   : > { %2043 = vmatpush3.bf16.msra.mxu1 %v2193_v42 }
  0x66   : > { %922 = vmatmul.mubr.bf16.gmra.mrb[16].mxu0 %v2184_v43  ;;  %1066 = vmatmul.mubr.bf16.gmra.mrb[16].mxu1 %v2185_v44 }
  0x67   : > { %929 = vmatprep.mubr.bf16.mxu0 %v2187_v45  ;;  %1073 = vmatprep.mubr.bf16.mxu1 %v2189_v46 }
  0x6e   : > { %930 = vmatmul.mubr.bf16.gmra.mrb[20].mxu0 %v2191_v47  ;;  %1074 = vmatmul.mubr.bf16.gmra.mrb[20].mxu1 %v2192_v48 }
  0x6f   : > { %937 = vmatprep.mubr.bf16.mxu0 %v2194_v49  ;;  %2044 = vmatprep.mubr.bf16.mxu1 %v2196_v50 }
  0x76   : > { %938 = vmatmul.mubr.bf16.gmra.mrb[24].mxu0 %v2197_v51  ;;  %2045 = vmatmul.mubr.bf16.vlgmr.msra.gmra.mrb[24].mxu1 %v2198_v52 }
  0x77   : > { %945 = vmatprep.mubr.bf16.mxu0 %v2199_v53  ;;  %2048 = vmatprep.mubr.bf16.mxu1 %v2201_v54 }
  0x7e   : > { %946 = vmatmul.mubr.bf16.gmra.mrb[28].mxu0 %v2202_v55  ;;  %2049 = vmatmul.mubr.bf16.gmra.mrb[28].mxu1 %v2203_v56 }
  0x7f   : > { %953 = vmatprep.mubr.bf16.mxu0 %v2204_v57  ;;  %2052 = vmatprep.mubr.bf16.mxu1 %v2206_v58 }
  0x86   : > { %954 = vmatmul.mubr.bf16.gmra.mrb[32].mxu0 %v2207_v59  ;;  %2053 = vmatmul.mubr.bf16.gmra.mrb[32].mxu1 %v2208_v60 }
  0x87   : > { %961 = vmatprep.mubr.bf16.mxu0 %v2209_v61  ;;  %2056 = vmatprep.mubr.bf16.mxu1 %v2211_v62 }
  0x8e   : > { %962 = vmatmul.mubr.bf16.gmra.mrb[36].mxu0 %v2212_v63  ;;  %2057 = vmatmul.mubr.bf16.gmra.mrb[36].mxu1 %v2213_v0 }
  0x8f   : > { %969 = vmatprep.mubr.bf16.mxu0 %v2214_v1  ;;  %2060 = vmatprep.mubr.bf16.mxu1 %v2216_v2 }
  0x96   : > { %970 = vmatmul.mubr.bf16.gmra.mrb[40].mxu0 %v2217_v3  ;;  %2061 = vmatmul.mubr.bf16.gmra.mrb[40].mxu1 %v2218_v4 }
  0x97   : > { %977 = vmatprep.mubr.bf16.mxu0 %v2219_v5  ;;  %2064 = vmatprep.mubr.bf16.mxu1 %v2221_v6 }
  0x9e   : > { %978 = vmatmul.mubr.bf16.gmra.mrb[44].mxu0 %v2222_v7  ;;  %2065 = vmatmul.mubr.bf16.gmra.mrb[44].mxu1 %v2223_v8 }
  0x9f   : > { %985 = vmatprep.mubr.bf16.mxu0 %v2224_v9  ;;  %2068 = vmatprep.mubr.bf16.mxu1 %v2226_v10 }
  0xa6   : > { %986 = vmatmul.mubr.bf16.gmra.mrb[48].mxu0 %v2227_v11  ;;  %2069 = vmatmul.mubr.bf16.gmra.mrb[48].mxu1 %v2228_v12 }
  0xa7   : > { %993 = vmatprep.mubr.bf16.mxu0 %v2229_v13  ;;  %2072 = vmatprep.mubr.bf16.mxu1 %v2231_v14 }
  0xae   : > { %994 = vmatmul.mubr.bf16.gmra.mrb[52].mxu0 %v2232_v15  ;;  %2073 = vmatmul.mubr.bf16.gmra.mrb[52].mxu1 %v2233_v16 }
  0xaf   : > { %1001 = vmatprep.mubr.bf16.mxu0 %v2234_v17  ;;  %2076 = vmatprep.mubr.bf16.mxu1 %v2236_v18  ;;  %v2506_v17 = vld [vmem:[%s2617_s2] ss:$0 sm:$0xff] }
  0xb6   : > { %1002 = vmatmul.mubr.bf16.gmra.mrb[56].mxu0 %v2237_v19  ;;  %2077 = vmatmul.mubr.bf16.gmra.mrb[56].mxu1 %v2238_v20 }
  0xb7   : > { %1009 = vmatprep.mubr.bf16.mxu0 %v2239_v21  ;;  %2080 = vmatprep.mubr.bf16.mxu1 %v2241_v22 }
  0xbe   : > { %1010 = vmatmul.mubr.bf16.gmra.mrb[60].mxu0 %v2242_v23  ;;  %2081 = vmatmul.mubr.bf16.gmra.mrb[60].mxu1 %v2243_v24 }
  0xbf   : > { %1017 = vmatprep.mubr.bf16.mxu0 %v2244_v25  ;;  %2084 = vmatprep.mubr.bf16.mxu1 %v2246_v26 }
  0xc6   : > { %1018 = vmatmul.mubr.bf16.gmra.mrb[64].mxu0 %v2247_v27  ;;  %2085 = vmatmul.mubr.bf16.gmra.mrb[64].mxu1 %v2248_v28 }
  0xc7   : > { %1025 = vmatprep.mubr.bf16.mxu0 %v2249_v29  ;;  %2088 = vmatprep.mubr.bf16.mxu1 %v2251_v30 }
  0xce   : > { %1026 = vmatmul.mubr.bf16.gmra.mrb[68].mxu0 %v2252_v31  ;;  %2089 = vmatmul.mubr.bf16.gmra.mrb[68].mxu1 %v2253_v32 }
 0x119   : > { %v891_v33 = vpop.f32.mrb[0].mxu0  ;;  %v2475_v34 = vpop.f32.mrb[0].mxu1 }
 0x11a   : > { %v893_v35 = vpop.f32.mrb[1].mxu0  ;;  %v1037_v36 = vpop.f32.mrb[1].mxu1  ;;  %v892_v19 = vadd.f32 %v2506_v17, %v891_v33 }
 0x11b   : > { %v894_v37 = vpop.f32.mrb[2].mxu0  ;;  %v2477_v38 = vpop.f32.mrb[2].mxu1 }
 0x11c   : > { %v896_v39 = vpop.f32.mrb[3].mxu0  ;;  %v1040_v40 = vpop.f32.mrb[3].mxu1  ;;  %v895_v26 = vadd.f32 %v2506_v17, %v894_v37 }
 0x121   : > { %v899_v41 = vpop.f32.mrb[4].mxu0  ;;  %v2479_v42 = vpop.f32.mrb[4].mxu1 }
 0x122   : > { %v901_v43 = vpop.f32.mrb[5].mxu0  ;;  %v1045_v44 = vpop.f32.mrb[5].mxu1  ;;  %v900_v18 = vadd.f32 %v2506_v17, %v899_v41 }
 0x123   : > { %v902_v45 = vpop.f32.mrb[6].mxu0  ;;  %v2481_v46 = vpop.f32.mrb[6].mxu1 }
 0x124   : > { %v904_v47 = vpop.f32.mrb[7].mxu0  ;;  %v1048_v48 = vpop.f32.mrb[7].mxu1  ;;  %v903_v22 = vadd.f32 %v2506_v17, %v902_v45 }
 0x129   : > { %v907_v49 = vpop.f32.mrb[8].mxu0  ;;  %v2483_v50 = vpop.f32.mrb[8].mxu1 }
 0x12a   : > { %v909_v51 = vpop.f32.mrb[9].mxu0  ;;  %v1053_v52 = vpop.f32.mrb[9].mxu1  ;;  %v908_v43 = vadd.f32 %v2506_v17, %v907_v49 }
 0x12b   : > { %v910_v53 = vpop.f32.mrb[10].mxu0  ;;  %v2485_v54 = vpop.f32.mrb[10].mxu1 }
 0x12c   : > { %v912_v55 = vpop.f32.mrb[11].mxu0  ;;  %v1056_v56 = vpop.f32.mrb[11].mxu1 }
 0x12d   : > { %v911_v56 = vadd.f32 %v2506_v17, %v910_v53 }
 0x131   : > { %v915_v57 = vpop.f32.mrb[12].mxu0  ;;  %v2487_v58 = vpop.f32.mrb[12].mxu1 }
 0x132   : > { %v917_v59 = vpop.f32.mrb[13].mxu0  ;;  %v1061_v60 = vpop.f32.mrb[13].mxu1  ;;  %v916_v40 = vadd.f32 %v2506_v17, %v915_v57 }
 0x133   : > { %v918_v61 = vpop.f32.mrb[14].mxu0  ;;  %v2489_v62 = vpop.f32.mrb[14].mxu1 }
 0x134   : > { %v920_v63 = vpop.f32.mrb[15].mxu0  ;;  %v1064_v0 = vpop.f32.mrb[15].mxu1  ;;  %v919_v48 = vadd.f32 %v2506_v17, %v918_v61 }
 0x139   : > { %v2491_v1 = vpop.f32.mrb[16].mxu0  ;;  %v2493_v2 = vpop.f32.mrb[16].mxu1 }
 0x13a   : > { %v925_v3 = vpop.f32.mrb[17].mxu0  ;;  %v1069_v4 = vpop.f32.mrb[17].mxu1  ;;  %v924_v53 = vadd.f32 %v2506_v17, %v2491_v1 }
 0x13b   : > { %v2495_v5 = vpop.f32.mrb[18].mxu0  ;;  %v2497_v6 = vpop.f32.mrb[18].mxu1 }
 0x13c   : > { %v928_v7 = vpop.f32.mrb[19].mxu0  ;;  %v1072_v8 = vpop.f32.mrb[19].mxu1 }
 0x141   : > { %v931_v9 = vpop.f32.mrb[20].mxu0  ;;  %v2499_v10 = vpop.f32.mrb[20].mxu1 }
 0x142   : > { %v933_v11 = vpop.f32.mrb[21].mxu0  ;;  %v1077_v12 = vpop.f32.mrb[21].mxu1 }
 0x143   : > { %v934_v13 = vpop.f32.mrb[22].mxu0  ;;  %v2501_v14 = vpop.f32.mrb[22].mxu1  ;;  %v932_v11 = vadd.f32 %v2506_v17, %v931_v9 }
 0x144   : > { %v936_v15 = vpop.f32.mrb[23].mxu0  ;;  %v1080_v16 = vpop.f32.mrb[23].mxu1 }
 0x149   : > { %v2510_v20 = vpop.f32.mrb[24].mxu0  ;;  %v2046_v21 = vpop.f32.mrb[24].mxu1 }
 0x14a   : > { %v1125_v23 = vadd.f32 %v2046_v21, %v900_v18  ;;  %v941_v24 = vpop.f32.mrb[25].mxu0  ;;  %v1116_v25 = vpop.f32.mrb[25].mxu1 }
 0x14b   : > { %v1117_v27 = vadd.f32 %v1116_v25, %v892_v19  ;;  %v2514_v28 = vpop.f32.mrb[26].mxu0  ;;  %v2047_v29 = vpop.f32.mrb[26].mxu1  ;;  %v935_v19 = vadd.f32 %v2506_v17, %v934_v13  ;;  %v927_v24 = vadd.f32 %v2506_v17, %v2495_v5  ;;  %v940_v5 = vadd.f32 %v2506_v17, %v2510_v20 }
 0x14c   : > { %v1128_v30 = vadd.f32 %v2047_v29, %v903_v22  ;;  %v944_v31 = vpop.f32.mrb[27].mxu0  ;;  %v1119_v32 = vpop.f32.mrb[27].mxu1  ;;  %v1309_v33 = vmax.f32 %v1125_v23, 0.0 }
 0x14d   : > { %v1120_v35 = vadd.f32 %v1119_v32, %v895_v26  ;;  %v1307_v39 = vmax.f32 %v1117_v27, 0.0 }
 0x14e   : > { %v1310_v36 = vmax.f32 %v1128_v30, 0.0 }
 0x14f   : > { %v1308_v37 = vmax.f32 %v1120_v35, 0.0 }
 0x150   : > { %v1861_v41 = vpack.c.bf16 %v1310_v36, %v1309_v33 }
 0x151   : > { %v1856_v44 = vpack.c.bf16 %v1308_v37, %v1307_v39  ;;  %v947_v45 = vpop.f32.mrb[28].mxu0  ;;  %v2050_v47 = vpop.f32.mrb[28].mxu1 }
 0x152   : > { %1973 = vst [vmem:[%s2520_s22 + $0x8] sm:$0xff] %v1861_v41   ;;  %v1141_v51 = vadd.f32 %v2050_v47, %v916_v40  ;;  %v949_v52 = vpop.f32.mrb[29].mxu0  ;;  %v1132_v55 = vpop.f32.mrb[29].mxu1  ;;  %v948_v33 = vadd.f32 %v2506_v17, %v947_v45 }
 0x153   : > { %1857 = vst [vmem:[%s2520_s22] sm:$0xff] %v1856_v44   ;;  %v1133_v59 = vadd.f32 %v1132_v55, %v908_v43  ;;  %v950_v60 = vpop.f32.mrb[30].mxu0  ;;  %v2051_v63 = vpop.f32.mrb[30].mxu1 }
 0x154   : > { %v1144_v57 = vadd.f32 %v2051_v63, %v919_v48  ;;  %v952_v0 = vpop.f32.mrb[31].mxu0  ;;  %v1135_v3 = vpop.f32.mrb[31].mxu1  ;;  %v1313_v4 = vmax.f32 %v1141_v51, 0.0  ;;  %v951_v41 = vadd.f32 %v2506_v17, %v950_v60  ;;  %v943_v48 = vadd.f32 %v2506_v17, %v2514_v28 }
 0x155   : > { %v1136_v49 = vadd.f32 %v1135_v3, %v911_v56  ;;  %v1311_v8 = vmax.f32 %v1133_v59, 0.0 }
 0x156   : > { %v1314_v7 = vmax.f32 %v1144_v57, 0.0 }
 0x157   : > { %v1312_v61 = vmax.f32 %v1136_v49, 0.0 }
 0x158   : > { %v1871_v12 = vpack.c.bf16 %v1314_v7, %v1313_v4 }
 0x159   : > { %v1866_v15 = vpack.c.bf16 %v1312_v61, %v1311_v8  ;;  %v955_v16 = vpop.f32.mrb[32].mxu0  ;;  %v2054_v18 = vpop.f32.mrb[32].mxu1 }
 0x15a   : > { %1975 = vst [vmem:[%s2520_s22 + $0x18] sm:$0xff] %v1871_v12   ;;  %v1157_v21 = vadd.f32 %v2054_v18, %v932_v11  ;;  %v957_v22 = vpop.f32.mrb[33].mxu0  ;;  %v1148_v23 = vpop.f32.mrb[33].mxu1  ;;  %v956_v4 = vadd.f32 %v2506_v17, %v955_v16 }
 0x15b   : > { %1974 = vst [vmem:[%s2520_s22 + $0x10] sm:$0xff] %v1866_v15   ;;  %v1149_v25 = vadd.f32 %v1148_v23, %v924_v53  ;;  %v958_v26 = vpop.f32.mrb[34].mxu0  ;;  %v2055_v9 = vpop.f32.mrb[34].mxu1 }
 0x15c   : > { %v1160_v27 = vadd.f32 %v2055_v9, %v935_v19  ;;  %v960_v29 = vpop.f32.mrb[35].mxu0  ;;  %v1151_v1 = vpop.f32.mrb[35].mxu1  ;;  %v1317_v31 = vmax.f32 %v1157_v21, 0.0  ;;  %v959_v15 = vadd.f32 %v2506_v17, %v958_v26 }
 0x15d   : > { %v1152_v30 = vadd.f32 %v1151_v1, %v927_v24  ;;  %v1315_v13 = vmax.f32 %v1149_v25, 0.0 }
 0x15e   : > { %v1318_v32 = vmax.f32 %v1160_v27, 0.0 }
 0x15f   : > { %v1316_v35 = vmax.f32 %v1152_v30, 0.0 }
 0x160   : > { %v1881_v36 = vpack.c.bf16 %v1318_v32, %v1317_v31 }
 0x161   : > { %v1876_v39 = vpack.c.bf16 %v1316_v35, %v1315_v13  ;;  %v963_v37 = vpop.f32.mrb[36].mxu0  ;;  %v2058_v40 = vpop.f32.mrb[36].mxu1 }
 0x162   : > { %1977 = vst [vmem:[%s2520_s22 + $0x28] sm:$0xff] %v1881_v36   ;;  %v1173_v43 = vadd.f32 %v2058_v40, %v948_v33  ;;  %v965_v44 = vpop.f32.mrb[37].mxu0  ;;  %v1164_v47 = vpop.f32.mrb[37].mxu1  ;;  %v964_v3 = vadd.f32 %v2506_v17, %v963_v37 }
 0x163   : > { %1976 = vst [vmem:[%s2520_s22 + $0x20] sm:$0xff] %v1876_v39   ;;  %v1165_v51 = vadd.f32 %v1164_v47, %v940_v5  ;;  %v966_v52 = vpop.f32.mrb[38].mxu0  ;;  %v2059_v45 = vpop.f32.mrb[38].mxu1 }
 0x164   : > { %v1176_v55 = vadd.f32 %v2059_v45, %v951_v41  ;;  %v968_v56 = vpop.f32.mrb[39].mxu0  ;;  %v1167_v20 = vpop.f32.mrb[39].mxu1  ;;  %v1321_v63 = vmax.f32 %v1173_v43, 0.0  ;;  %v967_v61 = vadd.f32 %v2506_v17, %v966_v52 }
 0x165   : > { %v1168_v59 = vadd.f32 %v1167_v20, %v943_v48  ;;  %v1319_v60 = vmax.f32 %v1165_v51, 0.0 }
 0x166   : > { %v1322_v57 = vmax.f32 %v1176_v55, 0.0 }
 0x167   : > { %v1320_v0 = vmax.f32 %v1168_v59, 0.0 }
 0x168   : > { %v1891_v49 = vpack.c.bf16 %v1322_v57, %v1321_v63 }
 0x169   : > { %v1886_v28 = vpack.c.bf16 %v1320_v0, %v1319_v60  ;;  %v971_v7 = vpop.f32.mrb[40].mxu0  ;;  %v2062_v8 = vpop.f32.mrb[40].mxu1 }
 0x16a   : > { %1979 = vst [vmem:[%s2520_s22 + $0x38] sm:$0xff] %v1891_v49   ;;  %v1189_v11 = vadd.f32 %v2062_v8, %v964_v3  ;;  %v973_v12 = vpop.f32.mrb[41].mxu0  ;;  %v1180_v53 = vpop.f32.mrb[41].mxu1  ;;  %v972_v30 = vadd.f32 %v2506_v17, %v971_v7 }
 0x16b   : > { %1978 = vst [vmem:[%s2520_s22 + $0x30] sm:$0xff] %v1886_v28   ;;  %v1181_v18 = vadd.f32 %v1180_v53, %v956_v4  ;;  %v974_v19 = vpop.f32.mrb[42].mxu0  ;;  %v2063_v21 = vpop.f32.mrb[42].mxu1 }
 0x16c   : > { %v1192_v22 = vadd.f32 %v2063_v21, %v967_v61  ;;  %v976_v23 = vpop.f32.mrb[43].mxu0  ;;  %v1183_v24 = vpop.f32.mrb[43].mxu1  ;;  %v1325_v25 = vmax.f32 %v1189_v11, 0.0  ;;  %v975_v36 = vadd.f32 %v2506_v17, %v974_v19 }
 0x16d   : > { %v1184_v16 = vadd.f32 %v1183_v24, %v959_v15  ;;  %v1323_v27 = vmax.f32 %v1181_v18, 0.0 }
 0x16e   : > { %v1326_v9 = vmax.f32 %v1192_v22, 0.0 }
 0x16f   : > { %v1324_v29 = vmax.f32 %v1184_v16, 0.0 }
 0x170   : > { %v1901_v1 = vpack.c.bf16 %v1326_v9, %v1325_v25 }
 0x171   : > { %v1896_v31 = vpack.c.bf16 %v1324_v29, %v1323_v27  ;;  %v979_v32 = vpop.f32.mrb[44].mxu0  ;;  %v2066_v26 = vpop.f32.mrb[44].mxu1 }
 0x172   : > { %1981 = vst [vmem:[%s2520_s22 + $0x48] sm:$0xff] %v1901_v1   ;;  %v980_v13 = vadd.f32 %v2506_v17, %v979_v32  ;;  %v981_v35 = vpop.f32.mrb[45].mxu0  ;;  %v1196_v33 = vpop.f32.mrb[45].mxu1 }
 0x173   : > { %1980 = vst [vmem:[%s2520_s22 + $0x40] sm:$0xff] %v1896_v31   ;;  %v1197_v5 = vadd.f32 %v1196_v33, %v972_v30  ;;  %v982_v39 = vpop.f32.mrb[46].mxu0  ;;  %v2067_v37 = vpop.f32.mrb[46].mxu1 }
 0x174   : > { %v1205_v40 = vadd.f32 %v2066_v26, %v980_v13  ;;  %v983_v41 = vadd.f32 %v2506_v17, %v982_v39  ;;  %v984_v43 = vpop.f32.mrb[47].mxu0  ;;  %v1199_v44 = vpop.f32.mrb[47].mxu1 }
 0x175   : > { %v1200_v47 = vadd.f32 %v1199_v44, %v975_v36  ;;  %v1327_v51 = vmax.f32 %v1197_v5, 0.0  ;;  %v1044_v44 = vadd.f32 %v2506_v17, %v2479_v42  ;;  %v1039_v42 = vadd.f32 %v2506_v17, %v2477_v38 }
 0x176   : > { %v1208_v48 = vadd.f32 %v2067_v37, %v983_v41  ;;  %v1329_v45 = vmax.f32 %v1205_v40, 0.0  ;;  %v1060_v38 = vadd.f32 %v2506_v17, %v2487_v58 }
 0x177   : > { %v1328_v52 = vmax.f32 %v1200_v47, 0.0 }
 0x178   : > { %v1330_v55 = vmax.f32 %v1208_v48, 0.0 }
 0x179   : > { %v1906_v56 = vpack.c.bf16 %v1328_v52, %v1327_v51  ;;  %v987_v20 = vpop.f32.mrb[48].mxu0  ;;  %v2070_v59 = vpop.f32.mrb[48].mxu1  ;;  %v1036_v51 = vadd.f32 %v2506_v17, %v2475_v34 }
 0x17a   : > { %v1911_v63 = vpack.c.bf16 %v1330_v55, %v1329_v45  ;;  %v988_v57 = vadd.f32 %v2506_v17, %v987_v20  ;;  %v989_v60 = vpop.f32.mrb[49].mxu0  ;;  %v1212_v0 = vpop.f32.mrb[49].mxu1  ;;  %v1047_v55 = vadd.f32 %v2506_v17, %v2481_v46 }
 0x17b   : > { %1982 = vst [vmem:[%s2520_s22 + $0x50] sm:$0xff] %v1906_v56   ;;  %v990_v3 = vpop.f32.mrb[50].mxu0  ;;  %v2071_v49 = vpop.f32.mrb[50].mxu1 }
 0x17c   : > { %1983 = vst [vmem:[%s2520_s22 + $0x58] sm:$0xff] %v1911_v63   ;;  %v1213_v4 = vadd.f32 %v1212_v0, %v988_v57  ;;  %v991_v28 = vadd.f32 %v2506_v17, %v990_v3  ;;  %v992_v7 = vpop.f32.mrb[51].mxu0  ;;  %v1215_v8 = vpop.f32.mrb[51].mxu1 }
 0x17e   : > { %v1216_v61 = vadd.f32 %v1215_v8, %v991_v28  ;;  %v1331_v11 = vmax.f32 %v1213_v4, 0.0 }
 0x180   : > { %v1332_v12 = vmax.f32 %v1216_v61, 0.0 }
 0x181   : > { %v995_v53 = vpop.f32.mrb[52].mxu0  ;;  %v2074_v15 = vpop.f32.mrb[52].mxu1 }
 0x182   : > { %v1916_v18 = vpack.c.bf16 %v1332_v12, %v1331_v11  ;;  %v996_v19 = vadd.f32 %v2506_v17, %v995_v53  ;;  %v997_v21 = vpop.f32.mrb[53].mxu0  ;;  %v1228_v22 = vpop.f32.mrb[53].mxu1 }
 0x183   : > { %v998_v23 = vpop.f32.mrb[54].mxu0  ;;  %v2075_v24 = vpop.f32.mrb[54].mxu1 }
 0x184   : > { %1984 = vst [vmem:[%s2520_s22 + $0x60] sm:$0xff] %v1916_v18   ;;  %v1221_v16 = vadd.f32 %v2070_v59, %v996_v19  ;;  %v999_v25 = vadd.f32 %v2506_v17, %v998_v23  ;;  %v1000_v9 = vpop.f32.mrb[55].mxu0  ;;  %v1231_v27 = vpop.f32.mrb[55].mxu1 }
 0x186   : > { %v1224_v29 = vadd.f32 %v2071_v49, %v999_v25  ;;  %v1333_v1 = vmax.f32 %v1221_v16, 0.0 }
 0x188   : > { %v1334_v30 = vmax.f32 %v1224_v29, 0.0 }
 0x189   : > { %v1003_v31 = vpop.f32.mrb[56].mxu0  ;;  %v2563_v32 = vpop.f32.mrb[56].mxu1 }
 0x18a   : > { %v1921_v26 = vpack.c.bf16 %v1334_v30, %v1333_v1  ;;  %v1004_v13 = vadd.f32 %v2506_v17, %v1003_v31  ;;  %v1005_v35 = vpop.f32.mrb[57].mxu0  ;;  %v1244_v33 = vpop.f32.mrb[57].mxu1  ;;  %v1055_v1 = vadd.f32 %v2506_v17, %v2485_v54  ;;  %v1076_v54 = vadd.f32 %v2506_v17, %v2499_v10 }
 0x18b   : > { %v1006_v36 = vpop.f32.mrb[58].mxu0  ;;  %v2566_v5 = vpop.f32.mrb[58].mxu1 }
 0x18c   : > { %1985 = vst [vmem:[%s2520_s22 + $0x68] sm:$0xff] %v1921_v26   ;;  %v1229_v39 = vadd.f32 %v1228_v22, %v1004_v13  ;;  %v1007_v37 = vadd.f32 %v2506_v17, %v1006_v36  ;;  %v1008_v40 = vpop.f32.mrb[59].mxu0  ;;  %v1247_v41 = vpop.f32.mrb[59].mxu1 }
 0x18e   : > { %v1232_v43 = vadd.f32 %v1231_v27, %v1007_v37  ;;  %v1335_v47 = vmax.f32 %v1229_v39, 0.0 }
 0x190   : > { %v1336_v48 = vmax.f32 %v1232_v43, 0.0 }
 0x191   : > { %v1011_v52 = vpop.f32.mrb[60].mxu0  ;;  %v2082_v45 = vpop.f32.mrb[60].mxu1 }
 0x192   : > { %v1926_v56 = vpack.c.bf16 %v1336_v48, %v1335_v47  ;;  %v1012_v20 = vadd.f32 %v2506_v17, %v1011_v52  ;;  %v1269_v59 = vadd.f32 %v2082_v45, %v1044_v44  ;;  %v1013_v63 = vpop.f32.mrb[61].mxu0  ;;  %v1260_v57 = vpop.f32.mrb[61].mxu1 }
 0x193   : > { %v1261_v60 = vadd.f32 %v1260_v57, %v1036_v51  ;;  %v1014_v0 = vpop.f32.mrb[62].mxu0  ;;  %v2083_v3 = vpop.f32.mrb[62].mxu1 }
 0x194   : > { %1986 = vst [vmem:[%s2520_s22 + $0x70] sm:$0xff] %v1926_v56   ;;  %v1237_v49 = vadd.f32 %v2074_v15, %v1012_v20  ;;  %v1015_v34 = vadd.f32 %v2506_v17, %v1014_v0  ;;  %v1272_v4 = vadd.f32 %v2083_v3, %v1047_v55  ;;  %v1016_v28 = vpop.f32.mrb[63].mxu0  ;;  %v1263_v7 = vpop.f32.mrb[63].mxu1  ;;  %v1345_v8 = vmax.f32 %v1269_v59, 0.0 }
 0x195   : > { %v1264_v46 = vadd.f32 %v1263_v7, %v1039_v42  ;;  %v1343_v12 = vmax.f32 %v1261_v60, 0.0  ;;  %v1052_v15 = vadd.f32 %v2506_v17, %v2483_v50  ;;  %v1071_v42 = vadd.f32 %v2506_v17, %v2497_v6 }
 0x196   : > { %v1240_v61 = vadd.f32 %v2075_v24, %v1015_v34  ;;  %v1346_v11 = vmax.f32 %v1272_v4, 0.0  ;;  %v1337_v18 = vmax.f32 %v1237_v49, 0.0  ;;  %v1063_v24 = vadd.f32 %v2506_v17, %v2489_v62 }
 0x197   : > { %v1344_v53 = vmax.f32 %v1264_v46, 0.0 }
 0x198   : > { %v1338_v19 = vmax.f32 %v1240_v61, 0.0  ;;  %v1951_v21 = vpack.c.bf16 %v1346_v11, %v1345_v8 }
 0x199   : > { %v1946_v22 = vpack.c.bf16 %v1344_v53, %v1343_v12  ;;  %v1019_v23 = vpop.f32.mrb[64].mxu0  ;;  %v2086_v16 = vpop.f32.mrb[64].mxu1 }
 0x19a   : > { %v1931_v25 = vpack.c.bf16 %v1338_v19, %v1337_v18  ;;  %1991 = vst [vmem:[%s2520_s22 + $0x98] sm:$0xff] %v1951_v21   ;;  %v1020_v9 = vadd.f32 %v2506_v17, %v1019_v23  ;;  %v1285_v27 = vadd.f32 %v2086_v16, %v1060_v38  ;;  %v1021_v58 = vpop.f32.mrb[65].mxu0  ;;  %v1276_v29 = vpop.f32.mrb[65].mxu1 }
 0x19b   : > { %1990 = vst [vmem:[%s2520_s22 + $0x90] sm:$0xff] %v1946_v22   ;;  %v1277_v30 = vadd.f32 %v1276_v29, %v1052_v15  ;;  %v1022_v50 = vpop.f32.mrb[66].mxu0  ;;  %v2087_v31 = vpop.f32.mrb[66].mxu1 }
 0x19c   : > { %1987 = vst [vmem:[%s2520_s22 + $0x78] sm:$0xff] %v1931_v25   ;;  %v1245_v26 = vadd.f32 %v1244_v33, %v1020_v9  ;;  %v1023_v13 = vadd.f32 %v2506_v17, %v1022_v50  ;;  %v1288_v35 = vadd.f32 %v2087_v31, %v1063_v24  ;;  %v1024_v62 = vpop.f32.mrb[67].mxu0  ;;  %v1279_v36 = vpop.f32.mrb[67].mxu1  ;;  %v1349_v37 = vmax.f32 %v1285_v27, 0.0 }
 0x19d   : > { %v1280_v39 = vadd.f32 %v1279_v36, %v1055_v1  ;;  %v1347_v44 = vmax.f32 %v1277_v30, 0.0  ;;  %v1068_v33 = vadd.f32 %v2506_v17, %v2493_v2 }
 0x19e   : > { %v1248_v40 = vadd.f32 %v1247_v41, %v1023_v13  ;;  %v1350_v43 = vmax.f32 %v1288_v35, 0.0  ;;  %v1339_v48 = vmax.f32 %v1245_v26, 0.0  ;;  %v1079_v41 = vadd.f32 %v2506_v17, %v2501_v14 }
 0x19f   : > { %v1348_v47 = vmax.f32 %v1280_v39, 0.0 }
 0x1a0   : > { %v1340_v51 = vmax.f32 %v1248_v40, 0.0  ;;  %v1961_v52 = vpack.c.bf16 %v1350_v43, %v1349_v37 }
 0x1a1   : > { %v1956_v45 = vpack.c.bf16 %v1348_v47, %v1347_v44  ;;  %v1027_v55 = vpop.f32.mrb[68].mxu0  ;;  %v2090_v56 = vpop.f32.mrb[68].mxu1 }
 0x1a2   : > { %v1936_v20 = vpack.c.bf16 %v1340_v51, %v1339_v48  ;;  %1993 = vst [vmem:[%s2520_s22 + $0xa8] sm:$0xff] %v1961_v52   ;;  %v1028_v59 = vadd.f32 %v2506_v17, %v1027_v55  ;;  %v1301_v63 = vadd.f32 %v2090_v56, %v1076_v54  ;;  %v1029_v10 = vpop.f32.mrb[69].mxu0  ;;  %v1292_v57 = vpop.f32.mrb[69].mxu1 }
 0x1a3   : > { %1992 = vst [vmem:[%s2520_s22 + $0xa0] sm:$0xff] %v1956_v45   ;;  %v1293_v60 = vadd.f32 %v1292_v57, %v1068_v33  ;;  %v1030_v2 = vpop.f32.mrb[70].mxu0  ;;  %v2091_v0 = vpop.f32.mrb[70].mxu1 }
 0x1a4   : > { %1988 = vst [vmem:[%s2520_s22 + $0x80] sm:$0xff] %v1936_v20   ;;  %v1253_v3 = vadd.f32 %v2563_v32, %v1028_v59  ;;  %v1031_v14 = vadd.f32 %v2506_v17, %v1030_v2  ;;  %v1304_v49 = vadd.f32 %v2091_v0, %v1079_v41  ;;  %v1032_v34 = vpop.f32.mrb[71].mxu0  ;;  %v1295_v4 = vpop.f32.mrb[71].mxu1  ;;  %v1353_v7 = vmax.f32 %v1301_v63, 0.0 }
 0x1a5   : > { %v1296_v28 = vadd.f32 %v1295_v4, %v1071_v42  ;;  %v1351_v8 = vmax.f32 %v1293_v60, 0.0 }
 0x1a6   : > { %v1256_v46 = vadd.f32 %v2566_v5, %v1031_v14  ;;  %v1354_v6 = vmax.f32 %v1304_v49, 0.0  ;;  %v1341_v11 = vmax.f32 %v1253_v3, 0.0 }
 0x1a7   : > { %v1352_v61 = vmax.f32 %v1296_v28, 0.0 }
 0x1a8   : > { %v1342_v12 = vmax.f32 %v1256_v46, 0.0  ;;  %v1971_v53 = vpack.c.bf16 %v1354_v6, %v1353_v7 }
 0x1a9   : > { %v1966_v38 = vpack.c.bf16 %v1352_v61, %v1351_v8 }
 0x1aa   : > { %v1941_v32 = vpack.c.bf16 %v1342_v12, %v1341_v11  ;;  %1995 = vst [vmem:[%s2520_s22 + $0xb8] sm:$0xff] %v1971_v53  }
 0x1ab   : > { %1994 = vst [vmem:[%s2520_s22 + $0xb0] sm:$0xff] %v1966_v38  }
 0x1ac   : > { %1989 = vst [vmem:[%s2520_s22 + $0x88] sm:$0xff] %v1941_v32  }
 0x1ad PF: > { %s13_s12 = sadd.s32 1, %s2260_s12  }
 0x1ae   : > { %p10_p4 = scmp.ge.s32.totalorder %s13_s12, 5  }
 0x1b0   :  { %12 = sbr.rel (!%p10_p4) target bundleno = 1 (0x1), region = 62 }

// kernel: ppo_forward.7
= control target key start
LH: loop header
LB: loop body
LE: loop exit
PB: predicated region body
PF: predicated region fallthrough
CT: control target
= control target key end

     0   :  { %s1321_s12 = smov 0   ;;  %s1503_s0 = inlined_call_operand.vmem [shape: bf16[288,384], index: 0, kind: input, shape index: {}]   ;;  %s1504_s1 = inlined_call_operand.vmem [shape: bf16[384,128], index: 1, kind: input, shape index: {}]   ;;  %s1505_s2 = inlined_call_operand.vmem [shape: f32[1,128], index: 2, kind: input, shape index: {}]   ;;  %s1506_s3 = inlined_call_operand.vmem [shape: bf16[288,128], index: 3, kind: output, shape index: {}]  }
   0x1 LB: > { %s931_s13 = sadd.s32 4294967295, %s1297_s12   ;;  %p935_p0 = scmp.ge.s32.totalorder %s1297_s12, 1  ;;  %s1297_s12 = sphi %s1321_s12, %s13_s12  }
   0x2   : > { %p139_p1 = scmp.lt.s32.totalorder %s1297_s12, 3 }
   0x4   : > { %p140_p2 = pnand %p935_p0, %p139_p1 }
   0x5   : > { %v1231_v0 = vld [vmem:[%s1504_s1 + $0x40] sm:$0xff] (!%p140_p2)   ;;  %v1299_v2 = vmov (!%p140_p2), 0.0   ;;  %v1234_v4 = vld [vmem:[%s1504_s1 + $0x48] sm:$0xff] (!%p140_p2)   ;;  %vm1300_vm0 = vmmov (!%p140_p2), 0   ;;  %s164_s26 = smul.u32 (!%p140_p2), 18, %s931_s13  ;;  %v1237_v7 = vld [vmem:[%s1504_s1 + $0x50] sm:$0xff] (!%p140_p2)  }
   0x6   : > { %143 = sbr.rel (%p140_p2) target bundleno = 328 (0x148), region = 32  ;;  %v1232_v1 = vld [vmem:[%s1504_s1] sm:$0xff] (!%p140_p2)   ;;  %1168 = vmatprep.subr.bf16.mxu1 (!%p140_p2), %v1299_v2  ;;  %1081 = vmatprep.subr.bf16.mxu0 (!%p140_p2), %v1231_v0  ;;  %v1235_v5 = vld [vmem:[%s1504_s1 + $0x8] sm:$0xff] (!%p140_p2)   ;;  %v1238_v8 = vld [vmem:[%s1504_s1 + $0x10] sm:$0xff] (!%p140_p2)  }
   0x7   : > { %v1233_v3 = vld [vmem:[%s1504_s1 + $0x80] sm:$0xff] (!%p140_p2)   ;;  %1082 = vmatpush3.bf16.msra.mxu0 (!%p140_p2), %v1232_v1  ;;  %1184 = vmatprep.mubr.msk.bf16.mxu1 (!%p140_p2), %vm1300_vm0, %v1299_v2  ;;  %v1236_v6 = vld [vmem:[%s1504_s1 + $0x88] sm:$0xff] (!%p140_p2)   ;;  %v1239_v9 = vld [vmem:[%s1504_s1 + $0x90] sm:$0xff] (!%p140_p2)   ;;  %p165_p3 = scmp.lt.s32.totalorder (!%p140_p2), %s164_s26, 35 }
   0x8   : > { %1169 = vmatpush3.bf16.msra.mxu1 (!%p140_p2), %v1233_v3  ;;  %1083 = vmatprep.subr.bf16.mxu0 (!%p140_p2), %v1234_v4  ;;  %v1240_v10 = vld [vmem:[%s1504_s1 + $0x58] sm:$0xff] (!%p140_p2)   ;;  %v1243_v13 = vld [vmem:[%s1504_s1 + $0x60] sm:$0xff] (!%p140_p2)   ;;  %v1246_v16 = vld [vmem:[%s1504_s1 + $0x68] sm:$0xff] (!%p140_p2)  }
   0x9   : > { %1170 = vmatprep.subr.bf16.mxu1 (!%p140_p2), %v1299_v2  ;;  %v1241_v11 = vld [vmem:[%s1504_s1 + $0x18] sm:$0xff] (!%p140_p2)   ;;  %v1244_v14 = vld [vmem:[%s1504_s1 + $0x20] sm:$0xff] (!%p140_p2)   ;;  %v1247_v17 = vld [vmem:[%s1504_s1 + $0x28] sm:$0xff] (!%p140_p2)  }
   0xa   : > { %v1242_v12 = vld [vmem:[%s1504_s1 + $0x98] sm:$0xff] (!%p140_p2)   ;;  %v1245_v15 = vld [vmem:[%s1504_s1 + $0xa0] sm:$0xff] (!%p140_p2)   ;;  %v1248_v18 = vld [vmem:[%s1504_s1 + $0xa8] sm:$0xff] (!%p140_p2)  }
   0xb   : > { %1084 = vmatpush3.bf16.msra.mxu0 (!%p140_p2), %v1235_v5  ;;  %v1249_v19 = vld [vmem:[%s1504_s1 + $0x70] sm:$0xff] (!%p140_p2)   ;;  %v1252_v22 = vld [vmem:[%s1504_s1 + $0x78] sm:$0xff] (!%p140_p2)   ;;  %v1465_v54 = vld [vmem:[%s1505_s2] ss:$0 sm:$0xff] (!%p140_p2) }
   0xc   : > { %1171 = vmatpush3.bf16.msra.mxu1 (!%p140_p2), %v1236_v6  ;;  %1085 = vmatprep.subr.bf16.mxu0 (!%p140_p2), %v1237_v7  ;;  %v1250_v20 = vld [vmem:[%s1504_s1 + $0x30] sm:$0xff] (!%p140_p2)   ;;  %v1253_v24 = vld [vmem:[%s1504_s1 + $0x38] sm:$0xff] (!%p140_p2)  }
   0xd   : > { %1172 = vmatprep.subr.bf16.mxu1 %v1299_v2  ;;  %s1508_s26 = smov (!%p165_p3, %s164_s26), 35  ;;  %v1251_v21 = vld [vmem:[%s1504_s1 + $0xb0] sm:$0xff]   ;;  %v1257_v25 = vld [vmem:[%s1504_s1 + $0xb8] sm:$0xff]  }
   0xe   : > { %s1220_s21 = smul.u32 12, %s1508_s26  ;;  %s937_s18 = sshll.u32 %s1508_s26, 2 }
   0xf   : > { %1086 = vmatpush3.bf16.msra.mxu0 %v1238_v8 }
  0x10   : > { %1173 = vmatpush3.bf16.msra.mxu1 %v1239_v9  ;;  %1087 = vmatprep.subr.bf16.mxu0 %v1240_v10  ;;  %s1403_s6 = scalar_lea.vmem %s1503_s0, %s1220_s21  ;;  %s1473_s21 = scalar_lea.vmem %s1506_s3, %s937_s18 }
  0x11   : > { %1174 = vmatprep.subr.bf16.mxu1 %v1299_v2  ;;  %v1256_v23 = vld [vmem:[%s1403_s6 + $0x4] ss:$12 sps:$4 sm:$0xff]   ;;  %v1254_v26 = vld [vmem:[%s1403_s6] ss:$12 sps:$4 sm:$0xff]   ;;  %v1258_v27 = vld [vmem:[%s1403_s6 + $0x8] ss:$12 sps:$4 sm:$0xff]  }
  0x12   : > { %589 = vmatprep.mubr.bf16.mxu0 %v1256_v23  ;;  %v1259_v28 = vld [vmem:[%s1403_s6 + $0x1c] ss:$12 sps:$4 sm:$0xff]   ;;  %v1261_v29 = vld [vmem:[%s1403_s6 + $0x18] ss:$12 sps:$4 sm:$0xff]   ;;  %v1262_v30 = vld [vmem:[%s1403_s6 + $0x20] ss:$12 sps:$4 sm:$0xff]  }
  0x13   : > { %1088 = vmatpush3.bf16.msra.mxu0 %v1241_v11  ;;  %v1263_v31 = vld [vmem:[%s1403_s6 + $0x34] ss:$12 sps:$4 sm:$0xff]   ;;  %v1265_v32 = vld [vmem:[%s1403_s6 + $0x30] ss:$12 sps:$4 sm:$0xff]   ;;  %v1266_v33 = vld [vmem:[%s1403_s6 + $0x38] ss:$12 sps:$4 sm:$0xff]  }
  0x14   : > { %1175 = vmatpush3.bf16.msra.mxu1 %v1242_v12  ;;  %1089 = vmatprep.subr.bf16.mxu0 %v1243_v13  ;;  %v1267_v34 = vld [vmem:[%s1403_s6 + $0x4c] ss:$12 sps:$4 sm:$0xff]   ;;  %v1269_v35 = vld [vmem:[%s1403_s6 + $0x48] ss:$12 sps:$4 sm:$0xff]   ;;  %v1270_v36 = vld [vmem:[%s1403_s6 + $0x50] ss:$12 sps:$4 sm:$0xff]  }
  0x15   : > { %1176 = vmatprep.subr.bf16.mxu1 %v1299_v2  ;;  %v1271_v37 = vld [vmem:[%s1403_s6 + $0x64] ss:$12 sps:$4 sm:$0xff]   ;;  %v1273_v38 = vld [vmem:[%s1403_s6 + $0x60] ss:$12 sps:$4 sm:$0xff]   ;;  %v1274_v39 = vld [vmem:[%s1403_s6 + $0x68] ss:$12 sps:$4 sm:$0xff]  }
  0x16   : > { %v1275_v40 = vld [vmem:[%s1403_s6 + $0x7c] ss:$12 sps:$4 sm:$0xff]   ;;  %v1277_v41 = vld [vmem:[%s1403_s6 + $0x78] ss:$12 sps:$4 sm:$0xff]   ;;  %v1278_v42 = vld [vmem:[%s1403_s6 + $0x80] ss:$12 sps:$4 sm:$0xff]  }
  0x17   : > { %1090 = vmatpush3.bf16.msra.mxu0 %v1244_v14  ;;  %v1279_v43 = vld [vmem:[%s1403_s6 + $0x94] ss:$12 sps:$4 sm:$0xff]   ;;  %v1281_v44 = vld [vmem:[%s1403_s6 + $0x90] ss:$12 sps:$4 sm:$0xff]   ;;  %v1282_v45 = vld [vmem:[%s1403_s6 + $0x98] ss:$12 sps:$4 sm:$0xff]  }
  0x18   : > { %1177 = vmatpush3.bf16.msra.mxu1 %v1245_v15  ;;  %1091 = vmatprep.subr.bf16.mxu0 %v1246_v16  ;;  %v1283_v46 = vld [vmem:[%s1403_s6 + $0xac] ss:$12 sps:$4 sm:$0xff]   ;;  %v1285_v47 = vld [vmem:[%s1403_s6 + $0xa8] ss:$12 sps:$4 sm:$0xff]   ;;  %v1286_v48 = vld [vmem:[%s1403_s6 + $0xb0] ss:$12 sps:$4 sm:$0xff]  }
  0x19   : > { %1178 = vmatprep.subr.bf16.mxu1 %v1299_v2  ;;  %v1287_v49 = vld [vmem:[%s1403_s6 + $0xc4] ss:$12 sps:$4 sm:$0xff]   ;;  %v1289_v50 = vld [vmem:[%s1403_s6 + $0xc0] ss:$12 sps:$4 sm:$0xff]   ;;  %v1290_v51 = vld [vmem:[%s1403_s6 + $0xc8] ss:$12 sps:$4 sm:$0xff]  }
  0x1b   : > { %1092 = vmatpush3.bf16.msra.mxu0 %v1247_v17 }
  0x1c   : > { %1179 = vmatpush3.bf16.msra.mxu1 %v1248_v18  ;;  %1093 = vmatprep.subr.bf16.mxu0 %v1249_v19 }
  0x1d   : > { %1180 = vmatprep.subr.bf16.mxu1 %v1299_v2 }
  0x1f   : > { %1094 = vmatpush3.bf16.msra.mxu0 %v1250_v20 }
  0x20   : > { %1181 = vmatpush3.bf16.msra.mxu1 %v1251_v21  ;;  %1095 = vmatprep.subr.bf16.mxu0 %v1252_v22 }
  0x21   : > { %1182 = vmatprep.subr.bf16.mxu1 %v1299_v2 }
  0x23   : > { %1096 = vmatpush3.bf16.msra.mxu0 %v1253_v24 }
  0x24   : > { %1183 = vmatpush3.bf16.msra.mxu1 %v1257_v25 }
  0x26   : > { %590 = vmatmul.mubr.bf16.vlgmr.msra.gmra.mrb[0].mxu0 %v1254_v26 }
  0x27   : > { %1185 = vmatmul.mubr.bf16.vlgmr.msra.gmra.mrb[0].mxu1 %v1258_v27  ;;  %597 = vmatprep.mubr.bf16.mxu0 %v1259_v28 }
  0x28   : > { %1188 = vmatprep.mubr.msk.bf16.mxu1 %vm1300_vm0, %v1299_v2 }
  0x2e   : > { %598 = vmatmul.mubr.bf16.gmra.mrb[4].mxu0 %v1261_v29 }
  0x2f   : > { %1189 = vmatmul.mubr.bf16.gmra.mrb[4].mxu1 %v1262_v30  ;;  %605 = vmatprep.mubr.bf16.mxu0 %v1263_v31 }
  0x30   : > { %1192 = vmatprep.mubr.msk.bf16.mxu1 %vm1300_vm0, %v1299_v2 }
  0x36   : > { %606 = vmatmul.mubr.bf16.gmra.mrb[8].mxu0 %v1265_v32 }
  0x37   : > { %1193 = vmatmul.mubr.bf16.gmra.mrb[8].mxu1 %v1266_v33  ;;  %613 = vmatprep.mubr.bf16.mxu0 %v1267_v34 }
  0x38   : > { %1196 = vmatprep.mubr.msk.bf16.mxu1 %vm1300_vm0, %v1299_v2 }
  0x3e   : > { %614 = vmatmul.mubr.bf16.gmra.mrb[12].mxu0 %v1269_v35 }
  0x3f   : > { %1197 = vmatmul.mubr.bf16.gmra.mrb[12].mxu1 %v1270_v36  ;;  %621 = vmatprep.mubr.bf16.mxu0 %v1271_v37 }
  0x40   : > { %1200 = vmatprep.mubr.msk.bf16.mxu1 %vm1300_vm0, %v1299_v2 }
  0x46   : > { %622 = vmatmul.mubr.bf16.gmra.mrb[16].mxu0 %v1273_v38 }
  0x47   : > { %1201 = vmatmul.mubr.bf16.gmra.mrb[16].mxu1 %v1274_v39  ;;  %629 = vmatprep.mubr.bf16.mxu0 %v1275_v40 }
  0x48   : > { %1204 = vmatprep.mubr.msk.bf16.mxu1 %vm1300_vm0, %v1299_v2 }
  0x4e   : > { %630 = vmatmul.mubr.bf16.gmra.mrb[20].mxu0 %v1277_v41 }
  0x4f   : > { %1205 = vmatmul.mubr.bf16.gmra.mrb[20].mxu1 %v1278_v42  ;;  %637 = vmatprep.mubr.bf16.mxu0 %v1279_v43 }
  0x50   : > { %1208 = vmatprep.mubr.msk.bf16.mxu1 %vm1300_vm0, %v1299_v2 }
  0x56   : > { %638 = vmatmul.mubr.bf16.gmra.mrb[24].mxu0 %v1281_v44 }
  0x57   : > { %1209 = vmatmul.mubr.bf16.gmra.mrb[24].mxu1 %v1282_v45  ;;  %645 = vmatprep.mubr.bf16.mxu0 %v1283_v46 }
  0x58   : > { %1212 = vmatprep.mubr.msk.bf16.mxu1 %vm1300_vm0, %v1299_v2 }
  0x5e   : > { %646 = vmatmul.mubr.bf16.gmra.mrb[28].mxu0 %v1285_v47 }
  0x5f   : > { %1213 = vmatmul.mubr.bf16.gmra.mrb[28].mxu1 %v1286_v48  ;;  %653 = vmatprep.mubr.bf16.mxu0 %v1287_v49 }
  0x60   : > { %1216 = vmatprep.mubr.msk.bf16.mxu1 %vm1300_vm0, %v1299_v2 }
  0x66   : > { %654 = vmatmul.mubr.bf16.gmra.mrb[32].mxu0 %v1289_v50 }
  0x67   : > { %1217 = vmatmul.mubr.bf16.gmra.mrb[32].mxu1 %v1290_v51 }
  0xf9   : > { %v1097_v52 = vpop.f32.mrb[0].mxu0 }
  0xfa   : > { %v1098_v53 = vpop.f32.mrb[1].mxu0  ;;  %v696_v55 = vpop.f32.mrb[0].mxu1 }
  0xfb   : > { %v1099_v56 = vadd.f32 %v1098_v53, %v1097_v52  ;;  %v1100_v57 = vpop.f32.mrb[2].mxu0  ;;  %v1186_v58 = vpop.f32.mrb[1].mxu1 }
  0xfc   : > { %v1101_v59 = vpop.f32.mrb[3].mxu0  ;;  %v699_v60 = vpop.f32.mrb[2].mxu1 }
  0xfd   : > { %v592_v61 = vadd.f32 %v1099_v56, %v1465_v54  ;;  %v1102_v62 = vadd.f32 %v1101_v59, %v1100_v57  ;;  %v1187_v63 = vpop.f32.mrb[3].mxu1 }
  0xff   : > { %v697_v0 = vadd.f32 %v696_v55, %v592_v61  ;;  %v595_v1 = vadd.f32 %v1102_v62, %v1465_v54 }
 0x101   : > { %v700_v2 = vadd.f32 %v699_v60, %v595_v1  ;;  %v1103_v3 = vpop.f32.mrb[4].mxu0  ;;  %v767_v6 = vmax.f32 %v697_v0, 0.0 }
 0x102   : > { %v1104_v4 = vpop.f32.mrb[5].mxu0  ;;  %v704_v5 = vpop.f32.mrb[4].mxu1 }
 0x103   : > { %v768_v7 = vmax.f32 %v700_v2, 0.0  ;;  %v1105_v8 = vadd.f32 %v1104_v4, %v1103_v3  ;;  %v1106_v9 = vpop.f32.mrb[6].mxu0  ;;  %v1190_v10 = vpop.f32.mrb[5].mxu1 }
 0x104   : > { %v1107_v11 = vpop.f32.mrb[7].mxu0  ;;  %v707_v12 = vpop.f32.mrb[6].mxu1 }
 0x105   : > { %v1031_v13 = vpack.c.bf16 %v768_v7, %v767_v6  ;;  %v600_v14 = vadd.f32 %v1105_v8, %v1465_v54  ;;  %v1108_v15 = vadd.f32 %v1107_v11, %v1106_v9  ;;  %v1191_v16 = vpop.f32.mrb[7].mxu1 }
 0x107   : > { %1032 = vst [vmem:[%s1473_s21] sm:$0xff] %v1031_v13   ;;  %v705_v17 = vadd.f32 %v704_v5, %v600_v14  ;;  %v603_v18 = vadd.f32 %v1108_v15, %v1465_v54 }
 0x109   : > { %v708_v19 = vadd.f32 %v707_v12, %v603_v18  ;;  %v1109_v20 = vpop.f32.mrb[8].mxu0  ;;  %v769_v23 = vmax.f32 %v705_v17, 0.0 }
 0x10a   : > { %v1110_v21 = vpop.f32.mrb[9].mxu0  ;;  %v712_v22 = vpop.f32.mrb[8].mxu1 }
 0x10b   : > { %v770_v24 = vmax.f32 %v708_v19, 0.0  ;;  %v1111_v25 = vadd.f32 %v1110_v21, %v1109_v20  ;;  %v1112_v26 = vpop.f32.mrb[10].mxu0  ;;  %v1194_v27 = vpop.f32.mrb[9].mxu1 }
 0x10c   : > { %v1113_v28 = vpop.f32.mrb[11].mxu0  ;;  %v715_v29 = vpop.f32.mrb[10].mxu1 }
 0x10d   : > { %v1036_v30 = vpack.c.bf16 %v770_v24, %v769_v23  ;;  %v608_v31 = vadd.f32 %v1111_v25, %v1465_v54  ;;  %v1114_v32 = vadd.f32 %v1113_v28, %v1112_v26  ;;  %v1195_v33 = vpop.f32.mrb[11].mxu1 }
 0x10f   : > { %1073 = vst [vmem:[%s1473_s21 + $0x8] sm:$0xff] %v1036_v30   ;;  %v713_v34 = vadd.f32 %v712_v22, %v608_v31  ;;  %v611_v35 = vadd.f32 %v1114_v32, %v1465_v54 }
 0x111   : > { %v716_v36 = vadd.f32 %v715_v29, %v611_v35  ;;  %v1115_v37 = vpop.f32.mrb[12].mxu0  ;;  %v771_v40 = vmax.f32 %v713_v34, 0.0 }
 0x112   : > { %v1116_v38 = vpop.f32.mrb[13].mxu0  ;;  %v720_v39 = vpop.f32.mrb[12].mxu1 }
 0x113   : > { %v772_v41 = vmax.f32 %v716_v36, 0.0  ;;  %v1117_v42 = vadd.f32 %v1116_v38, %v1115_v37  ;;  %v1118_v43 = vpop.f32.mrb[14].mxu0  ;;  %v1198_v44 = vpop.f32.mrb[13].mxu1 }
 0x114   : > { %v1119_v45 = vpop.f32.mrb[15].mxu0  ;;  %v723_v46 = vpop.f32.mrb[14].mxu1 }
 0x115   : > { %v1041_v47 = vpack.c.bf16 %v772_v41, %v771_v40  ;;  %v616_v48 = vadd.f32 %v1117_v42, %v1465_v54  ;;  %v1120_v49 = vadd.f32 %v1119_v45, %v1118_v43  ;;  %v1199_v50 = vpop.f32.mrb[15].mxu1 }
 0x117   : > { %1074 = vst [vmem:[%s1473_s21 + $0x10] sm:$0xff] %v1041_v47   ;;  %v721_v51 = vadd.f32 %v720_v39, %v616_v48  ;;  %v619_v52 = vadd.f32 %v1120_v49, %v1465_v54 }
 0x119   : > { %v724_v53 = vadd.f32 %v723_v46, %v619_v52  ;;  %v1121_v55 = vpop.f32.mrb[16].mxu0  ;;  %v773_v58 = vmax.f32 %v721_v51, 0.0 }
 0x11a   : > { %v1122_v56 = vpop.f32.mrb[17].mxu0  ;;  %v728_v57 = vpop.f32.mrb[16].mxu1 }
 0x11b   : > { %v774_v59 = vmax.f32 %v724_v53, 0.0  ;;  %v1123_v60 = vadd.f32 %v1122_v56, %v1121_v55  ;;  %v1124_v61 = vpop.f32.mrb[18].mxu0  ;;  %v1202_v62 = vpop.f32.mrb[17].mxu1 }
 0x11c   : > { %v1125_v63 = vpop.f32.mrb[19].mxu0  ;;  %v731_v0 = vpop.f32.mrb[18].mxu1 }
 0x11d   : > { %v1046_v1 = vpack.c.bf16 %v774_v59, %v773_v58  ;;  %v624_v2 = vadd.f32 %v1123_v60, %v1465_v54  ;;  %v1126_v3 = vadd.f32 %v1125_v63, %v1124_v61  ;;  %v1203_v4 = vpop.f32.mrb[19].mxu1 }
 0x11f   : > { %1075 = vst [vmem:[%s1473_s21 + $0x18] sm:$0xff] %v1046_v1   ;;  %v729_v5 = vadd.f32 %v728_v57, %v624_v2  ;;  %v627_v6 = vadd.f32 %v1126_v3, %v1465_v54 }
 0x121   : > { %v732_v7 = vadd.f32 %v731_v0, %v627_v6  ;;  %v1127_v8 = vpop.f32.mrb[20].mxu0  ;;  %v775_v11 = vmax.f32 %v729_v5, 0.0 }
 0x122   : > { %v1128_v9 = vpop.f32.mrb[21].mxu0  ;;  %v736_v10 = vpop.f32.mrb[20].mxu1 }
 0x123   : > { %v776_v12 = vmax.f32 %v732_v7, 0.0  ;;  %v1129_v13 = vadd.f32 %v1128_v9, %v1127_v8  ;;  %v1130_v14 = vpop.f32.mrb[22].mxu0  ;;  %v1206_v15 = vpop.f32.mrb[21].mxu1 }
 0x124   : > { %v1131_v16 = vpop.f32.mrb[23].mxu0  ;;  %v739_v17 = vpop.f32.mrb[22].mxu1 }
 0x125   : > { %v1051_v18 = vpack.c.bf16 %v776_v12, %v775_v11  ;;  %v632_v19 = vadd.f32 %v1129_v13, %v1465_v54  ;;  %v1132_v20 = vadd.f32 %v1131_v16, %v1130_v14  ;;  %v1207_v21 = vpop.f32.mrb[23].mxu1 }
 0x127   : > { %1076 = vst [vmem:[%s1473_s21 + $0x20] sm:$0xff] %v1051_v18   ;;  %v737_v22 = vadd.f32 %v736_v10, %v632_v19  ;;  %v635_v23 = vadd.f32 %v1132_v20, %v1465_v54 }
 0x129   : > { %v740_v24 = vadd.f32 %v739_v17, %v635_v23  ;;  %v1133_v25 = vpop.f32.mrb[24].mxu0  ;;  %v777_v28 = vmax.f32 %v737_v22, 0.0 }
 0x12a   : > { %v1134_v26 = vpop.f32.mrb[25].mxu0  ;;  %v744_v27 = vpop.f32.mrb[24].mxu1 }
 0x12b   : > { %v778_v29 = vmax.f32 %v740_v24, 0.0  ;;  %v1135_v30 = vadd.f32 %v1134_v26, %v1133_v25  ;;  %v1136_v31 = vpop.f32.mrb[26].mxu0  ;;  %v1210_v32 = vpop.f32.mrb[25].mxu1 }
 0x12c   : > { %v1137_v33 = vpop.f32.mrb[27].mxu0  ;;  %v747_v34 = vpop.f32.mrb[26].mxu1 }
 0x12d   : > { %v1056_v35 = vpack.c.bf16 %v778_v29, %v777_v28  ;;  %v640_v36 = vadd.f32 %v1135_v30, %v1465_v54  ;;  %v1138_v37 = vadd.f32 %v1137_v33, %v1136_v31  ;;  %v1211_v38 = vpop.f32.mrb[27].mxu1 }
 0x12f   : > { %1077 = vst [vmem:[%s1473_s21 + $0x28] sm:$0xff] %v1056_v35   ;;  %v745_v39 = vadd.f32 %v744_v27, %v640_v36  ;;  %v643_v40 = vadd.f32 %v1138_v37, %v1465_v54 }
 0x131   : > { %v748_v41 = vadd.f32 %v747_v34, %v643_v40  ;;  %v1139_v42 = vpop.f32.mrb[28].mxu0  ;;  %v779_v45 = vmax.f32 %v745_v39, 0.0 }
 0x132   : > { %v1140_v43 = vpop.f32.mrb[29].mxu0  ;;  %v752_v44 = vpop.f32.mrb[28].mxu1 }
 0x133   : > { %v780_v46 = vmax.f32 %v748_v41, 0.0  ;;  %v1141_v47 = vadd.f32 %v1140_v43, %v1139_v42  ;;  %v1142_v48 = vpop.f32.mrb[30].mxu0  ;;  %v1214_v49 = vpop.f32.mrb[29].mxu1 }
 0x134   : > { %v1143_v50 = vpop.f32.mrb[31].mxu0  ;;  %v755_v51 = vpop.f32.mrb[30].mxu1 }
 0x135   : > { %v1061_v52 = vpack.c.bf16 %v780_v46, %v779_v45  ;;  %v648_v53 = vadd.f32 %v1141_v47, %v1465_v54  ;;  %v1144_v55 = vadd.f32 %v1143_v50, %v1142_v48  ;;  %v1215_v56 = vpop.f32.mrb[31].mxu1 }
 0x137   : > { %1078 = vst [vmem:[%s1473_s21 + $0x30] sm:$0xff] %v1061_v52   ;;  %v753_v57 = vadd.f32 %v752_v44, %v648_v53  ;;  %v651_v58 = vadd.f32 %v1144_v55, %v1465_v54 }
 0x139   : > { %v756_v59 = vadd.f32 %v755_v51, %v651_v58  ;;  %v1145_v60 = vpop.f32.mrb[32].mxu0  ;;  %v781_v63 = vmax.f32 %v753_v57, 0.0 }
 0x13a   : > { %v1146_v61 = vpop.f32.mrb[33].mxu0  ;;  %v760_v62 = vpop.f32.mrb[32].mxu1 }
 0x13b   : > { %v782_v0 = vmax.f32 %v756_v59, 0.0  ;;  %v1147_v1 = vadd.f32 %v1146_v61, %v1145_v60  ;;  %v1148_v2 = vpop.f32.mrb[34].mxu0  ;;  %v1218_v3 = vpop.f32.mrb[33].mxu1 }
 0x13c   : > { %v1149_v4 = vpop.f32.mrb[35].mxu0  ;;  %v763_v5 = vpop.f32.mrb[34].mxu1 }
 0x13d   : > { %v1066_v6 = vpack.c.bf16 %v782_v0, %v781_v63  ;;  %v656_v7 = vadd.f32 %v1147_v1, %v1465_v54  ;;  %v1150_v8 = vadd.f32 %v1149_v4, %v1148_v2  ;;  %v1219_v9 = vpop.f32.mrb[35].mxu1 }
 0x13f   : > { %1079 = vst [vmem:[%s1473_s21 + $0x38] sm:$0xff] %v1066_v6   ;;  %v761_v10 = vadd.f32 %v760_v62, %v656_v7  ;;  %v659_v11 = vadd.f32 %v1150_v8, %v1465_v54 }
 0x141   : > { %v764_v12 = vadd.f32 %v763_v5, %v659_v11  ;;  %v783_v13 = vmax.f32 %v761_v10, 0.0 }
 0x143   : > { %v784_v14 = vmax.f32 %v764_v12, 0.0 }
 0x145   : > { %v1071_v15 = vpack.c.bf16 %v784_v14, %v783_v13 }
 0x147   : > { %1080 = vst [vmem:[%s1473_s21 + $0x40] sm:$0xff] %v1071_v15  }
 0x148 PF: > { %s13_s12 = sadd.s32 1, %s1297_s12  }
 0x149   : > { %p10_p4 = scmp.ge.s32.totalorder %s13_s12, 4  }
 0x14b   :  { %12 = sbr.rel (!%p10_p4) target bundleno = 1 (0x1), region = 62 }

// kernel: ppo_forward.8
= control target key start
LH: loop header
LB: loop body
LE: loop exit
PB: predicated region body
PF: predicated region fallthrough
CT: control target
= control target key end

     0   :  { %s865_s12 = smov 0   ;;  %s991_s0 = inlined_call_operand.vmem [shape: bf16[96,384], index: 0, kind: input, shape index: {}]   ;;  %s992_s1 = inlined_call_operand.vmem [shape: bf16[384,128], index: 1, kind: input, shape index: {}]   ;;  %s993_s2 = inlined_call_operand.vmem [shape: f32[1,128], index: 2, kind: input, shape index: {}]   ;;  %s994_s3 = inlined_call_operand.vmem [shape: bf16[96,128], index: 3, kind: output, shape index: {}]  }
   0x1 LB: > { %s643_s13 = sadd.s32 4294967295, %s841_s12   ;;  %p647_p0 = scmp.ge.s32.totalorder %s841_s12, 1  ;;  %s841_s12 = sphi %s865_s12, %s13_s12  }
   0x2   : > { %p139_p1 = scmp.lt.s32.totalorder %s841_s12, 3 }
   0x4   : > { %p140_p2 = pnand %p647_p0, %p139_p1 }
   0x5   : > { %v799_v0 = vld [vmem:[%s992_s1 + $0x40] sm:$0xff] (!%p140_p2)   ;;  %v843_v2 = vmov (!%p140_p2), 0.0   ;;  %v802_v4 = vld [vmem:[%s992_s1 + $0x48] sm:$0xff] (!%p140_p2)   ;;  %vm844_vm0 = vmmov (!%p140_p2), 0   ;;  %s164_s26 = smul.u32 (!%p140_p2), 6, %s643_s13  ;;  %v805_v7 = vld [vmem:[%s992_s1 + $0x50] sm:$0xff] (!%p140_p2)  }
   0x6   : > { %143 = sbr.rel (%p140_p2) target bundleno = 280 (0x118), region = 32  ;;  %v800_v1 = vld [vmem:[%s992_s1] sm:$0xff] (!%p140_p2)   ;;  %760 = vmatprep.subr.bf16.mxu1 (!%p140_p2), %v843_v2  ;;  %715 = vmatprep.subr.bf16.mxu0 (!%p140_p2), %v799_v0  ;;  %v803_v5 = vld [vmem:[%s992_s1 + $0x8] sm:$0xff] (!%p140_p2)   ;;  %v806_v8 = vld [vmem:[%s992_s1 + $0x10] sm:$0xff] (!%p140_p2)  }
   0x7   : > { %v801_v3 = vld [vmem:[%s992_s1 + $0x80] sm:$0xff] (!%p140_p2)   ;;  %716 = vmatpush3.bf16.msra.mxu0 (!%p140_p2), %v800_v1  ;;  %776 = vmatprep.mubr.msk.bf16.mxu1 (!%p140_p2), %vm844_vm0, %v843_v2  ;;  %v804_v6 = vld [vmem:[%s992_s1 + $0x88] sm:$0xff] (!%p140_p2)   ;;  %v807_v9 = vld [vmem:[%s992_s1 + $0x90] sm:$0xff] (!%p140_p2)   ;;  %p165_p3 = scmp.lt.s32.totalorder (!%p140_p2), %s164_s26, 11 }
   0x8   : > { %761 = vmatpush3.bf16.msra.mxu1 (!%p140_p2), %v801_v3  ;;  %717 = vmatprep.subr.bf16.mxu0 (!%p140_p2), %v802_v4  ;;  %v808_v10 = vld [vmem:[%s992_s1 + $0x58] sm:$0xff] (!%p140_p2)   ;;  %v811_v13 = vld [vmem:[%s992_s1 + $0x60] sm:$0xff] (!%p140_p2)   ;;  %v814_v16 = vld [vmem:[%s992_s1 + $0x68] sm:$0xff] (!%p140_p2)  }
   0x9   : > { %762 = vmatprep.subr.bf16.mxu1 (!%p140_p2), %v843_v2  ;;  %v809_v11 = vld [vmem:[%s992_s1 + $0x18] sm:$0xff] (!%p140_p2)   ;;  %v812_v14 = vld [vmem:[%s992_s1 + $0x20] sm:$0xff] (!%p140_p2)   ;;  %v815_v17 = vld [vmem:[%s992_s1 + $0x28] sm:$0xff] (!%p140_p2)  }
   0xa   : > { %v810_v12 = vld [vmem:[%s992_s1 + $0x98] sm:$0xff] (!%p140_p2)   ;;  %v813_v15 = vld [vmem:[%s992_s1 + $0xa0] sm:$0xff] (!%p140_p2)   ;;  %v816_v18 = vld [vmem:[%s992_s1 + $0xa8] sm:$0xff] (!%p140_p2)  }
   0xb   : > { %718 = vmatpush3.bf16.msra.mxu0 (!%p140_p2), %v803_v5  ;;  %v817_v19 = vld [vmem:[%s992_s1 + $0x70] sm:$0xff] (!%p140_p2)   ;;  %v820_v22 = vld [vmem:[%s992_s1 + $0x78] sm:$0xff] (!%p140_p2)   ;;  %v650_v36 = vld [vmem:[%s993_s2] ss:$0 sm:$0xff] (!%p140_p2) }
   0xc   : > { %763 = vmatpush3.bf16.msra.mxu1 (!%p140_p2), %v804_v6  ;;  %719 = vmatprep.subr.bf16.mxu0 (!%p140_p2), %v805_v7  ;;  %v818_v20 = vld [vmem:[%s992_s1 + $0x30] sm:$0xff] (!%p140_p2)   ;;  %v821_v24 = vld [vmem:[%s992_s1 + $0x38] sm:$0xff] (!%p140_p2)  }
   0xd   : > { %764 = vmatprep.subr.bf16.mxu1 %v843_v2  ;;  %s996_s26 = smov (!%p165_p3, %s164_s26), 11  ;;  %v819_v21 = vld [vmem:[%s992_s1 + $0xb0] sm:$0xff]   ;;  %v825_v25 = vld [vmem:[%s992_s1 + $0xb8] sm:$0xff]  }
   0xe   : > { %s788_s21 = smul.u32 12, %s996_s26  ;;  %s649_s18 = sshll.u32 %s996_s26, 2 }
   0xf   : > { %720 = vmatpush3.bf16.msra.mxu0 %v806_v8 }
  0x10   : > { %765 = vmatpush3.bf16.msra.mxu1 %v807_v9  ;;  %721 = vmatprep.subr.bf16.mxu0 %v808_v10  ;;  %s947_s6 = scalar_lea.vmem %s991_s0, %s788_s21  ;;  %s983_s21 = scalar_lea.vmem %s994_s3, %s649_s18 }
  0x11   : > { %766 = vmatprep.subr.bf16.mxu1 %v843_v2  ;;  %v824_v23 = vld [vmem:[%s947_s6 + $0x4] ss:$12 sps:$4 sm:$0xff]   ;;  %v822_v26 = vld [vmem:[%s947_s6] ss:$12 sps:$4 sm:$0xff]   ;;  %v826_v27 = vld [vmem:[%s947_s6 + $0x8] ss:$12 sps:$4 sm:$0xff]  }
  0x12   : > { %469 = vmatprep.mubr.bf16.mxu0 %v824_v23  ;;  %v827_v28 = vld [vmem:[%s947_s6 + $0x1c] ss:$12 sps:$4 sm:$0xff]   ;;  %v829_v29 = vld [vmem:[%s947_s6 + $0x18] ss:$12 sps:$4 sm:$0xff]   ;;  %v830_v30 = vld [vmem:[%s947_s6 + $0x20] ss:$12 sps:$4 sm:$0xff]  }
  0x13   : > { %722 = vmatpush3.bf16.msra.mxu0 %v809_v11  ;;  %v831_v31 = vld [vmem:[%s947_s6 + $0x34] ss:$12 sps:$4 sm:$0xff]   ;;  %v833_v32 = vld [vmem:[%s947_s6 + $0x30] ss:$12 sps:$4 sm:$0xff]   ;;  %v834_v33 = vld [vmem:[%s947_s6 + $0x38] ss:$12 sps:$4 sm:$0xff]  }
  0x14   : > { %767 = vmatpush3.bf16.msra.mxu1 %v810_v12  ;;  %723 = vmatprep.subr.bf16.mxu0 %v811_v13 }
  0x15   : > { %768 = vmatprep.subr.bf16.mxu1 %v843_v2 }
  0x17   : > { %724 = vmatpush3.bf16.msra.mxu0 %v812_v14 }
  0x18   : > { %769 = vmatpush3.bf16.msra.mxu1 %v813_v15  ;;  %725 = vmatprep.subr.bf16.mxu0 %v814_v16 }
  0x19   : > { %770 = vmatprep.subr.bf16.mxu1 %v843_v2 }
  0x1b   : > { %726 = vmatpush3.bf16.msra.mxu0 %v815_v17 }
  0x1c   : > { %771 = vmatpush3.bf16.msra.mxu1 %v816_v18  ;;  %727 = vmatprep.subr.bf16.mxu0 %v817_v19 }
  0x1d   : > { %772 = vmatprep.subr.bf16.mxu1 %v843_v2 }
  0x1f   : > { %728 = vmatpush3.bf16.msra.mxu0 %v818_v20 }
  0x20   : > { %773 = vmatpush3.bf16.msra.mxu1 %v819_v21  ;;  %729 = vmatprep.subr.bf16.mxu0 %v820_v22 }
  0x21   : > { %774 = vmatprep.subr.bf16.mxu1 %v843_v2 }
  0x23   : > { %730 = vmatpush3.bf16.msra.mxu0 %v821_v24 }
  0x24   : > { %775 = vmatpush3.bf16.msra.mxu1 %v825_v25 }
  0x26   : > { %470 = vmatmul.mubr.bf16.vlgmr.msra.gmra.mrb[0].mxu0 %v822_v26 }
  0x27   : > { %777 = vmatmul.mubr.bf16.vlgmr.msra.gmra.mrb[0].mxu1 %v826_v27  ;;  %477 = vmatprep.mubr.bf16.mxu0 %v827_v28 }
  0x28   : > { %780 = vmatprep.mubr.msk.bf16.mxu1 %vm844_vm0, %v843_v2 }
  0x2e   : > { %478 = vmatmul.mubr.bf16.gmra.mrb[4].mxu0 %v829_v29 }
  0x2f   : > { %781 = vmatmul.mubr.bf16.gmra.mrb[4].mxu1 %v830_v30  ;;  %485 = vmatprep.mubr.bf16.mxu0 %v831_v31 }
  0x30   : > { %784 = vmatprep.mubr.msk.bf16.mxu1 %vm844_vm0, %v843_v2 }
  0x36   : > { %486 = vmatmul.mubr.bf16.gmra.mrb[8].mxu0 %v833_v32 }
  0x37   : > { %785 = vmatmul.mubr.bf16.gmra.mrb[8].mxu1 %v834_v33 }
  0xf9   : > { %v731_v34 = vpop.f32.mrb[0].mxu0 }
  0xfa   : > { %v732_v35 = vpop.f32.mrb[1].mxu0  ;;  %v528_v37 = vpop.f32.mrb[0].mxu1 }
  0xfb   : > { %v733_v38 = vadd.f32 %v732_v35, %v731_v34  ;;  %v734_v39 = vpop.f32.mrb[2].mxu0  ;;  %v778_v40 = vpop.f32.mrb[1].mxu1 }
  0xfc   : > { %v735_v41 = vpop.f32.mrb[3].mxu0  ;;  %v531_v42 = vpop.f32.mrb[2].mxu1 }
  0xfd   : > { %v472_v43 = vadd.f32 %v733_v38, %v650_v36  ;;  %v736_v44 = vadd.f32 %v735_v41, %v734_v39  ;;  %v779_v45 = vpop.f32.mrb[3].mxu1 }
  0xff   : > { %v529_v46 = vadd.f32 %v528_v37, %v472_v43  ;;  %v475_v47 = vadd.f32 %v736_v44, %v650_v36 }
 0x101   : > { %v532_v48 = vadd.f32 %v531_v42, %v475_v47  ;;  %v737_v49 = vpop.f32.mrb[4].mxu0  ;;  %v551_v52 = vmax.f32 %v529_v46, 0.0 }
 0x102   : > { %v738_v50 = vpop.f32.mrb[5].mxu0  ;;  %v536_v51 = vpop.f32.mrb[4].mxu1 }
 0x103   : > { %v552_v53 = vmax.f32 %v532_v48, 0.0  ;;  %v739_v54 = vadd.f32 %v738_v50, %v737_v49  ;;  %v740_v55 = vpop.f32.mrb[6].mxu0  ;;  %v782_v56 = vpop.f32.mrb[5].mxu1 }
 0x104   : > { %v741_v57 = vpop.f32.mrb[7].mxu0  ;;  %v539_v58 = vpop.f32.mrb[6].mxu1 }
 0x105   : > { %v701_v59 = vpack.c.bf16 %v552_v53, %v551_v52  ;;  %v480_v60 = vadd.f32 %v739_v54, %v650_v36  ;;  %v742_v61 = vadd.f32 %v741_v57, %v740_v55  ;;  %v783_v62 = vpop.f32.mrb[7].mxu1 }
 0x107   : > { %702 = vst [vmem:[%s983_s21] sm:$0xff] %v701_v59   ;;  %v537_v63 = vadd.f32 %v536_v51, %v480_v60  ;;  %v483_v0 = vadd.f32 %v742_v61, %v650_v36 }
 0x109   : > { %v540_v1 = vadd.f32 %v539_v58, %v483_v0  ;;  %v743_v2 = vpop.f32.mrb[8].mxu0  ;;  %v553_v5 = vmax.f32 %v537_v63, 0.0 }
 0x10a   : > { %v744_v3 = vpop.f32.mrb[9].mxu0  ;;  %v544_v4 = vpop.f32.mrb[8].mxu1 }
 0x10b   : > { %v554_v6 = vmax.f32 %v540_v1, 0.0  ;;  %v745_v7 = vadd.f32 %v744_v3, %v743_v2  ;;  %v746_v8 = vpop.f32.mrb[10].mxu0  ;;  %v786_v9 = vpop.f32.mrb[9].mxu1 }
 0x10c   : > { %v747_v10 = vpop.f32.mrb[11].mxu0  ;;  %v547_v11 = vpop.f32.mrb[10].mxu1 }
 0x10d   : > { %v706_v12 = vpack.c.bf16 %v554_v6, %v553_v5  ;;  %v488_v13 = vadd.f32 %v745_v7, %v650_v36  ;;  %v748_v14 = vadd.f32 %v747_v10, %v746_v8  ;;  %v787_v15 = vpop.f32.mrb[11].mxu1 }
 0x10f   : > { %713 = vst [vmem:[%s983_s21 + $0x8] sm:$0xff] %v706_v12   ;;  %v545_v16 = vadd.f32 %v544_v4, %v488_v13  ;;  %v491_v17 = vadd.f32 %v748_v14, %v650_v36 }
 0x111   : > { %v548_v18 = vadd.f32 %v547_v11, %v491_v17  ;;  %v555_v19 = vmax.f32 %v545_v16, 0.0 }
 0x113   : > { %v556_v20 = vmax.f32 %v548_v18, 0.0 }
 0x115   : > { %v711_v21 = vpack.c.bf16 %v556_v20, %v555_v19 }
 0x117   : > { %714 = vst [vmem:[%s983_s21 + $0x10] sm:$0xff] %v711_v21  }
 0x118 PF: > { %s13_s12 = sadd.s32 1, %s841_s12  }
 0x119   : > { %p10_p4 = scmp.ge.s32.totalorder %s13_s12, 4  }
 0x11b   :  { %12 = sbr.rel (!%p10_p4) target bundleno = 1 (0x1), region = 62 }

// kernel: ppo_forward.9
= control target key start
LH: loop header
LB: loop body
LE: loop exit
PB: predicated region body
PF: predicated region fallthrough
CT: control target
= control target key end

     0   :  { %s4534_s1 = inlined_call_operand.vmem [shape: bf16[1152,512], index: 1, kind: input, shape index: {}]   ;;  %s4535_s0 = inlined_call_operand.vmem [shape: bf16[16,1152], index: 0, kind: input, shape index: {}]   ;;  %s4536_s3 = inlined_call_operand.vmem [shape: bf16[512,128], index: 3, kind: input, shape index: {}]   ;;  %s4537_s2 = inlined_call_operand.vmem [shape: f32[1,512], index: 2, kind: input, shape index: {}]   ;;  %s4538_s4 = inlined_call_operand.vmem [shape: f32[1,128], index: 4, kind: input, shape index: {}]   ;;  %s4539_s5 = inlined_call_operand.vmem [shape: f32[16,128], index: 5, kind: output, shape index: {}]  }
   0x1   :  { %v3027_v0 = vld [vmem:[%s4534_s1 + $0x4] ss:$16 sps:$4 sm:$0xff]   ;;  %v3029_v1 = vld [vmem:[%s4534_s1 + $0xc] ss:$16 sps:$4 sm:$0xff]   ;;  %v3031_v2 = vld [vmem:[%s4534_s1] ss:$16 sps:$4 sm:$0xff]  }
   0x2   :  { %1827 = vmatprep.subr.bf16.mxu0 %v3027_v0  ;;  %v3032_v3 = vld [vmem:[%s4534_s1 + $0x8] ss:$16 sps:$4 sm:$0xff]   ;;  %2042 = vmatprep.subr.bf16.mxu1 %v3029_v1  ;;  %v3033_v4 = vld [vmem:[%s4534_s1 + $0x24] ss:$16 sps:$4 sm:$0xff]   ;;  %v3035_v5 = vld [vmem:[%s4534_s1 + $0x2c] ss:$16 sps:$4 sm:$0xff]  }
   0x3   :  { %1828 = vmatpush1.bf16.msra.mxu0 %v3031_v2  ;;  %2043 = vmatpush1.bf16.msra.mxu1 %v3032_v3  ;;  %v3037_v6 = vld [vmem:[%s4534_s1 + $0x20] ss:$16 sps:$4 sm:$0xff]   ;;  %v3038_v7 = vld [vmem:[%s4534_s1 + $0x28] ss:$16 sps:$4 sm:$0xff]   ;;  %v3039_v8 = vld [vmem:[%s4534_s1 + $0x44] ss:$16 sps:$4 sm:$0xff]  }
   0x4   :  { %1829 = vmatprep.subr.bf16.mxu0 %v3033_v4  ;;  %2044 = vmatprep.subr.bf16.mxu1 %v3035_v5  ;;  %v3041_v9 = vld [vmem:[%s4534_s1 + $0x4c] ss:$16 sps:$4 sm:$0xff]   ;;  %v3043_v10 = vld [vmem:[%s4534_s1 + $0x40] ss:$16 sps:$4 sm:$0xff]   ;;  %v3044_v11 = vld [vmem:[%s4534_s1 + $0x48] ss:$16 sps:$4 sm:$0xff]  }
   0x5   :  { %v3045_v12 = vld [vmem:[%s4534_s1 + $0x64] ss:$16 sps:$4 sm:$0xff]   ;;  %v3047_v13 = vld [vmem:[%s4534_s1 + $0x6c] ss:$16 sps:$4 sm:$0xff]   ;;  %v3049_v14 = vld [vmem:[%s4534_s1 + $0x60] ss:$16 sps:$4 sm:$0xff]  }
   0x6   :  { %v3050_v15 = vld [vmem:[%s4534_s1 + $0x68] ss:$16 sps:$4 sm:$0xff]   ;;  %v3051_v16 = vld [vmem:[%s4534_s1 + $0x84] ss:$16 sps:$4 sm:$0xff]   ;;  %v3053_v17 = vld [vmem:[%s4534_s1 + $0x8c] ss:$16 sps:$4 sm:$0xff]  }
   0x7   :  { %1830 = vmatpush1.bf16.msra.mxu0 %v3037_v6  ;;  %2045 = vmatpush1.bf16.msra.mxu1 %v3038_v7  ;;  %v3055_v18 = vld [vmem:[%s4534_s1 + $0x80] ss:$16 sps:$4 sm:$0xff]   ;;  %v3056_v19 = vld [vmem:[%s4534_s1 + $0x88] ss:$16 sps:$4 sm:$0xff]   ;;  %v3057_v20 = vld [vmem:[%s4534_s1 + $0xa4] ss:$16 sps:$4 sm:$0xff]  }
   0x8   :  { %1831 = vmatprep.subr.bf16.mxu0 %v3039_v8  ;;  %2046 = vmatprep.subr.bf16.mxu1 %v3041_v9  ;;  %v3059_v21 = vld [vmem:[%s4534_s1 + $0xac] ss:$16 sps:$4 sm:$0xff]   ;;  %v3061_v22 = vld [vmem:[%s4534_s1 + $0xa0] ss:$16 sps:$4 sm:$0xff]   ;;  %v3062_v23 = vld [vmem:[%s4534_s1 + $0xa8] ss:$16 sps:$4 sm:$0xff]  }
   0x9   :  { %v3063_v24 = vld [vmem:[%s4534_s1 + $0xc4] ss:$16 sps:$4 sm:$0xff]   ;;  %v3065_v25 = vld [vmem:[%s4534_s1 + $0xcc] ss:$16 sps:$4 sm:$0xff]   ;;  %v3067_v26 = vld [vmem:[%s4534_s1 + $0xc0] ss:$16 sps:$4 sm:$0xff]  }
   0xa   :  { %v3068_v27 = vld [vmem:[%s4534_s1 + $0xc8] ss:$16 sps:$4 sm:$0xff]   ;;  %v3069_v28 = vld [vmem:[%s4534_s1 + $0xe4] ss:$16 sps:$4 sm:$0xff]   ;;  %v3071_v29 = vld [vmem:[%s4534_s1 + $0xec] ss:$16 sps:$4 sm:$0xff]  }
   0xb   :  { %1832 = vmatpush1.bf16.msra.mxu0 %v3043_v10  ;;  %2047 = vmatpush1.bf16.msra.mxu1 %v3044_v11  ;;  %v3073_v30 = vld [vmem:[%s4534_s1 + $0xe0] ss:$16 sps:$4 sm:$0xff]   ;;  %v3074_v31 = vld [vmem:[%s4534_s1 + $0xe8] ss:$16 sps:$4 sm:$0xff]   ;;  %v3075_v32 = vld [vmem:[%s4534_s1 + $0x104] ss:$16 sps:$4 sm:$0xff]  }
   0xc   :  { %1833 = vmatprep.subr.bf16.mxu0 %v3045_v12  ;;  %2048 = vmatprep.subr.bf16.mxu1 %v3047_v13  ;;  %v3077_v33 = vld [vmem:[%s4534_s1 + $0x10c] ss:$16 sps:$4 sm:$0xff]   ;;  %v3079_v34 = vld [vmem:[%s4534_s1 + $0x100] ss:$16 sps:$4 sm:$0xff]   ;;  %v3080_v35 = vld [vmem:[%s4534_s1 + $0x108] ss:$16 sps:$4 sm:$0xff]  }
   0xd   :  { %v3081_v36 = vld [vmem:[%s4534_s1 + $0x124] ss:$16 sps:$4 sm:$0xff]   ;;  %v3083_v37 = vld [vmem:[%s4534_s1 + $0x12c] ss:$16 sps:$4 sm:$0xff]   ;;  %v3085_v38 = vld [vmem:[%s4534_s1 + $0x120] ss:$16 sps:$4 sm:$0xff]  }
   0xe   :  { %v3086_v39 = vld [vmem:[%s4534_s1 + $0x128] ss:$16 sps:$4 sm:$0xff]   ;;  %v3087_v40 = vld [vmem:[%s4534_s1 + $0x144] ss:$16 sps:$4 sm:$0xff]   ;;  %v3089_v41 = vld [vmem:[%s4534_s1 + $0x14c] ss:$16 sps:$4 sm:$0xff]  }
   0xf   :  { %1834 = vmatpush1.bf16.msra.mxu0 %v3049_v14  ;;  %2049 = vmatpush1.bf16.msra.mxu1 %v3050_v15  ;;  %v3091_v42 = vld [vmem:[%s4534_s1 + $0x140] ss:$16 sps:$4 sm:$0xff]   ;;  %v3092_v43 = vld [vmem:[%s4534_s1 + $0x148] ss:$16 sps:$4 sm:$0xff]   ;;  %v3093_v44 = vld [vmem:[%s4534_s1 + $0x164] ss:$16 sps:$4 sm:$0xff]  }
  0x10   :  { %1835 = vmatprep.subr.bf16.mxu0 %v3051_v16  ;;  %2050 = vmatprep.subr.bf16.mxu1 %v3053_v17  ;;  %v3095_v45 = vld [vmem:[%s4534_s1 + $0x16c] ss:$16 sps:$4 sm:$0xff]   ;;  %v3097_v46 = vld [vmem:[%s4534_s1 + $0x160] ss:$16 sps:$4 sm:$0xff]   ;;  %v3098_v47 = vld [vmem:[%s4534_s1 + $0x168] ss:$16 sps:$4 sm:$0xff]  }
  0x11   :  { %v3125_v48 = vld [vmem:[%s4535_s0 + $0x4] ss:$36 sps:$4 sm:$0xff]   ;;  %v3101_v50 = vld [vmem:[%s4534_s1 + $0x18c] ss:$16 sps:$4 sm:$0xff]   ;;  %v3103_v51 = vld [vmem:[%s4534_s1 + $0x180] ss:$16 sps:$4 sm:$0xff]  }
  0x12   :  { %v3099_v49 = vld [vmem:[%s4534_s1 + $0x184] ss:$16 sps:$4 sm:$0xff]   ;;  %1859 = vmatprep.mubr.bf16.mxu0 %v3125_v48  ;;  %2074 = vmatprep.mubr.bf16.mxu1 %v3125_v48  ;;  %v3104_v52 = vld [vmem:[%s4534_s1 + $0x188] ss:$16 sps:$4 sm:$0xff]   ;;  %v3107_v54 = vld [vmem:[%s4534_s1 + $0x1ac] ss:$16 sps:$4 sm:$0xff]  }
  0x13   :  { %1836 = vmatpush1.bf16.msra.mxu0 %v3055_v18  ;;  %2051 = vmatpush1.bf16.msra.mxu1 %v3056_v19  ;;  %v3105_v53 = vld [vmem:[%s4534_s1 + $0x1a4] ss:$16 sps:$4 sm:$0xff]   ;;  %v3109_v55 = vld [vmem:[%s4534_s1 + $0x1a0] ss:$16 sps:$4 sm:$0xff]   ;;  %v3110_v56 = vld [vmem:[%s4534_s1 + $0x1a8] ss:$16 sps:$4 sm:$0xff]  }
  0x14   :  { %1837 = vmatprep.subr.bf16.mxu0 %v3057_v20  ;;  %2052 = vmatprep.subr.bf16.mxu1 %v3059_v21  ;;  %v3111_v57 = vld [vmem:[%s4534_s1 + $0x1c4] ss:$16 sps:$4 sm:$0xff]   ;;  %v3113_v58 = vld [vmem:[%s4534_s1 + $0x1cc] ss:$16 sps:$4 sm:$0xff]   ;;  %v3115_v59 = vld [vmem:[%s4534_s1 + $0x1c0] ss:$16 sps:$4 sm:$0xff]  }
  0x15   :  { %v3116_v60 = vld [vmem:[%s4534_s1 + $0x1c8] ss:$16 sps:$4 sm:$0xff]   ;;  %v3117_v61 = vld [vmem:[%s4534_s1 + $0x1e4] ss:$16 sps:$4 sm:$0xff]   ;;  %v3119_v62 = vld [vmem:[%s4534_s1 + $0x1ec] ss:$16 sps:$4 sm:$0xff]  }
  0x16   :  { %v3121_v63 = vld [vmem:[%s4534_s1 + $0x1e0] ss:$16 sps:$4 sm:$0xff]   ;;  %v3122_v0 = vld [vmem:[%s4534_s1 + $0x1e8] ss:$16 sps:$4 sm:$0xff]   ;;  %v3128_v1 = vld [vmem:[%s4534_s1 + $0x204] ss:$16 sps:$4 sm:$0xff]  }
  0x17   :  { %1838 = vmatpush1.bf16.msra.mxu0 %v3061_v22  ;;  %2053 = vmatpush1.bf16.msra.mxu1 %v3062_v23  ;;  %v3131_v2 = vld [vmem:[%s4534_s1 + $0x20c] ss:$16 sps:$4 sm:$0xff]   ;;  %v3123_v3 = vld [vmem:[%s4535_s0] ss:$36 sps:$4 sm:$0xff]   ;;  %v3129_v5 = vld [vmem:[%s4534_s1 + $0x208] ss:$16 sps:$4 sm:$0xff]  }
  0x18   :  { %1839 = vmatprep.subr.bf16.mxu0 %v3063_v24  ;;  %2054 = vmatprep.subr.bf16.mxu1 %v3065_v25  ;;  %v3126_v4 = vld [vmem:[%s4534_s1 + $0x200] ss:$16 sps:$4 sm:$0xff]   ;;  %v3134_v6 = vld [vmem:[%s4534_s1 + $0x224] ss:$16 sps:$4 sm:$0xff]   ;;  %v3137_v7 = vld [vmem:[%s4534_s1 + $0x22c] ss:$16 sps:$4 sm:$0xff]  }
  0x19   :  { %v3132_v8 = vld [vmem:[%s4534_s1 + $0x220] ss:$16 sps:$4 sm:$0xff]   ;;  %v3135_v9 = vld [vmem:[%s4534_s1 + $0x228] ss:$16 sps:$4 sm:$0xff]   ;;  %v3140_v10 = vld [vmem:[%s4534_s1 + $0x244] ss:$16 sps:$4 sm:$0xff]  }
  0x1a   :  { %v3143_v11 = vld [vmem:[%s4534_s1 + $0x24c] ss:$16 sps:$4 sm:$0xff]   ;;  %v3138_v12 = vld [vmem:[%s4534_s1 + $0x240] ss:$16 sps:$4 sm:$0xff]   ;;  %v3141_v13 = vld [vmem:[%s4534_s1 + $0x248] ss:$16 sps:$4 sm:$0xff]  }
  0x1b   :  { %1840 = vmatpush1.bf16.msra.mxu0 %v3067_v26  ;;  %2055 = vmatpush1.bf16.msra.mxu1 %v3068_v27  ;;  %v3146_v14 = vld [vmem:[%s4534_s1 + $0x264] ss:$16 sps:$4 sm:$0xff]   ;;  %v3149_v15 = vld [vmem:[%s4534_s1 + $0x26c] ss:$16 sps:$4 sm:$0xff]   ;;  %v3144_v16 = vld [vmem:[%s4534_s1 + $0x260] ss:$16 sps:$4 sm:$0xff]  }
  0x1c   :  { %1841 = vmatprep.subr.bf16.mxu0 %v3069_v28  ;;  %2056 = vmatprep.subr.bf16.mxu1 %v3071_v29  ;;  %v3147_v17 = vld [vmem:[%s4534_s1 + $0x268] ss:$16 sps:$4 sm:$0xff]   ;;  %v3152_v18 = vld [vmem:[%s4534_s1 + $0x284] ss:$16 sps:$4 sm:$0xff]   ;;  %v3155_v19 = vld [vmem:[%s4534_s1 + $0x28c] ss:$16 sps:$4 sm:$0xff]  }
  0x1d   :  { %v3150_v20 = vld [vmem:[%s4534_s1 + $0x280] ss:$16 sps:$4 sm:$0xff]   ;;  %v3153_v21 = vld [vmem:[%s4534_s1 + $0x288] ss:$16 sps:$4 sm:$0xff]   ;;  %v3158_v22 = vld [vmem:[%s4534_s1 + $0x2a4] ss:$16 sps:$4 sm:$0xff]  }
  0x1e   :  { %v3161_v23 = vld [vmem:[%s4534_s1 + $0x2ac] ss:$16 sps:$4 sm:$0xff]   ;;  %v3156_v24 = vld [vmem:[%s4534_s1 + $0x2a0] ss:$16 sps:$4 sm:$0xff]   ;;  %v3159_v25 = vld [vmem:[%s4534_s1 + $0x2a8] ss:$16 sps:$4 sm:$0xff]  }
  0x1f   :  { %1842 = vmatpush1.bf16.msra.mxu0 %v3073_v30  ;;  %2057 = vmatpush1.bf16.msra.mxu1 %v3074_v31  ;;  %v3164_v26 = vld [vmem:[%s4534_s1 + $0x2c4] ss:$16 sps:$4 sm:$0xff]   ;;  %v3167_v27 = vld [vmem:[%s4534_s1 + $0x2cc] ss:$16 sps:$4 sm:$0xff]   ;;  %v3162_v28 = vld [vmem:[%s4534_s1 + $0x2c0] ss:$16 sps:$4 sm:$0xff]  }
  0x20   :  { %1843 = vmatprep.subr.bf16.mxu0 %v3075_v32  ;;  %2058 = vmatprep.subr.bf16.mxu1 %v3077_v33  ;;  %v3165_v29 = vld [vmem:[%s4534_s1 + $0x2c8] ss:$16 sps:$4 sm:$0xff]   ;;  %v3224_v30 = vld [vmem:[%s4535_s0 + $0xc] ss:$36 sps:$4 sm:$0xff]   ;;  %v3170_v31 = vld [vmem:[%s4534_s1 + $0x2e4] ss:$16 sps:$4 sm:$0xff]  }
  0x21   :  { %v3173_v32 = vld [vmem:[%s4534_s1 + $0x2ec] ss:$16 sps:$4 sm:$0xff]   ;;  %v3168_v33 = vld [vmem:[%s4534_s1 + $0x2e0] ss:$16 sps:$4 sm:$0xff]  }
  0x22   :  { %v3197_v48 = vld [vmem:[%s4534_s1 + $0x36c] ss:$16 sps:$4 sm:$0xff]  }
  0x23   :  { %1844 = vmatpush1.bf16.msra.mxu0 %v3079_v34  ;;  %2059 = vmatpush1.bf16.msra.mxu1 %v3080_v35  ;;  %v3171_v34 = vld [vmem:[%s4534_s1 + $0x2e8] ss:$16 sps:$4 sm:$0xff]   ;;  %v3176_v35 = vld [vmem:[%s4534_s1 + $0x304] ss:$16 sps:$4 sm:$0xff]  }
  0x24   :  { %1845 = vmatprep.subr.bf16.mxu0 %v3081_v36  ;;  %2060 = vmatprep.subr.bf16.mxu1 %v3083_v37  ;;  %v3179_v36 = vld [vmem:[%s4534_s1 + $0x30c] ss:$16 sps:$4 sm:$0xff]   ;;  %v3174_v37 = vld [vmem:[%s4534_s1 + $0x300] ss:$16 sps:$4 sm:$0xff]  }
  0x27   :  { %1846 = vmatpush1.bf16.msra.mxu0 %v3085_v38  ;;  %2061 = vmatpush1.bf16.msra.mxu1 %v3086_v39  ;;  %v3177_v38 = vld [vmem:[%s4534_s1 + $0x308] ss:$16 sps:$4 sm:$0xff]   ;;  %v3182_v39 = vld [vmem:[%s4534_s1 + $0x324] ss:$16 sps:$4 sm:$0xff]  }
  0x28   :  { %1847 = vmatprep.subr.bf16.mxu0 %v3087_v40  ;;  %2062 = vmatprep.subr.bf16.mxu1 %v3089_v41  ;;  %v3185_v40 = vld [vmem:[%s4534_s1 + $0x32c] ss:$16 sps:$4 sm:$0xff]   ;;  %v3180_v41 = vld [vmem:[%s4534_s1 + $0x320] ss:$16 sps:$4 sm:$0xff]  }
  0x2b   :  { %1848 = vmatpush1.bf16.msra.mxu0 %v3091_v42  ;;  %2063 = vmatpush1.bf16.msra.mxu1 %v3092_v43  ;;  %v3183_v42 = vld [vmem:[%s4534_s1 + $0x328] ss:$16 sps:$4 sm:$0xff]   ;;  %v3188_v43 = vld [vmem:[%s4534_s1 + $0x344] ss:$16 sps:$4 sm:$0xff]  }
  0x2c   :  { %1849 = vmatprep.subr.bf16.mxu0 %v3093_v44  ;;  %2064 = vmatprep.subr.bf16.mxu1 %v3095_v45  ;;  %v3191_v44 = vld [vmem:[%s4534_s1 + $0x34c] ss:$16 sps:$4 sm:$0xff]   ;;  %v3186_v45 = vld [vmem:[%s4534_s1 + $0x340] ss:$16 sps:$4 sm:$0xff]  }
  0x2f   :  { %1850 = vmatpush1.bf16.msra.mxu0 %v3097_v46  ;;  %2065 = vmatpush1.bf16.msra.mxu1 %v3098_v47  ;;  %v3189_v46 = vld [vmem:[%s4534_s1 + $0x348] ss:$16 sps:$4 sm:$0xff]   ;;  %v3194_v47 = vld [vmem:[%s4534_s1 + $0x364] ss:$16 sps:$4 sm:$0xff]  }
  0x30   :  { %1851 = vmatprep.subr.bf16.mxu0 %v3099_v49  ;;  %2066 = vmatprep.subr.bf16.mxu1 %v3101_v50  ;;  %v3192_v49 = vld [vmem:[%s4534_s1 + $0x360] ss:$16 sps:$4 sm:$0xff]   ;;  %v3195_v50 = vld [vmem:[%s4534_s1 + $0x368] ss:$16 sps:$4 sm:$0xff]  }
  0x33   :  { %1852 = vmatpush1.bf16.msra.mxu0 %v3103_v51  ;;  %2067 = vmatpush1.bf16.msra.mxu1 %v3104_v52  ;;  %v3200_v51 = vld [vmem:[%s4534_s1 + $0x384] ss:$16 sps:$4 sm:$0xff]   ;;  %v3203_v52 = vld [vmem:[%s4534_s1 + $0x38c] ss:$16 sps:$4 sm:$0xff]  }
  0x34   :  { %1853 = vmatprep.subr.bf16.mxu0 %v3105_v53  ;;  %2068 = vmatprep.subr.bf16.mxu1 %v3107_v54  ;;  %v3198_v53 = vld [vmem:[%s4534_s1 + $0x380] ss:$16 sps:$4 sm:$0xff]   ;;  %v3201_v54 = vld [vmem:[%s4534_s1 + $0x388] ss:$16 sps:$4 sm:$0xff]  }
  0x37   :  { %1854 = vmatpush1.bf16.msra.mxu0 %v3109_v55  ;;  %2069 = vmatpush1.bf16.msra.mxu1 %v3110_v56  ;;  %v3206_v55 = vld [vmem:[%s4534_s1 + $0x3a4] ss:$16 sps:$4 sm:$0xff]   ;;  %v3209_v56 = vld [vmem:[%s4534_s1 + $0x3ac] ss:$16 sps:$4 sm:$0xff]  }
  0x38   :  { %1855 = vmatprep.subr.bf16.mxu0 %v3111_v57  ;;  %2070 = vmatprep.subr.bf16.mxu1 %v3113_v58  ;;  %v3204_v57 = vld [vmem:[%s4534_s1 + $0x3a0] ss:$16 sps:$4 sm:$0xff]   ;;  %v3207_v58 = vld [vmem:[%s4534_s1 + $0x3a8] ss:$16 sps:$4 sm:$0xff]  }
  0x3b   :  { %1856 = vmatpush1.bf16.msra.mxu0 %v3115_v59  ;;  %2071 = vmatpush1.bf16.msra.mxu1 %v3116_v60  ;;  %v3212_v59 = vld [vmem:[%s4534_s1 + $0x3c4] ss:$16 sps:$4 sm:$0xff]   ;;  %v3215_v60 = vld [vmem:[%s4534_s1 + $0x3cc] ss:$16 sps:$4 sm:$0xff]  }
  0x3c   :  { %1857 = vmatprep.subr.bf16.mxu0 %v3117_v61  ;;  %2072 = vmatprep.subr.bf16.mxu1 %v3119_v62  ;;  %v3210_v61 = vld [vmem:[%s4534_s1 + $0x3c0] ss:$16 sps:$4 sm:$0xff]   ;;  %v3213_v62 = vld [vmem:[%s4534_s1 + $0x3c8] ss:$16 sps:$4 sm:$0xff]  }
  0x3f   :  { %1858 = vmatpush1.bf16.msra.mxu0 %v3121_v63  ;;  %2073 = vmatpush1.bf16.msra.mxu1 %v3122_v0  ;;  %v3218_v63 = vld [vmem:[%s4534_s1 + $0x3e4] ss:$16 sps:$4 sm:$0xff]   ;;  %v3221_v0 = vld [vmem:[%s4534_s1 + $0x3ec] ss:$16 sps:$4 sm:$0xff]  }
  0x40   :  { %1870 = vmatprep.subr.bf16.mxu0 %v3128_v1  ;;  %2085 = vmatprep.subr.bf16.mxu1 %v3131_v2  ;;  %v3216_v1 = vld [vmem:[%s4534_s1 + $0x3e0] ss:$16 sps:$4 sm:$0xff]   ;;  %v3219_v2 = vld [vmem:[%s4534_s1 + $0x3e8] ss:$16 sps:$4 sm:$0xff]  }
  0x42   :  { %1860 = vmatmul.mubr.bf16.vlgmr.msra.gmra.mrb[0].mxu0 %v3123_v3  ;;  %2075 = vmatmul.mubr.bf16.vlgmr.msra.gmra.mrb[0].mxu1 %v3123_v3  ;;  %v3227_v3 = vld [vmem:[%s4534_s1 + $0x404] ss:$16 sps:$4 sm:$0xff]  }
  0x43   :  { %1871 = vmatpush1.bf16.msra.mxu0 %v3126_v4  ;;  %2086 = vmatpush1.bf16.msra.mxu1 %v3129_v5  ;;  %v3230_v4 = vld [vmem:[%s4534_s1 + $0x40c] ss:$16 sps:$4 sm:$0xff]  }
  0x44   :  { %1872 = vmatprep.subr.bf16.mxu0 %v3134_v6  ;;  %2087 = vmatprep.subr.bf16.mxu1 %v3137_v7  ;;  %v3222_v5 = vld [vmem:[%s4535_s0 + $0x8] ss:$36 sps:$4 sm:$0xff]   ;;  %v3225_v6 = vld [vmem:[%s4534_s1 + $0x400] ss:$16 sps:$4 sm:$0xff]  }
  0x45   :  { %1902 = vmatprep.mubr.bf16.mxu0 %v3224_v30  ;;  %2117 = vmatprep.mubr.bf16.mxu1 %v3224_v30  ;;  %v3228_v7 = vld [vmem:[%s4534_s1 + $0x408] ss:$16 sps:$4 sm:$0xff]   ;;  %v3266_v30 = vld [vmem:[%s4534_s1 + $0x4cc] ss:$16 sps:$4 sm:$0xff]  }
  0x47   :  { %1873 = vmatpush1.bf16.msra.mxu0 %v3132_v8  ;;  %2088 = vmatpush1.bf16.msra.mxu1 %v3135_v9  ;;  %v3233_v8 = vld [vmem:[%s4534_s1 + $0x424] ss:$16 sps:$4 sm:$0xff]   ;;  %v3236_v9 = vld [vmem:[%s4534_s1 + $0x42c] ss:$16 sps:$4 sm:$0xff]  }
  0x48   :  { %1874 = vmatprep.subr.bf16.mxu0 %v3140_v10  ;;  %2089 = vmatprep.subr.bf16.mxu1 %v3143_v11  ;;  %v3231_v10 = vld [vmem:[%s4534_s1 + $0x420] ss:$16 sps:$4 sm:$0xff]   ;;  %v3234_v11 = vld [vmem:[%s4534_s1 + $0x428] ss:$16 sps:$4 sm:$0xff]  }
  0x4b   :  { %1875 = vmatpush1.bf16.msra.mxu0 %v3138_v12  ;;  %2090 = vmatpush1.bf16.msra.mxu1 %v3141_v13  ;;  %v3323_v12 = vld [vmem:[%s4535_s0 + $0x14] ss:$36 sps:$4 sm:$0xff]  }
  0x4c   :  { %1876 = vmatprep.subr.bf16.mxu0 %v3146_v14  ;;  %2091 = vmatprep.subr.bf16.mxu1 %v3149_v15  ;;  %v3239_v13 = vld [vmem:[%s4534_s1 + $0x444] ss:$16 sps:$4 sm:$0xff]   ;;  %v3242_v14 = vld [vmem:[%s4534_s1 + $0x44c] ss:$16 sps:$4 sm:$0xff]   ;;  %v3237_v15 = vld [vmem:[%s4534_s1 + $0x440] ss:$16 sps:$4 sm:$0xff]  }
  0x4f   :  { %1877 = vmatpush1.bf16.msra.mxu0 %v3144_v16  ;;  %2092 = vmatpush1.bf16.msra.mxu1 %v3147_v17  ;;  %v3240_v16 = vld [vmem:[%s4534_s1 + $0x448] ss:$16 sps:$4 sm:$0xff]   ;;  %v3245_v17 = vld [vmem:[%s4534_s1 + $0x464] ss:$16 sps:$4 sm:$0xff]  }
  0x50   :  { %1878 = vmatprep.subr.bf16.mxu0 %v3152_v18  ;;  %2093 = vmatprep.subr.bf16.mxu1 %v3155_v19  ;;  %v3248_v18 = vld [vmem:[%s4534_s1 + $0x46c] ss:$16 sps:$4 sm:$0xff]   ;;  %v3243_v19 = vld [vmem:[%s4534_s1 + $0x460] ss:$16 sps:$4 sm:$0xff]  }
  0x53   :  { %1879 = vmatpush1.bf16.msra.mxu0 %v3150_v20  ;;  %2094 = vmatpush1.bf16.msra.mxu1 %v3153_v21  ;;  %v3246_v20 = vld [vmem:[%s4534_s1 + $0x468] ss:$16 sps:$4 sm:$0xff]   ;;  %v3251_v21 = vld [vmem:[%s4534_s1 + $0x484] ss:$16 sps:$4 sm:$0xff]  }
  0x54   :  { %1880 = vmatprep.subr.bf16.mxu0 %v3158_v22  ;;  %2095 = vmatprep.subr.bf16.mxu1 %v3161_v23  ;;  %v3254_v22 = vld [vmem:[%s4534_s1 + $0x48c] ss:$16 sps:$4 sm:$0xff]   ;;  %v3249_v23 = vld [vmem:[%s4534_s1 + $0x480] ss:$16 sps:$4 sm:$0xff]  }
  0x57   :  { %1881 = vmatpush1.bf16.msra.mxu0 %v3156_v24  ;;  %2096 = vmatpush1.bf16.msra.mxu1 %v3159_v25  ;;  %v3252_v24 = vld [vmem:[%s4534_s1 + $0x488] ss:$16 sps:$4 sm:$0xff]   ;;  %v3257_v25 = vld [vmem:[%s4534_s1 + $0x4a4] ss:$16 sps:$4 sm:$0xff]  }
  0x58   :  { %1882 = vmatprep.subr.bf16.mxu0 %v3164_v26  ;;  %2097 = vmatprep.subr.bf16.mxu1 %v3167_v27  ;;  %v3260_v26 = vld [vmem:[%s4534_s1 + $0x4ac] ss:$16 sps:$4 sm:$0xff]   ;;  %v3255_v27 = vld [vmem:[%s4534_s1 + $0x4a0] ss:$16 sps:$4 sm:$0xff]  }
  0x5b   :  { %1883 = vmatpush1.bf16.msra.mxu0 %v3162_v28  ;;  %2098 = vmatpush1.bf16.msra.mxu1 %v3165_v29  ;;  %v3258_v28 = vld [vmem:[%s4534_s1 + $0x4a8] ss:$16 sps:$4 sm:$0xff]   ;;  %v3263_v29 = vld [vmem:[%s4534_s1 + $0x4c4] ss:$16 sps:$4 sm:$0xff]  }
  0x5c   :  { %1884 = vmatprep.subr.bf16.mxu0 %v3170_v31  ;;  %2099 = vmatprep.subr.bf16.mxu1 %v3173_v32  ;;  %v3261_v31 = vld [vmem:[%s4534_s1 + $0x4c0] ss:$16 sps:$4 sm:$0xff]   ;;  %v3264_v32 = vld [vmem:[%s4534_s1 + $0x4c8] ss:$16 sps:$4 sm:$0xff]  }
  0x5f   :  { %1885 = vmatpush1.bf16.msra.mxu0 %v3168_v33  ;;  %2100 = vmatpush1.bf16.msra.mxu1 %v3171_v34  ;;  %v3269_v33 = vld [vmem:[%s4534_s1 + $0x4e4] ss:$16 sps:$4 sm:$0xff]   ;;  %v3272_v34 = vld [vmem:[%s4534_s1 + $0x4ec] ss:$16 sps:$4 sm:$0xff]  }
  0x60   :  { %1886 = vmatprep.subr.bf16.mxu0 %v3176_v35  ;;  %2101 = vmatprep.subr.bf16.mxu1 %v3179_v36  ;;  %v3267_v35 = vld [vmem:[%s4534_s1 + $0x4e0] ss:$16 sps:$4 sm:$0xff]   ;;  %v3270_v36 = vld [vmem:[%s4534_s1 + $0x4e8] ss:$16 sps:$4 sm:$0xff]  }
  0x63   :  { %1887 = vmatpush1.bf16.msra.mxu0 %v3174_v37  ;;  %2102 = vmatpush1.bf16.msra.mxu1 %v3177_v38  ;;  %v3275_v37 = vld [vmem:[%s4534_s1 + $0x504] ss:$16 sps:$4 sm:$0xff]   ;;  %v3278_v38 = vld [vmem:[%s4534_s1 + $0x50c] ss:$16 sps:$4 sm:$0xff]  }
  0x64   :  { %1888 = vmatprep.subr.bf16.mxu0 %v3182_v39  ;;  %2103 = vmatprep.subr.bf16.mxu1 %v3185_v40  ;;  %v3273_v39 = vld [vmem:[%s4534_s1 + $0x500] ss:$16 sps:$4 sm:$0xff]   ;;  %v3276_v40 = vld [vmem:[%s4534_s1 + $0x508] ss:$16 sps:$4 sm:$0xff]  }
  0x67   :  { %1889 = vmatpush1.bf16.msra.mxu0 %v3180_v41  ;;  %2104 = vmatpush1.bf16.msra.mxu1 %v3183_v42  ;;  %v3281_v41 = vld [vmem:[%s4534_s1 + $0x524] ss:$16 sps:$4 sm:$0xff]   ;;  %v3284_v42 = vld [vmem:[%s4534_s1 + $0x52c] ss:$16 sps:$4 sm:$0xff]  }
  0x68   :  { %1890 = vmatprep.subr.bf16.mxu0 %v3188_v43  ;;  %2105 = vmatprep.subr.bf16.mxu1 %v3191_v44  ;;  %v3279_v43 = vld [vmem:[%s4534_s1 + $0x520] ss:$16 sps:$4 sm:$0xff]   ;;  %v3282_v44 = vld [vmem:[%s4534_s1 + $0x528] ss:$16 sps:$4 sm:$0xff]  }
  0x6b   :  { %1891 = vmatpush1.bf16.msra.mxu0 %v3186_v45  ;;  %2106 = vmatpush1.bf16.msra.mxu1 %v3189_v46  ;;  %v3287_v45 = vld [vmem:[%s4534_s1 + $0x544] ss:$16 sps:$4 sm:$0xff]   ;;  %v3290_v46 = vld [vmem:[%s4534_s1 + $0x54c] ss:$16 sps:$4 sm:$0xff]  }
  0x6c   :  { %1892 = vmatprep.subr.bf16.mxu0 %v3194_v47  ;;  %2107 = vmatprep.subr.bf16.mxu1 %v3197_v48  ;;  %v3285_v47 = vld [vmem:[%s4534_s1 + $0x540] ss:$16 sps:$4 sm:$0xff]   ;;  %v3288_v48 = vld [vmem:[%s4534_s1 + $0x548] ss:$16 sps:$4 sm:$0xff]  }
  0x6f   :  { %1893 = vmatpush1.bf16.msra.mxu0 %v3192_v49  ;;  %2108 = vmatpush1.bf16.msra.mxu1 %v3195_v50  ;;  %v3293_v49 = vld [vmem:[%s4534_s1 + $0x564] ss:$16 sps:$4 sm:$0xff]   ;;  %v3296_v50 = vld [vmem:[%s4534_s1 + $0x56c] ss:$16 sps:$4 sm:$0xff]  }
  0x70   :  { %1894 = vmatprep.subr.bf16.mxu0 %v3200_v51  ;;  %2109 = vmatprep.subr.bf16.mxu1 %v3203_v52  ;;  %v3291_v51 = vld [vmem:[%s4534_s1 + $0x560] ss:$16 sps:$4 sm:$0xff]   ;;  %v3294_v52 = vld [vmem:[%s4534_s1 + $0x568] ss:$16 sps:$4 sm:$0xff]  }
  0x73   :  { %1895 = vmatpush1.bf16.msra.mxu0 %v3198_v53  ;;  %2110 = vmatpush1.bf16.msra.mxu1 %v3201_v54  ;;  %v3299_v53 = vld [vmem:[%s4534_s1 + $0x584] ss:$16 sps:$4 sm:$0xff]   ;;  %v3302_v54 = vld [vmem:[%s4534_s1 + $0x58c] ss:$16 sps:$4 sm:$0xff]  }
  0x74   :  { %1896 = vmatprep.subr.bf16.mxu0 %v3206_v55  ;;  %2111 = vmatprep.subr.bf16.mxu1 %v3209_v56  ;;  %v3297_v55 = vld [vmem:[%s4534_s1 + $0x580] ss:$16 sps:$4 sm:$0xff]   ;;  %v3300_v56 = vld [vmem:[%s4534_s1 + $0x588] ss:$16 sps:$4 sm:$0xff]  }
  0x77   :  { %1897 = vmatpush1.bf16.msra.mxu0 %v3204_v57  ;;  %2112 = vmatpush1.bf16.msra.mxu1 %v3207_v58  ;;  %v3305_v57 = vld [vmem:[%s4534_s1 + $0x5a4] ss:$16 sps:$4 sm:$0xff]   ;;  %v3308_v58 = vld [vmem:[%s4534_s1 + $0x5ac] ss:$16 sps:$4 sm:$0xff]  }
  0x78   :  { %1898 = vmatprep.subr.bf16.mxu0 %v3212_v59  ;;  %2113 = vmatprep.subr.bf16.mxu1 %v3215_v60  ;;  %v3303_v59 = vld [vmem:[%s4534_s1 + $0x5a0] ss:$16 sps:$4 sm:$0xff]   ;;  %v3306_v60 = vld [vmem:[%s4534_s1 + $0x5a8] ss:$16 sps:$4 sm:$0xff]  }
  0x7b   :  { %1899 = vmatpush1.bf16.msra.mxu0 %v3210_v61  ;;  %2114 = vmatpush1.bf16.msra.mxu1 %v3213_v62  ;;  %v3311_v61 = vld [vmem:[%s4534_s1 + $0x5c4] ss:$16 sps:$4 sm:$0xff]   ;;  %v3314_v62 = vld [vmem:[%s4534_s1 + $0x5cc] ss:$16 sps:$4 sm:$0xff]  }
  0x7c   :  { %1900 = vmatprep.subr.bf16.mxu0 %v3218_v63  ;;  %2115 = vmatprep.subr.bf16.mxu1 %v3221_v0  ;;  %v3309_v63 = vld [vmem:[%s4534_s1 + $0x5c0] ss:$16 sps:$4 sm:$0xff]   ;;  %v3312_v0 = vld [vmem:[%s4534_s1 + $0x5c8] ss:$16 sps:$4 sm:$0xff]  }
  0x7f   :  { %1901 = vmatpush1.bf16.msra.mxu0 %v3216_v1  ;;  %2116 = vmatpush1.bf16.msra.mxu1 %v3219_v2  ;;  %v3317_v1 = vld [vmem:[%s4534_s1 + $0x5e4] ss:$16 sps:$4 sm:$0xff]   ;;  %v3320_v2 = vld [vmem:[%s4534_s1 + $0x5ec] ss:$16 sps:$4 sm:$0xff]  }
  0x80   :  { %1913 = vmatprep.subr.bf16.mxu0 %v3227_v3  ;;  %2128 = vmatprep.subr.bf16.mxu1 %v3230_v4  ;;  %v3315_v3 = vld [vmem:[%s4534_s1 + $0x5e0] ss:$16 sps:$4 sm:$0xff]   ;;  %v3318_v4 = vld [vmem:[%s4534_s1 + $0x5e8] ss:$16 sps:$4 sm:$0xff]  }
  0x82   :  { %1903 = vmatmul.mubr.bf16.vlgmr.msra.gmra.mrb[0].mxu0 %v3222_v5  ;;  %2118 = vmatmul.mubr.bf16.vlgmr.msra.gmra.mrb[0].mxu1 %v3222_v5  ;;  %v3326_v5 = vld [vmem:[%s4534_s1 + $0x604] ss:$16 sps:$4 sm:$0xff]  }
  0x83   :  { %1914 = vmatpush1.bf16.msra.mxu0 %v3225_v6  ;;  %2129 = vmatpush1.bf16.msra.mxu1 %v3228_v7  ;;  %v3329_v6 = vld [vmem:[%s4534_s1 + $0x60c] ss:$16 sps:$4 sm:$0xff]   ;;  %v3321_v7 = vld [vmem:[%s4535_s0 + $0x10] ss:$36 sps:$4 sm:$0xff]  }
  0x84   :  { %1915 = vmatprep.subr.bf16.mxu0 %v3233_v8  ;;  %2130 = vmatprep.subr.bf16.mxu1 %v3236_v9  ;;  %v3324_v8 = vld [vmem:[%s4534_s1 + $0x600] ss:$16 sps:$4 sm:$0xff]   ;;  %v3327_v9 = vld [vmem:[%s4534_s1 + $0x608] ss:$16 sps:$4 sm:$0xff]  }
  0x85   :  { %1945 = vmatprep.mubr.bf16.mxu0 %v3323_v12  ;;  %2160 = vmatprep.mubr.bf16.mxu1 %v3323_v12  ;;  %v3422_v12 = vld [vmem:[%s4535_s0 + $0x1c] ss:$36 sps:$4 sm:$0xff]  }
  0x87   :  { %1916 = vmatpush1.bf16.msra.mxu0 %v3231_v10  ;;  %2131 = vmatpush1.bf16.msra.mxu1 %v3234_v11  ;;  %v3332_v10 = vld [vmem:[%s4534_s1 + $0x624] ss:$16 sps:$4 sm:$0xff]   ;;  %v3335_v11 = vld [vmem:[%s4534_s1 + $0x62c] ss:$16 sps:$4 sm:$0xff]  }
  0x88   :  { %1917 = vmatprep.subr.bf16.mxu0 %v3239_v13  ;;  %2132 = vmatprep.subr.bf16.mxu1 %v3242_v14  ;;  %v3330_v13 = vld [vmem:[%s4534_s1 + $0x620] ss:$16 sps:$4 sm:$0xff]   ;;  %v3333_v14 = vld [vmem:[%s4534_s1 + $0x628] ss:$16 sps:$4 sm:$0xff]  }
  0x8b   :  { %1918 = vmatpush1.bf16.msra.mxu0 %v3237_v15  ;;  %2133 = vmatpush1.bf16.msra.mxu1 %v3240_v16  ;;  %v3338_v15 = vld [vmem:[%s4534_s1 + $0x644] ss:$16 sps:$4 sm:$0xff]   ;;  %v3341_v16 = vld [vmem:[%s4534_s1 + $0x64c] ss:$16 sps:$4 sm:$0xff]  }
  0x8c   :  { %1919 = vmatprep.subr.bf16.mxu0 %v3245_v17  ;;  %2134 = vmatprep.subr.bf16.mxu1 %v3248_v18  ;;  %v3336_v17 = vld [vmem:[%s4534_s1 + $0x640] ss:$16 sps:$4 sm:$0xff]   ;;  %v3339_v18 = vld [vmem:[%s4534_s1 + $0x648] ss:$16 sps:$4 sm:$0xff]  }
  0x8f   :  { %1920 = vmatpush1.bf16.msra.mxu0 %v3243_v19  ;;  %2135 = vmatpush1.bf16.msra.mxu1 %v3246_v20  ;;  %v3344_v19 = vld [vmem:[%s4534_s1 + $0x664] ss:$16 sps:$4 sm:$0xff]   ;;  %v3347_v20 = vld [vmem:[%s4534_s1 + $0x66c] ss:$16 sps:$4 sm:$0xff]  }
  0x90   :  { %1921 = vmatprep.subr.bf16.mxu0 %v3251_v21  ;;  %2136 = vmatprep.subr.bf16.mxu1 %v3254_v22  ;;  %v3342_v21 = vld [vmem:[%s4534_s1 + $0x660] ss:$16 sps:$4 sm:$0xff]   ;;  %v3345_v22 = vld [vmem:[%s4534_s1 + $0x668] ss:$16 sps:$4 sm:$0xff]  }
  0x93   :  { %1922 = vmatpush1.bf16.msra.mxu0 %v3249_v23  ;;  %2137 = vmatpush1.bf16.msra.mxu1 %v3252_v24  ;;  %v3350_v23 = vld [vmem:[%s4534_s1 + $0x684] ss:$16 sps:$4 sm:$0xff]   ;;  %v3353_v24 = vld [vmem:[%s4534_s1 + $0x68c] ss:$16 sps:$4 sm:$0xff]  }
  0x94   :  { %1923 = vmatprep.subr.bf16.mxu0 %v3257_v25  ;;  %2138 = vmatprep.subr.bf16.mxu1 %v3260_v26  ;;  %v3348_v25 = vld [vmem:[%s4534_s1 + $0x680] ss:$16 sps:$4 sm:$0xff]   ;;  %v3351_v26 = vld [vmem:[%s4534_s1 + $0x688] ss:$16 sps:$4 sm:$0xff]  }
  0x97   :  { %1924 = vmatpush1.bf16.msra.mxu0 %v3255_v27  ;;  %2139 = vmatpush1.bf16.msra.mxu1 %v3258_v28  ;;  %v3356_v27 = vld [vmem:[%s4534_s1 + $0x6a4] ss:$16 sps:$4 sm:$0xff]   ;;  %v3359_v28 = vld [vmem:[%s4534_s1 + $0x6ac] ss:$16 sps:$4 sm:$0xff]  }
  0x98   :  { %1925 = vmatprep.subr.bf16.mxu0 %v3263_v29  ;;  %2140 = vmatprep.subr.bf16.mxu1 %v3266_v30  ;;  %v3354_v29 = vld [vmem:[%s4534_s1 + $0x6a0] ss:$16 sps:$4 sm:$0xff]   ;;  %v3357_v30 = vld [vmem:[%s4534_s1 + $0x6a8] ss:$16 sps:$4 sm:$0xff]  }
  0x9b   :  { %1926 = vmatpush1.bf16.msra.mxu0 %v3261_v31  ;;  %2141 = vmatpush1.bf16.msra.mxu1 %v3264_v32  ;;  %v3362_v31 = vld [vmem:[%s4534_s1 + $0x6c4] ss:$16 sps:$4 sm:$0xff]   ;;  %v3365_v32 = vld [vmem:[%s4534_s1 + $0x6cc] ss:$16 sps:$4 sm:$0xff]  }
  0x9c   :  { %1927 = vmatprep.subr.bf16.mxu0 %v3269_v33  ;;  %2142 = vmatprep.subr.bf16.mxu1 %v3272_v34  ;;  %v3360_v33 = vld [vmem:[%s4534_s1 + $0x6c0] ss:$16 sps:$4 sm:$0xff]   ;;  %v3363_v34 = vld [vmem:[%s4534_s1 + $0x6c8] ss:$16 sps:$4 sm:$0xff]  }
  0x9f   :  { %1928 = vmatpush1.bf16.msra.mxu0 %v3267_v35  ;;  %2143 = vmatpush1.bf16.msra.mxu1 %v3270_v36  ;;  %v3368_v35 = vld [vmem:[%s4534_s1 + $0x6e4] ss:$16 sps:$4 sm:$0xff]   ;;  %v3371_v36 = vld [vmem:[%s4534_s1 + $0x6ec] ss:$16 sps:$4 sm:$0xff]  }
  0xa0   :  { %1929 = vmatprep.subr.bf16.mxu0 %v3275_v37  ;;  %2144 = vmatprep.subr.bf16.mxu1 %v3278_v38  ;;  %v3366_v37 = vld [vmem:[%s4534_s1 + $0x6e0] ss:$16 sps:$4 sm:$0xff]   ;;  %v3369_v38 = vld [vmem:[%s4534_s1 + $0x6e8] ss:$16 sps:$4 sm:$0xff]  }
  0xa3   :  { %1930 = vmatpush1.bf16.msra.mxu0 %v3273_v39  ;;  %2145 = vmatpush1.bf16.msra.mxu1 %v3276_v40  ;;  %v3374_v39 = vld [vmem:[%s4534_s1 + $0x704] ss:$16 sps:$4 sm:$0xff]   ;;  %v3377_v40 = vld [vmem:[%s4534_s1 + $0x70c] ss:$16 sps:$4 sm:$0xff]  }
  0xa4   :  { %1931 = vmatprep.subr.bf16.mxu0 %v3281_v41  ;;  %2146 = vmatprep.subr.bf16.mxu1 %v3284_v42  ;;  %v3372_v41 = vld [vmem:[%s4534_s1 + $0x700] ss:$16 sps:$4 sm:$0xff]   ;;  %v3375_v42 = vld [vmem:[%s4534_s1 + $0x708] ss:$16 sps:$4 sm:$0xff]  }
  0xa7   :  { %1932 = vmatpush1.bf16.msra.mxu0 %v3279_v43  ;;  %2147 = vmatpush1.bf16.msra.mxu1 %v3282_v44  ;;  %v3380_v43 = vld [vmem:[%s4534_s1 + $0x724] ss:$16 sps:$4 sm:$0xff]   ;;  %v3383_v44 = vld [vmem:[%s4534_s1 + $0x72c] ss:$16 sps:$4 sm:$0xff]  }
  0xa8   :  { %1933 = vmatprep.subr.bf16.mxu0 %v3287_v45  ;;  %2148 = vmatprep.subr.bf16.mxu1 %v3290_v46  ;;  %v3378_v45 = vld [vmem:[%s4534_s1 + $0x720] ss:$16 sps:$4 sm:$0xff]   ;;  %v3381_v46 = vld [vmem:[%s4534_s1 + $0x728] ss:$16 sps:$4 sm:$0xff]  }
  0xab   :  { %1934 = vmatpush1.bf16.msra.mxu0 %v3285_v47  ;;  %2149 = vmatpush1.bf16.msra.mxu1 %v3288_v48  ;;  %v3386_v47 = vld [vmem:[%s4534_s1 + $0x744] ss:$16 sps:$4 sm:$0xff]   ;;  %v3389_v48 = vld [vmem:[%s4534_s1 + $0x74c] ss:$16 sps:$4 sm:$0xff]  }
  0xac   :  { %1935 = vmatprep.subr.bf16.mxu0 %v3293_v49  ;;  %2150 = vmatprep.subr.bf16.mxu1 %v3296_v50  ;;  %v3384_v49 = vld [vmem:[%s4534_s1 + $0x740] ss:$16 sps:$4 sm:$0xff]   ;;  %v3387_v50 = vld [vmem:[%s4534_s1 + $0x748] ss:$16 sps:$4 sm:$0xff]  }
  0xaf   :  { %1936 = vmatpush1.bf16.msra.mxu0 %v3291_v51  ;;  %2151 = vmatpush1.bf16.msra.mxu1 %v3294_v52  ;;  %v3392_v51 = vld [vmem:[%s4534_s1 + $0x764] ss:$16 sps:$4 sm:$0xff]   ;;  %v3395_v52 = vld [vmem:[%s4534_s1 + $0x76c] ss:$16 sps:$4 sm:$0xff]  }
  0xb0   :  { %1937 = vmatprep.subr.bf16.mxu0 %v3299_v53  ;;  %2152 = vmatprep.subr.bf16.mxu1 %v3302_v54  ;;  %v3390_v53 = vld [vmem:[%s4534_s1 + $0x760] ss:$16 sps:$4 sm:$0xff]   ;;  %v3393_v54 = vld [vmem:[%s4534_s1 + $0x768] ss:$16 sps:$4 sm:$0xff]  }
  0xb3   :  { %1938 = vmatpush1.bf16.msra.mxu0 %v3297_v55  ;;  %2153 = vmatpush1.bf16.msra.mxu1 %v3300_v56  ;;  %v3398_v55 = vld [vmem:[%s4534_s1 + $0x784] ss:$16 sps:$4 sm:$0xff]   ;;  %v3401_v56 = vld [vmem:[%s4534_s1 + $0x78c] ss:$16 sps:$4 sm:$0xff]  }
  0xb4   :  { %1939 = vmatprep.subr.bf16.mxu0 %v3305_v57  ;;  %2154 = vmatprep.subr.bf16.mxu1 %v3308_v58  ;;  %v3396_v57 = vld [vmem:[%s4534_s1 + $0x780] ss:$16 sps:$4 sm:$0xff]   ;;  %v3399_v58 = vld [vmem:[%s4534_s1 + $0x788] ss:$16 sps:$4 sm:$0xff]  }
  0xb7   :  { %1940 = vmatpush1.bf16.msra.mxu0 %v3303_v59  ;;  %2155 = vmatpush1.bf16.msra.mxu1 %v3306_v60  ;;  %v3404_v59 = vld [vmem:[%s4534_s1 + $0x7a4] ss:$16 sps:$4 sm:$0xff]   ;;  %v3407_v60 = vld [vmem:[%s4534_s1 + $0x7ac] ss:$16 sps:$4 sm:$0xff]  }
  0xb8   :  { %1941 = vmatprep.subr.bf16.mxu0 %v3311_v61  ;;  %2156 = vmatprep.subr.bf16.mxu1 %v3314_v62  ;;  %v3402_v61 = vld [vmem:[%s4534_s1 + $0x7a0] ss:$16 sps:$4 sm:$0xff]   ;;  %v3405_v62 = vld [vmem:[%s4534_s1 + $0x7a8] ss:$16 sps:$4 sm:$0xff]  }
  0xbb   :  { %1942 = vmatpush1.bf16.msra.mxu0 %v3309_v63  ;;  %2157 = vmatpush1.bf16.msra.mxu1 %v3312_v0  ;;  %v3410_v63 = vld [vmem:[%s4534_s1 + $0x7c4] ss:$16 sps:$4 sm:$0xff]   ;;  %v3413_v0 = vld [vmem:[%s4534_s1 + $0x7cc] ss:$16 sps:$4 sm:$0xff]  }
  0xbc   :  { %1943 = vmatprep.subr.bf16.mxu0 %v3317_v1  ;;  %2158 = vmatprep.subr.bf16.mxu1 %v3320_v2  ;;  %v3408_v1 = vld [vmem:[%s4534_s1 + $0x7c0] ss:$16 sps:$4 sm:$0xff]   ;;  %v3411_v2 = vld [vmem:[%s4534_s1 + $0x7c8] ss:$16 sps:$4 sm:$0xff]  }
  0xbf   :  { %1944 = vmatpush1.bf16.msra.mxu0 %v3315_v3  ;;  %2159 = vmatpush1.bf16.msra.mxu1 %v3318_v4  ;;  %v3416_v3 = vld [vmem:[%s4534_s1 + $0x7e4] ss:$16 sps:$4 sm:$0xff]   ;;  %v3419_v4 = vld [vmem:[%s4534_s1 + $0x7ec] ss:$16 sps:$4 sm:$0xff]  }
  0xc0   :  { %1956 = vmatprep.subr.bf16.mxu0 %v3326_v5  ;;  %2171 = vmatprep.subr.bf16.mxu1 %v3329_v6  ;;  %v3414_v5 = vld [vmem:[%s4534_s1 + $0x7e0] ss:$16 sps:$4 sm:$0xff]   ;;  %v3417_v6 = vld [vmem:[%s4534_s1 + $0x7e8] ss:$16 sps:$4 sm:$0xff]  }
  0xc2   :  { %1946 = vmatmul.mubr.bf16.vlgmr.msra.gmra.mrb[0].mxu0 %v3321_v7  ;;  %2161 = vmatmul.mubr.bf16.vlgmr.msra.gmra.mrb[0].mxu1 %v3321_v7  ;;  %v3425_v7 = vld [vmem:[%s4534_s1 + $0x804] ss:$16 sps:$4 sm:$0xff]  }
  0xc3   :  { %1957 = vmatpush1.bf16.msra.mxu0 %v3324_v8  ;;  %2172 = vmatpush1.bf16.msra.mxu1 %v3327_v9  ;;  %v3428_v8 = vld [vmem:[%s4534_s1 + $0x80c] ss:$16 sps:$4 sm:$0xff]  }
  0xc4   :  { %1958 = vmatprep.subr.bf16.mxu0 %v3332_v10  ;;  %2173 = vmatprep.subr.bf16.mxu1 %v3335_v11  ;;  %v3420_v9 = vld [vmem:[%s4535_s0 + $0x18] ss:$36 sps:$4 sm:$0xff]   ;;  %v3423_v10 = vld [vmem:[%s4534_s1 + $0x800] ss:$16 sps:$4 sm:$0xff]  }
  0xc5   :  { %1988 = vmatprep.mubr.bf16.mxu0 %v3422_v12  ;;  %2203 = vmatprep.mubr.bf16.mxu1 %v3422_v12  ;;  %v3426_v11 = vld [vmem:[%s4534_s1 + $0x808] ss:$16 sps:$4 sm:$0xff]   ;;  %v3431_v12 = vld [vmem:[%s4534_s1 + $0x824] ss:$16 sps:$4 sm:$0xff]  }
  0xc7   :  { %1959 = vmatpush1.bf16.msra.mxu0 %v3330_v13  ;;  %2174 = vmatpush1.bf16.msra.mxu1 %v3333_v14  ;;  %v3434_v13 = vld [vmem:[%s4534_s1 + $0x82c] ss:$16 sps:$4 sm:$0xff]   ;;  %v3429_v14 = vld [vmem:[%s4534_s1 + $0x820] ss:$16 sps:$4 sm:$0xff]  }
  0xc8   :  { %1960 = vmatprep.subr.bf16.mxu0 %v3338_v15  ;;  %2175 = vmatprep.subr.bf16.mxu1 %v3341_v16  ;;  %v3432_v15 = vld [vmem:[%s4534_s1 + $0x828] ss:$16 sps:$4 sm:$0xff]   ;;  %v3437_v16 = vld [vmem:[%s4534_s1 + $0x844] ss:$16 sps:$4 sm:$0xff]  }
  0xcb   :  { %1961 = vmatpush1.bf16.msra.mxu0 %v3336_v17  ;;  %2176 = vmatpush1.bf16.msra.mxu1 %v3339_v18  ;;  %v3440_v17 = vld [vmem:[%s4534_s1 + $0x84c] ss:$16 sps:$4 sm:$0xff]   ;;  %v3504_v18 = vmov 0  }
  0xcc   :  { %1962 = vmatprep.subr.bf16.mxu0 %v3344_v19  ;;  %2177 = vmatprep.subr.bf16.mxu1 %v3347_v20  ;;  %v3435_v19 = vld [vmem:[%s4534_s1 + $0x840] ss:$16 sps:$4 sm:$0xff]   ;;  %v3438_v20 = vld [vmem:[%s4534_s1 + $0x848] ss:$16 sps:$4 sm:$0xff]  }
  0xcf   :  { %1963 = vmatpush1.bf16.msra.mxu0 %v3342_v21  ;;  %2178 = vmatpush1.bf16.msra.mxu1 %v3345_v22  ;;  %v3443_v21 = vld [vmem:[%s4534_s1 + $0x864] ss:$16 sps:$4 sm:$0xff]   ;;  %v3446_v22 = vld [vmem:[%s4534_s1 + $0x86c] ss:$16 sps:$4 sm:$0xff]  }
  0xd0   :  { %1964 = vmatprep.subr.bf16.mxu0 %v3350_v23  ;;  %2179 = vmatprep.subr.bf16.mxu1 %v3353_v24  ;;  %v3441_v23 = vld [vmem:[%s4534_s1 + $0x860] ss:$16 sps:$4 sm:$0xff]   ;;  %v3444_v24 = vld [vmem:[%s4534_s1 + $0x868] ss:$16 sps:$4 sm:$0xff]  }
  0xd3   :  { %1965 = vmatpush1.bf16.msra.mxu0 %v3348_v25  ;;  %2180 = vmatpush1.bf16.msra.mxu1 %v3351_v26  ;;  %v3449_v25 = vld [vmem:[%s4534_s1 + $0x884] ss:$16 sps:$4 sm:$0xff]   ;;  %v3452_v26 = vld [vmem:[%s4534_s1 + $0x88c] ss:$16 sps:$4 sm:$0xff]  }
  0xd4   :  { %1966 = vmatprep.subr.bf16.mxu0 %v3356_v27  ;;  %2181 = vmatprep.subr.bf16.mxu1 %v3359_v28  ;;  %v3447_v27 = vld [vmem:[%s4534_s1 + $0x880] ss:$16 sps:$4 sm:$0xff]   ;;  %v3450_v28 = vld [vmem:[%s4534_s1 + $0x888] ss:$16 sps:$4 sm:$0xff]  }
  0xd7   :  { %1967 = vmatpush1.bf16.msra.mxu0 %v3354_v29  ;;  %2182 = vmatpush1.bf16.msra.mxu1 %v3357_v30  ;;  %v3455_v29 = vld [vmem:[%s4534_s1 + $0x8a4] ss:$16 sps:$4 sm:$0xff]   ;;  %v3458_v30 = vld [vmem:[%s4534_s1 + $0x8ac] ss:$16 sps:$4 sm:$0xff]  }
  0xd8   :  { %1968 = vmatprep.subr.bf16.mxu0 %v3362_v31  ;;  %2183 = vmatprep.subr.bf16.mxu1 %v3365_v32  ;;  %v3453_v31 = vld [vmem:[%s4534_s1 + $0x8a0] ss:$16 sps:$4 sm:$0xff]   ;;  %v3456_v32 = vld [vmem:[%s4534_s1 + $0x8a8] ss:$16 sps:$4 sm:$0xff]  }
  0xdb   :  { %1969 = vmatpush1.bf16.msra.mxu0 %v3360_v33  ;;  %2184 = vmatpush1.bf16.msra.mxu1 %v3363_v34  ;;  %v3461_v33 = vld [vmem:[%s4534_s1 + $0x8c4] ss:$16 sps:$4 sm:$0xff]   ;;  %v3464_v34 = vld [vmem:[%s4534_s1 + $0x8cc] ss:$16 sps:$4 sm:$0xff]  }
  0xdc   :  { %1970 = vmatprep.subr.bf16.mxu0 %v3368_v35  ;;  %2185 = vmatprep.subr.bf16.mxu1 %v3371_v36  ;;  %v3459_v35 = vld [vmem:[%s4534_s1 + $0x8c0] ss:$16 sps:$4 sm:$0xff]   ;;  %v3462_v36 = vld [vmem:[%s4534_s1 + $0x8c8] ss:$16 sps:$4 sm:$0xff]  }
  0xdf   :  { %1971 = vmatpush1.bf16.msra.mxu0 %v3366_v37  ;;  %2186 = vmatpush1.bf16.msra.mxu1 %v3369_v38  ;;  %v3467_v37 = vld [vmem:[%s4534_s1 + $0x8e4] ss:$16 sps:$4 sm:$0xff]   ;;  %v3470_v38 = vld [vmem:[%s4534_s1 + $0x8ec] ss:$16 sps:$4 sm:$0xff]  }
  0xe0   :  { %1972 = vmatprep.subr.bf16.mxu0 %v3374_v39  ;;  %2187 = vmatprep.subr.bf16.mxu1 %v3377_v40  ;;  %v3465_v39 = vld [vmem:[%s4534_s1 + $0x8e0] ss:$16 sps:$4 sm:$0xff]   ;;  %v3468_v40 = vld [vmem:[%s4534_s1 + $0x8e8] ss:$16 sps:$4 sm:$0xff]  }
  0xe3   :  { %1973 = vmatpush1.bf16.msra.mxu0 %v3372_v41  ;;  %2188 = vmatpush1.bf16.msra.mxu1 %v3375_v42  ;;  %v3472_v41 = vld [vmem:[%s4536_s3 + $0x40] sm:$0xff]  }
  0xe4   :  { %1974 = vmatprep.subr.bf16.mxu0 %v3380_v43  ;;  %2189 = vmatprep.subr.bf16.mxu1 %v3383_v44  ;;  %v3473_v42 = vld [vmem:[%s4536_s3 + $0xc0] sm:$0xff]  }
  0xe5   :  { %v3471_v43 = vld [vmem:[%s4535_s0 + $0x20] ss:$36 sps:$4 sm:$0xff]  }
  0xe6   :  { %v3474_v44 = vld [vmem:[%s4536_s3] sm:$0xff]  }
  0xe7   :  { %1975 = vmatpush1.bf16.msra.mxu0 %v3378_v45  ;;  %2190 = vmatpush1.bf16.msra.mxu1 %v3381_v46  ;;  %v3475_v45 = vld [vmem:[%s4536_s3 + $0x80] sm:$0xff]   ;;  %v3476_v46 = vld [vmem:[%s4536_s3 + $0x48] sm:$0xff]  }
  0xe8   :  { %1976 = vmatprep.subr.bf16.mxu0 %v3386_v47  ;;  %2191 = vmatprep.subr.bf16.mxu1 %v3389_v48  ;;  %v3477_v47 = vld [vmem:[%s4536_s3 + $0xc8] sm:$0xff]  }
  0xe9   :  { %v3478_v48 = vld [vmem:[%s4536_s3 + $0x8] sm:$0xff]  }
  0xeb   :  { %1977 = vmatpush1.bf16.msra.mxu0 %v3384_v49  ;;  %2192 = vmatpush1.bf16.msra.mxu1 %v3387_v50  ;;  %v3479_v49 = vld [vmem:[%s4536_s3 + $0x88] sm:$0xff]   ;;  %v3480_v50 = vld [vmem:[%s4536_s3 + $0x50] sm:$0xff]  }
  0xec   :  { %1978 = vmatprep.subr.bf16.mxu0 %v3392_v51  ;;  %2193 = vmatprep.subr.bf16.mxu1 %v3395_v52  ;;  %v3481_v51 = vld [vmem:[%s4536_s3 + $0xd0] sm:$0xff]  }
  0xed   :  { %v3482_v52 = vld [vmem:[%s4536_s3 + $0x10] sm:$0xff]  }
  0xef   :  { %1979 = vmatpush1.bf16.msra.mxu0 %v3390_v53  ;;  %2194 = vmatpush1.bf16.msra.mxu1 %v3393_v54  ;;  %v3483_v53 = vld [vmem:[%s4536_s3 + $0x90] sm:$0xff]   ;;  %v3484_v54 = vld [vmem:[%s4536_s3 + $0x58] sm:$0xff]  }
  0xf0   :  { %1980 = vmatprep.subr.bf16.mxu0 %v3398_v55  ;;  %2195 = vmatprep.subr.bf16.mxu1 %v3401_v56  ;;  %v3485_v55 = vld [vmem:[%s4536_s3 + $0xd8] sm:$0xff]  }
  0xf1   :  { %v3486_v56 = vld [vmem:[%s4536_s3 + $0x18] sm:$0xff]  }
  0xf3   :  { %1981 = vmatpush1.bf16.msra.mxu0 %v3396_v57  ;;  %2196 = vmatpush1.bf16.msra.mxu1 %v3399_v58  ;;  %v3487_v57 = vld [vmem:[%s4536_s3 + $0x98] sm:$0xff]   ;;  %v3488_v58 = vld [vmem:[%s4536_s3 + $0x60] sm:$0xff]  }
  0xf4   :  { %1982 = vmatprep.subr.bf16.mxu0 %v3404_v59  ;;  %2197 = vmatprep.subr.bf16.mxu1 %v3407_v60  ;;  %v3489_v59 = vld [vmem:[%s4536_s3 + $0xe0] sm:$0xff]  }
  0xf5   :  { %v3490_v60 = vld [vmem:[%s4536_s3 + $0x20] sm:$0xff]  }
  0xf7   :  { %1983 = vmatpush1.bf16.msra.mxu0 %v3402_v61  ;;  %2198 = vmatpush1.bf16.msra.mxu1 %v3405_v62  ;;  %v3491_v61 = vld [vmem:[%s4536_s3 + $0xa0] sm:$0xff]   ;;  %v3492_v62 = vld [vmem:[%s4536_s3 + $0x68] sm:$0xff]  }
  0xf8   :  { %1984 = vmatprep.subr.bf16.mxu0 %v3410_v63  ;;  %2199 = vmatprep.subr.bf16.mxu1 %v3413_v0  ;;  %v3493_v63 = vld [vmem:[%s4536_s3 + $0xe8] sm:$0xff]  }
  0xf9   :  { %v3494_v0 = vld [vmem:[%s4536_s3 + $0x28] sm:$0xff]  }
  0xfb   :  { %1985 = vmatpush1.bf16.msra.mxu0 %v3408_v1  ;;  %2200 = vmatpush1.bf16.msra.mxu1 %v3411_v2  ;;  %v3495_v1 = vld [vmem:[%s4536_s3 + $0xa8] sm:$0xff]   ;;  %v3496_v2 = vld [vmem:[%s4536_s3 + $0x70] sm:$0xff]  }
  0xfc   :  { %1986 = vmatprep.subr.bf16.mxu0 %v3416_v3  ;;  %2201 = vmatprep.subr.bf16.mxu1 %v3419_v4  ;;  %v3497_v3 = vld [vmem:[%s4536_s3 + $0xf0] sm:$0xff]  }
  0xfd   :  { %v3498_v4 = vld [vmem:[%s4536_s3 + $0x30] sm:$0xff]  }
  0xff   :  { %1987 = vmatpush1.bf16.msra.mxu0 %v3414_v5  ;;  %2202 = vmatpush1.bf16.msra.mxu1 %v3417_v6  ;;  %v3499_v5 = vld [vmem:[%s4536_s3 + $0xb0] sm:$0xff]   ;;  %v3500_v6 = vld [vmem:[%s4536_s3 + $0x78] sm:$0xff]  }
 0x100   :  { %1999 = vmatprep.subr.bf16.mxu0 %v3425_v7  ;;  %2214 = vmatprep.subr.bf16.mxu1 %v3428_v8  ;;  %v3501_v7 = vld [vmem:[%s4536_s3 + $0xf8] sm:$0xff]  }
 0x101   :  { %v3502_v8 = vld [vmem:[%s4536_s3 + $0x38] sm:$0xff]  }
 0x102   :  { %1989 = vmatmul.mubr.bf16.vlgmr.msra.gmra.mrb[0].mxu0 %v3420_v9  ;;  %2204 = vmatmul.mubr.bf16.vlgmr.msra.gmra.mrb[0].mxu1 %v3420_v9  ;;  %v3503_v9 = vld [vmem:[%s4536_s3 + $0xb8] sm:$0xff]  }
 0x103   :  { %2000 = vmatpush1.bf16.msra.mxu0 %v3423_v10  ;;  %2215 = vmatpush1.bf16.msra.mxu1 %v3426_v11  ;;  %v321_v10 = vlaneseq }
 0x104   :  { %2001 = vmatprep.subr.bf16.mxu0 %v3431_v12  ;;  %2216 = vmatprep.subr.bf16.mxu1 %v3434_v13 }
 0x105   :  { %2031 = vmatprep.mubr.bf16.mxu0 %v3504_v18  ;;  %2246 = vmatprep.mubr.bf16.mxu1 %v3504_v18  ;;  %v322_v11 = vshrl.u32 %v321_v10, 7 }
 0x107   :  { %2002 = vmatpush1.bf16.msra.mxu0 %v3429_v14  ;;  %2217 = vmatpush1.bf16.msra.mxu1 %v3432_v15  ;;  %v323_v12 = vsub.s32 0, %v322_v11  ;;  %v331_v13 = vsub.s32 2, %v322_v11  ;;  %v319_v14 = vld [vmem:[%s4537_s2] sm:$0xf]  ;;  %v327_v15 = vsub.s32 1, %v322_v11 }
 0x108   :  { %2003 = vmatprep.subr.bf16.mxu0 %v3437_v16  ;;  %2218 = vmatprep.subr.bf16.mxu1 %v3440_v17  ;;  %v335_v16 = vsub.s32 3, %v322_v11 }
 0x109   :  { %v324_v17 = vrot.slane %v319_v14, %v323_v12  ;;  %v332_v18 = vrot.slane %v319_v14, %v331_v13 }
 0x10b   :  { %2004 = vmatpush1.bf16.msra.mxu0 %v3435_v19  ;;  %2219 = vmatpush1.bf16.msra.mxu1 %v3438_v20 }
 0x10c   :  { %2005 = vmatprep.subr.bf16.mxu0 %v3443_v21  ;;  %2220 = vmatprep.subr.bf16.mxu1 %v3446_v22  ;;  %v328_v21 = vrot.slane %v319_v14, %v327_v15  ;;  %v336_v22 = vrot.slane %v319_v14, %v335_v16 }
 0x10f   :  { %2006 = vmatpush1.bf16.msra.mxu0 %v3441_v23  ;;  %2221 = vmatpush1.bf16.msra.mxu1 %v3444_v24 }
 0x110   :  { %2007 = vmatprep.subr.bf16.mxu0 %v3449_v25  ;;  %2222 = vmatprep.subr.bf16.mxu1 %v3452_v26 }
 0x113   :  { %2008 = vmatpush1.bf16.msra.mxu0 %v3447_v27  ;;  %2223 = vmatpush1.bf16.msra.mxu1 %v3450_v28 }
 0x114   :  { %2009 = vmatprep.subr.bf16.mxu0 %v3455_v29  ;;  %2224 = vmatprep.subr.bf16.mxu1 %v3458_v30 }
 0x117   :  { %2010 = vmatpush1.bf16.msra.mxu0 %v3453_v31  ;;  %2225 = vmatpush1.bf16.msra.mxu1 %v3456_v32 }
 0x118   :  { %2011 = vmatprep.subr.bf16.mxu0 %v3461_v33  ;;  %2226 = vmatprep.subr.bf16.mxu1 %v3464_v34 }
 0x11b   :  { %2012 = vmatpush1.bf16.msra.mxu0 %v3459_v35  ;;  %2227 = vmatpush1.bf16.msra.mxu1 %v3462_v36 }
 0x11c   :  { %2013 = vmatprep.subr.bf16.mxu0 %v3467_v37  ;;  %2228 = vmatprep.subr.bf16.mxu1 %v3470_v38 }
 0x11f   :  { %2014 = vmatpush1.bf16.msra.mxu0 %v3465_v39  ;;  %2229 = vmatpush1.bf16.msra.mxu1 %v3468_v40 }
 0x120   :  { %2942 = vmatprep.subr.bf16.mxu0 %v3472_v41  ;;  %2964 = vmatprep.subr.bf16.mxu1 %v3473_v42 }
 0x122   :  { %2032 = vmatmul.mubr.bf16.vlgmr.msra.gmra.mrb[0].mxu0 %v3471_v43  ;;  %2247 = vmatmul.mubr.bf16.vlgmr.msra.gmra.mrb[0].mxu1 %v3471_v43  ;;  %v2909_v43 = vld [vmem:[%s4538_s4] ss:$0 sm:$0xff] }
 0x123   :  { %2943 = vmatpush3.bf16.msra.mxu0 %v3474_v44  ;;  %2965 = vmatpush3.bf16.msra.mxu1 %v3475_v45 }
 0x124   :  { %2944 = vmatprep.subr.bf16.mxu0 %v3476_v46  ;;  %2966 = vmatprep.subr.bf16.mxu1 %v3477_v47 }
 0x127   :  { %2945 = vmatpush3.bf16.msra.mxu0 %v3478_v48  ;;  %2967 = vmatpush3.bf16.msra.mxu1 %v3479_v49 }
 0x128   :  { %2946 = vmatprep.subr.bf16.mxu0 %v3480_v50  ;;  %2968 = vmatprep.subr.bf16.mxu1 %v3481_v51 }
 0x12b   :  { %2947 = vmatpush3.bf16.msra.mxu0 %v3482_v52  ;;  %2969 = vmatpush3.bf16.msra.mxu1 %v3483_v53 }
 0x12c   :  { %2948 = vmatprep.subr.bf16.mxu0 %v3484_v54  ;;  %2970 = vmatprep.subr.bf16.mxu1 %v3485_v55 }
 0x12f   :  { %2949 = vmatpush3.bf16.msra.mxu0 %v3486_v56  ;;  %2971 = vmatpush3.bf16.msra.mxu1 %v3487_v57 }
 0x130   :  { %2950 = vmatprep.subr.bf16.mxu0 %v3488_v58  ;;  %2972 = vmatprep.subr.bf16.mxu1 %v3489_v59 }
 0x133   :  { %2951 = vmatpush3.bf16.msra.mxu0 %v3490_v60  ;;  %2973 = vmatpush3.bf16.msra.mxu1 %v3491_v61 }
 0x134   :  { %2952 = vmatprep.subr.bf16.mxu0 %v3492_v62  ;;  %2974 = vmatprep.subr.bf16.mxu1 %v3493_v63 }
 0x137   :  { %2953 = vmatpush3.bf16.msra.mxu0 %v3494_v0  ;;  %2975 = vmatpush3.bf16.msra.mxu1 %v3495_v1 }
 0x138   :  { %2954 = vmatprep.subr.bf16.mxu0 %v3496_v2  ;;  %2976 = vmatprep.subr.bf16.mxu1 %v3497_v3 }
 0x13b   :  { %2955 = vmatpush3.bf16.msra.mxu0 %v3498_v4  ;;  %2977 = vmatpush3.bf16.msra.mxu1 %v3499_v5 }
 0x13c   :  { %2956 = vmatprep.subr.bf16.mxu0 %v3500_v6  ;;  %2978 = vmatprep.subr.bf16.mxu1 %v3501_v7 }
 0x13f   :  { %2957 = vmatpush3.bf16.msra.mxu0 %v3502_v8  ;;  %2979 = vmatpush3.bf16.msra.mxu1 %v3503_v9 }
 0x1f5   :  { %v2033_v19 = vpop.f32.mrb[0].mxu0  ;;  %v2248_v20 = vpop.f32.mrb[0].mxu1 }
 0x1f6   :  { %v2035_v23 = vpop.f32.mrb[1].mxu0  ;;  %v2250_v24 = vpop.f32.mrb[1].mxu1  ;;  %v2986_v27 = vadd.f32 %v2033_v19, %v324_v17  ;;  %v2990_v28 = vadd.f32 %v2248_v20, %v332_v18 }
 0x1f7   :  { %v2037_v25 = vpop.f32.mrb[2].mxu0  ;;  %v2252_v26 = vpop.f32.mrb[2].mxu1  ;;  %v2987_v33 = vadd.f32 %v2035_v23, %v328_v21  ;;  %v2991_v34 = vadd.f32 %v2250_v24, %v336_v22 }
 0x1f8   :  { %v2988_v29 = vadd.f32 %v2037_v25, %v324_v17  ;;  %v2992_v30 = vadd.f32 %v2252_v26, %v332_v18  ;;  %v2039_v31 = vpop.f32.mrb[3].mxu0  ;;  %v2254_v32 = vpop.f32.mrb[3].mxu1 }
 0x1f9   :  { %v2989_v35 = vadd.f32 %v2039_v31, %v328_v21  ;;  %v2993_v36 = vadd.f32 %v2254_v32, %v336_v22 }
 0x1fa   :  { %v2257_v37 = vpack.c.bf16 %v2988_v29, %v2986_v27  ;;  %v2259_v38 = vpack.c.bf16 %v2992_v30, %v2990_v28 }
 0x1fb   :  { %v2258_v39 = vpack.c.bf16 %v2989_v35, %v2987_v33  ;;  %v2260_v40 = vpack.c.bf16 %v2993_v36, %v2991_v34 }
 0x1fd   :  { %2556 = vmatprep.mubr.bf16.mxu0 %v2258_v39  ;;  %2597 = vmatprep.mubr.bf16.mxu1 %v2260_v40 }
 0x1fe   :  { %2557 = vmatmul.mubr.bf16.vlgmr.msra.gmra.mrb[4].mxu0 %v2257_v37  ;;  %2598 = vmatmul.mubr.bf16.vlgmr.msra.gmra.mrb[4].mxu1 %v2259_v38 }
 0x2d1   :  { %v2958_v41 = vpop.f32.mrb[4].mxu0  ;;  %v2980_v42 = vpop.f32.mrb[4].mxu1 }
 0x2d2   :  { %v2959_v44 = vpop.f32.mrb[5].mxu0  ;;  %v2981_v45 = vpop.f32.mrb[5].mxu1 }
 0x2d3   :  { %v2960_v46 = vadd.f32 %v2959_v44, %v2958_v41  ;;  %v2982_v47 = vadd.f32 %v2981_v45, %v2980_v42  ;;  %v2961_v48 = vpop.f32.mrb[6].mxu0  ;;  %v2983_v49 = vpop.f32.mrb[6].mxu1 }
 0x2d4   :  { %v2962_v50 = vpop.f32.mrb[7].mxu0  ;;  %v2984_v51 = vpop.f32.mrb[7].mxu1 }
 0x2d5   :  { %v2559_v52 = vadd.f32 %v2960_v46, %v2909_v43  ;;  %v2963_v53 = vadd.f32 %v2962_v50, %v2961_v48  ;;  %v2985_v54 = vadd.f32 %v2984_v51, %v2983_v49 }
 0x2d7   :  { %v2600_v55 = vadd.f32 %v2982_v47, %v2559_v52  ;;  %v2562_v56 = vadd.f32 %v2963_v53, %v2909_v43 }
 0x2d9   :  { %2606 = vst [vmem:[%s4539_s5] sm:$0xff] %v2600_v55  ;;  %v2603_v57 = vadd.f32 %v2985_v54, %v2562_v56 }
 0x2db   :  { %2607 = vst [vmem:[%s4539_s5 + $0x8] sm:$0xff] %v2603_v57 }

</bundles_post_ra>
